<compile_context>
chip_gen: v6e
topology: v6e:2x2x1
jax: 0.10.0
libtpu: 0.0.40
codegen_flags: <defaults>
</compile_context>

<pallas_src>
import functools
import numpy as np

import jax
import jax.numpy as jnp
from jax.experimental import pallas as pl
from jax.experimental.pallas import tpu as pltpu


# Padded channel / feature widths (lane-dense layouts).
C1P = 32            # conv1 out channels 20 -> 32
C2P = 64            # conv2 out channels 50 -> 64
F1P = 512           # fc1 out features 500 -> 512
F2P = 128           # fc2 out features 10  -> 128 (lane-dense output)

K1 = 5 * 28         # conv1 GEMM contraction (5 kernel rows x 28 image cols)
N1 = 24 * C1P       # conv1 GEMM output cols: (w parity, w//2, channel)
K2 = 5 * 12 * C1P   # conv2 GEMM contraction (5 kernel rows x 12 cols x C1P)
N2 = 8 * C2P        # conv2 GEMM output cols: (w' parity, w'//2, channel)

# Per-image conv1 output-row order (hpar, h2par, h2q) -> h = 4*h2q + 2*h2par + hpar.
# With this ordering BOTH height pools become half-block maxes, the conv2 LHS
# is built from contiguous row slices, and the fc1 flatten is 4 contiguous row
# blocks concatenated along lanes.
_ROW_PERM = np.array([4 * h2q + 2 * h2par + hpar
                      for hpar in (0, 1) for h2par in (0, 1) for h2q in range(6)],
                     dtype=np.int32)


# ---------------------------------------------------------------------------
# Fused forward kernel (B images per grid step)
# ---------------------------------------------------------------------------

def _fused_cnn_kernel(x_ref, w1_ref, b1_ref, w2_ref, b2_ref,
                      wf1_ref, bf1_ref, wf2_ref, bf2_ref, o_ref, *, B):
    f32, bf16 = jnp.float32, jnp.bfloat16

    # ---- conv1 + bias + ReLU: one (24B, 140) x (140, 768) GEMM --------------
    y1 = jnp.dot(x_ref[...], w1_ref[...], preferred_element_type=f32)
    y1 = jnp.maximum(y1 + b1_ref[...], 0.0)                       # (24B, 768)

    # ---- 2x2 max-pool: width = even/odd lane halves, height = row halves ----
    wp1 = jnp.maximum(y1[:, :12 * C1P], y1[:, 12 * C1P:])         # (24B, 384)
    p1 = jnp.maximum(wp1[:12 * B, :], wp1[12 * B:, :]).astype(bf16)  # (12B, 384)
    # p1 rows = (h2 parity, h2//2, image), cols = (w2, channel)

    # ---- conv2 LHS: contiguous row slices + 384-aligned lane concats --------
    def band(par):                       # output-row parity h' = 2r + par
        parts = []
        for di in range(5):
            q = par + di                 # pooled input row h2 = 2r + q
            start = (q % 2) * 6 * B + (q // 2) * B
            parts.append(p1[start:start + 4 * B, :])
        return jnp.concatenate(parts, axis=-1)                    # (4B, 1920)

    lhs2 = jnp.concatenate([band(0), band(1)], axis=0)            # (8B, 1920)

    # ---- conv2 + bias + ReLU: one (8B, 1920) x (1920, 512) GEMM -------------
    y2 = jnp.dot(lhs2, w2_ref[...], preferred_element_type=f32)
    y2 = jnp.maximum(y2 + b2_ref[...], 0.0)                       # (8B, 512)

    wp2 = jnp.maximum(y2[:, :4 * C2P], y2[:, 4 * C2P:])           # (8B, 256)
    p2 = jnp.maximum(wp2[:4 * B, :], wp2[4 * B:, :])              # (4B, 256), rows=(r, b)

    # ---- fc1: flatten = 4 contiguous row blocks -> lanes, one (B,1024) GEMM -
    f_lhs = jnp.concatenate([p2[r * B:(r + 1) * B, :] for r in range(4)],
                            axis=-1).astype(bf16)                 # (B, 1024)
    a1 = jnp.maximum(jnp.dot(f_lhs, wf1_ref[...], preferred_element_type=f32)
                     + bf1_ref[...], 0.0)                         # (B, 512)

    # ---- fc2 + log_softmax (padded classes carry a -1e30 bias) --------------
    logits = jnp.dot(a1.astype(bf16), wf2_ref[...],
                     preferred_element_type=f32) + bf2_ref[...]   # (B, 128)
    m = jnp.max(logits, axis=-1, keepdims=True)
    s = logits - m
    lse = jnp.log(jnp.sum(jnp.exp(s), axis=-1, keepdims=True))
    o_ref[...] = (s - lse).astype(o_ref.dtype)                    # (B, 128)


# ---------------------------------------------------------------------------
# Wrapper
# ---------------------------------------------------------------------------

def _pick_block(n):
    if n >= 32:
        return 32                       # conv1 M=768, conv2 M=256
    return max(8, ((n + 7) // 8) * 8)   # small demo batches


def cnn_mnist_forward(x_nchw, prep):
    """Forward pass; `prep` holds the one-time lowered/padded weights."""
    N = x_nchw.shape[0]
    assert x_nchw.shape[1:] == (1, 28, 28), x_nchw.shape
    B = _pick_block(N)
    Np = pl.cdiv(N, B) * B
    Nb = Np // B

    ximg = x_nchw.reshape(N, 28, 28)
    if Np != N:
        ximg = jnp.pad(ximg, ((0, Np - N), (0, 0), (0, 0)))
    ximg = ximg.astype(jnp.bfloat16)

    # conv1 GEMM LHS (layout plumbing only, ~7 KB/image): lane block di holds
    # image row h+di; per-image output rows are reordered to parity-major
    # order; the batch is minor within each grid block (row = pos*B + b_local).
    lhs = jnp.concatenate([ximg[:, d:d + 24, :] for d in range(5)], axis=-1)  # (Np,24,140)
    lhs = lhs[:, _ROW_PERM, :]
    lhs = lhs.reshape(Nb, B, 24, K1).transpose(0, 2, 1, 3).reshape(Nb * 24 * B, K1)

    const2 = lambda n: (0, 0)
    grid_spec = pltpu.PrefetchScalarGridSpec(
        num_scalar_prefetch=0,
        grid=(Nb,),
        in_specs=[
            pl.BlockSpec((24 * B, K1), lambda n: (n, 0)),     # conv1 LHS block
            pl.BlockSpec((K1, N1), const2),                   # conv1 weight
            pl.BlockSpec((1, N1), const2),                    # conv1 bias
            pl.BlockSpec((K2, N2), const2),                   # conv2 weight
            pl.BlockSpec((1, N2), const2),                    # conv2 bias
            pl.BlockSpec((4 * 4 * C2P, F1P), const2),         # fc1 weight
            pl.BlockSpec((1, F1P), const2),                   # fc1 bias
            pl.BlockSpec((F1P, F2P), const2),                 # fc2 weight
            pl.BlockSpec((1, F2P), const2),                   # fc2 bias
        ],
        out_specs=pl.BlockSpec((B, F2P), lambda n: (n, 0)),
    )
    out = pl.pallas_call(
        functools.partial(_fused_cnn_kernel, B=B),
        out_shape=jax.ShapeDtypeStruct((Np, F2P), jnp.float32),
        grid_spec=grid_spec,
        compiler_params=pltpu.CompilerParams(
            dimension_semantics=("parallel",),
            vmem_limit_bytes=48 * 1024 * 1024),
    )(lhs, prep["w1"], prep["b1"], prep["w2"], prep["b2"],
      prep["wf1"], prep["bf1"], prep["wf2"], prep["bf2"])
    return out[:N, :10]


# ---------------------------------------------------------------------------
# One-time weight lowering (off the hot path)
# ---------------------------------------------------------------------------

def prepare_params(params):
    f32 = np.float32
    w1 = np.asarray(params["w1"], f32)      # (20, 1, 5, 5)
    b1 = np.asarray(params["b1"], f32)      # (20,)
    w2 = np.asarray(params["w2"], f32)      # (50, 20, 5, 5)
    b2 = np.asarray(params["b2"], f32)      # (50,)
    wf1 = np.asarray(params["wfc1"], f32)   # (500, 800)
    bf1 = np.asarray(params["bfc1"], f32)   # (500,)
    wf2 = np.asarray(params["wfc2"], f32)   # (10, 500)
    bf2 = np.asarray(params["bfc2"], f32)   # (10,)

    # conv1: one (140, 768) GEMM weight.  LHS lane = di*28 + image col j;
    # output col = wpar*(12*C1P) + (w//2)*C1P + c.
    W1M = np.zeros((K1, N1), f32)
    B1 = np.zeros((1, N1), f32)
    for w in range(24):
        cb = (w % 2) * (12 * C1P) + (w // 2) * C1P
        B1[0, cb:cb + 20] = b1
        for di in range(5):
            for dj in range(5):
                W1M[di * 28 + w + dj, cb:cb + 20] = w1[:, 0, di, dj]

    # conv2: one (1920, 512) GEMM weight.  LHS lane = di*384 + w2in*C1P + c1;
    # output col = w'par*(4*C2P) + (w'//2)*C2P + c2.
    W2M = np.zeros((K2, N2), f32)
    B2 = np.zeros((1, N2), f32)
    for w in range(8):
        cb = (w % 2) * (4 * C2P) + (w // 2) * C2P
        B2[0, cb:cb + 50] = b2
        for di in range(5):
            for dj in range(5):
                r0 = di * (12 * C1P) + (w + dj) * C1P
                W2M[r0:r0 + 20, cb:cb + 50] = w2[:, :, di, dj].T        # (c1, c2)

    # fc1: fold the PyTorch NCHW flatten (idx = c*16 + h*4 + w) and the
    # channel padding into the weight; fc1 LHS lane = r*(4*C2P) + wq*C2P + c2.
    WF1 = np.zeros((4 * 4 * C2P, F1P), f32)
    for r in range(4):
        for wq in range(4):
            for c in range(50):
                WF1[r * (4 * C2P) + wq * C2P + c, :500] = wf1[:, c * 16 + r * 4 + wq]
    BF1 = np.zeros((1, F1P), f32)
    BF1[0, :500] = bf1

    # fc2: padded class columns get a -1e30 bias so the in-kernel 128-lane
    # log-softmax equals log-softmax over the 10 real classes.
    WF2 = np.zeros((F1P, F2P), f32)
    WF2[:500, :10] = wf2.T
    BF2 = np.full((1, F2P), -1e30, f32)
    BF2[0, :10] = bf2

    bf16 = jnp.bfloat16
    return {
        "w1": jnp.asarray(W1M, dtype=bf16), "b1": jnp.asarray(B1),
        "w2": jnp.asarray(W2M, dtype=bf16), "b2": jnp.asarray(B2),
        "wf1": jnp.asarray(WF1, dtype=bf16), "bf1": jnp.asarray(BF1),
        "wf2": jnp.asarray(WF2, dtype=bf16), "bf2": jnp.asarray(BF2),
    }


# ---------------------------------------------------------------------------
# Parameters (PyTorch module shapes) and pure-JAX reference
# ---------------------------------------------------------------------------

def init_params(key):
    ks = jax.random.split(key, 8)

    def u(k, shape, fan_in):
        bound = 1.0 / jnp.sqrt(jnp.float32(fan_in))
        return jax.random.uniform(k, shape, jnp.float32, -bound, bound)

    return {
        "w1": u(ks[0], (20, 1, 5, 5), 1 * 5 * 5),
        "b1": u(ks[1], (20,), 1 * 5 * 5),
        "w2": u(ks[2], (50, 20, 5, 5), 20 * 5 * 5),
        "b2": u(ks[3], (50,), 20 * 5 * 5),
        "wfc1": u(ks[4], (500, 4 * 4 * 50), 4 * 4 * 50),
        "bfc1": u(ks[5], (500,), 4 * 4 * 50),
        "wfc2": u(ks[6], (10, 500), 500),
        "bfc2": u(ks[7], (10,), 500),
    }


def reference_forward(x_nchw, params):
    """Plain-JAX (XLA) reference matching the PyTorch module exactly (f32)."""
    def conv(x, w, b):
        y = jax.lax.conv_general_dilated(
            x, w, window_strides=(1, 1), padding="VALID",
            dimension_numbers=("NCHW", "OIHW", "NCHW"))
        return jax.nn.relu(y + b[None, :, None, None])

    def pool(x):
        n, c, h, w = x.shape
        return x.reshape(n, c, h // 2, 2, w // 2, 2).max(axis=(3, 5))

    x = pool(conv(x_nchw, params["w1"], params["b1"]))
    x = pool(conv(x, params["w2"], params["b2"]))
    x = x.reshape(x.shape[0], -1)                      # NCHW flatten -> (N, 800)
    x = jax.nn.relu(x @ params["wfc1"].T + params["bfc1"])
    x = x @ params["wfc2"].T + params["bfc2"]
    return jax.nn.log_softmax(x, axis=-1)


# ---------------------------------------------------------------------------
# Main
# ---------------------------------------------------------------------------

if __name__ == "__main__":
    key = jax.random.PRNGKey(0)
    k_x, k_p = jax.random.split(key)

    params = init_params(k_p)
    prep = prepare_params(params)          # one-time lowering, off hot path

    fwd = jax.jit(cnn_mnist_forward)
    ref_fn = jax.jit(reference_forward)

    # Small demo batch (2) plus one batch that exercises batching + padding
    # and a multi-step grid (40 -> B=32, 2 grid steps).
    for n in (2, 40):
        x = jax.random.normal(jax.random.fold_in(k_x, n),
                              (n, 1, 28, 28), dtype=jnp.float32)
        out = jax.block_until_ready(fwd(x, prep))

        assert out.shape == (n, 10), out.shape
        assert bool(jnp.all(jnp.isfinite(out)))
        row_sums = jnp.exp(out).sum(axis=1)
        assert bool(jnp.all(jnp.abs(row_sums - 1.0) < 1e-3)), row_sums

        # Numerical check vs. pure-JAX f32 reference (bf16 matmul operands =>
        # loose-but-discriminative tolerance).
        ref = jax.block_until_ready(ref_fn(x, params))
        max_err = float(jnp.max(jnp.abs(out - ref)))
        assert max_err < 5e-2, f"N={n}: max |pallas - reference| = {max_err}"

    print("KERNEL_OK")
</pallas_src>

<mosaic_0001>
module attributes {stable_mosaic.version = 11 : i64} {
  func.func @_fused_cnn_kernel(%arg0: i32, %arg1: memref<192x140xbf16, #tpu.memory_space<vmem>>, %arg2: memref<140x768xbf16, #tpu.memory_space<vmem>>, %arg3: memref<1x768xf32, #tpu.memory_space<vmem>>, %arg4: memref<1920x512xbf16, #tpu.memory_space<vmem>>, %arg5: memref<1x512xf32, #tpu.memory_space<vmem>>, %arg6: memref<1024x512xbf16, #tpu.memory_space<vmem>>, %arg7: memref<1x512xf32, #tpu.memory_space<vmem>>, %arg8: memref<512x128xbf16, #tpu.memory_space<vmem>>, %arg9: memref<1x128xf32, #tpu.memory_space<vmem>>, %arg10: memref<8x128xf32, #tpu.memory_space<vmem>>) attributes {dimension_semantics = [#tpu.dimension_semantics<parallel>], iteration_bounds = array<i64: 1>, scalar_prefetch = 0 : i64, scratch_operands = 0 : i64, tpu.core_type = #tpu.core_type<tc>, window_params = [{transform_indices = @transform_0, window_bounds = array<i64: 192, 140>}, {pipeline_mode = #tpu.pipeline_mode<synchronous>, transform_indices = @transform_1, window_bounds = array<i64: 140, 768>}, {pipeline_mode = #tpu.pipeline_mode<synchronous>, transform_indices = @transform_2, window_bounds = array<i64: 1, 768>}, {pipeline_mode = #tpu.pipeline_mode<synchronous>, transform_indices = @transform_3, window_bounds = array<i64: 1920, 512>}, {pipeline_mode = #tpu.pipeline_mode<synchronous>, transform_indices = @transform_4, window_bounds = array<i64: 1, 512>}, {pipeline_mode = #tpu.pipeline_mode<synchronous>, transform_indices = @transform_5, window_bounds = array<i64: 1024, 512>}, {pipeline_mode = #tpu.pipeline_mode<synchronous>, transform_indices = @transform_6, window_bounds = array<i64: 1, 512>}, {pipeline_mode = #tpu.pipeline_mode<synchronous>, transform_indices = @transform_7, window_bounds = array<i64: 512, 128>}, {pipeline_mode = #tpu.pipeline_mode<synchronous>, transform_indices = @transform_8, window_bounds = array<i64: 1, 128>}, {transform_indices = @transform_9, window_bounds = array<i64: 8, 128>}]} {
    %c0 = arith.constant 0 : index
    %c0_0 = arith.constant 0 : index
    %0 = vector.load %arg1[%c0, %c0_0] : memref<192x140xbf16, #tpu.memory_space<vmem>>, vector<192x140xbf16>
    %c0_1 = arith.constant 0 : index
    %c0_2 = arith.constant 0 : index
    %1 = vector.load %arg2[%c0_1, %c0_2] : memref<140x768xbf16, #tpu.memory_space<vmem>>, vector<140x768xbf16>
    %cst = arith.constant dense<0.000000e+00> : vector<192x768xf32>
    %2 = tpu.matmul %0, %1, %cst {dimension_numbers = #tpu.dot_dimension_numbers<[1], [0], [0], [1], [0, 0, 1, 1], [], []>} : vector<192x140xbf16>, vector<140x768xbf16>, vector<192x768xf32> -> vector<192x768xf32>
    %c0_3 = arith.constant 0 : index
    %c0_4 = arith.constant 0 : index
    %3 = vector.load %arg3[%c0_3, %c0_4] : memref<1x768xf32, #tpu.memory_space<vmem>>, vector<1x768xf32>
    %4 = vector.broadcast %3 : vector<1x768xf32> to vector<192x768xf32>
    %5 = arith.addf %2, %4 : vector<192x768xf32>
    %cst_5 = arith.constant 0.000000e+00 : f32
    %6 = vector.broadcast %cst_5 : f32 to vector<192x768xf32>
    %7 = arith.maximumf %5, %6 : vector<192x768xf32>
    %8 = vector.extract_strided_slice %7 {offsets = [0, 0], sizes = [192, 384], strides = [1, 1]} : vector<192x768xf32> to vector<192x384xf32>
    %9 = vector.extract_strided_slice %7 {offsets = [0, 384], sizes = [192, 384], strides = [1, 1]} : vector<192x768xf32> to vector<192x384xf32>
    %10 = arith.maximumf %8, %9 : vector<192x384xf32>
    %11 = vector.extract_strided_slice %10 {offsets = [0, 0], sizes = [96, 384], strides = [1, 1]} : vector<192x384xf32> to vector<96x384xf32>
    %12 = vector.extract_strided_slice %10 {offsets = [96, 0], sizes = [96, 384], strides = [1, 1]} : vector<192x384xf32> to vector<96x384xf32>
    %13 = arith.maximumf %11, %12 : vector<96x384xf32>
    %14 = arith.truncf %13 : vector<96x384xf32> to vector<96x384xbf16>
    %15 = vector.extract_strided_slice %14 {offsets = [0, 0], sizes = [32, 384], strides = [1, 1]} : vector<96x384xbf16> to vector<32x384xbf16>
    %16 = vector.extract_strided_slice %14 {offsets = [48, 0], sizes = [32, 384], strides = [1, 1]} : vector<96x384xbf16> to vector<32x384xbf16>
    %17 = vector.extract_strided_slice %14 {offsets = [8, 0], sizes = [32, 384], strides = [1, 1]} : vector<96x384xbf16> to vector<32x384xbf16>
    %18 = vector.extract_strided_slice %14 {offsets = [56, 0], sizes = [32, 384], strides = [1, 1]} : vector<96x384xbf16> to vector<32x384xbf16>
    %19 = vector.extract_strided_slice %14 {offsets = [16, 0], sizes = [32, 384], strides = [1, 1]} : vector<96x384xbf16> to vector<32x384xbf16>
    %20 = tpu.concatenate %15, %16, %17, %18, %19 in 1 : vector<32x384xbf16>, vector<32x384xbf16>, vector<32x384xbf16>, vector<32x384xbf16>, vector<32x384xbf16> -> vector<32x1920xbf16>
    %21 = vector.extract_strided_slice %14 {offsets = [48, 0], sizes = [32, 384], strides = [1, 1]} : vector<96x384xbf16> to vector<32x384xbf16>
    %22 = vector.extract_strided_slice %14 {offsets = [8, 0], sizes = [32, 384], strides = [1, 1]} : vector<96x384xbf16> to vector<32x384xbf16>
    %23 = vector.extract_strided_slice %14 {offsets = [56, 0], sizes = [32, 384], strides = [1, 1]} : vector<96x384xbf16> to vector<32x384xbf16>
    %24 = vector.extract_strided_slice %14 {offsets = [16, 0], sizes = [32, 384], strides = [1, 1]} : vector<96x384xbf16> to vector<32x384xbf16>
    %25 = vector.extract_strided_slice %14 {offsets = [64, 0], sizes = [32, 384], strides = [1, 1]} : vector<96x384xbf16> to vector<32x384xbf16>
    %26 = tpu.concatenate %21, %22, %23, %24, %25 in 1 : vector<32x384xbf16>, vector<32x384xbf16>, vector<32x384xbf16>, vector<32x384xbf16>, vector<32x384xbf16> -> vector<32x1920xbf16>
    %27 = tpu.concatenate %20, %26 in 0 : vector<32x1920xbf16>, vector<32x1920xbf16> -> vector<64x1920xbf16>
    %c0_6 = arith.constant 0 : index
    %c0_7 = arith.constant 0 : index
    %28 = vector.load %arg4[%c0_6, %c0_7] : memref<1920x512xbf16, #tpu.memory_space<vmem>>, vector<1920x512xbf16>
    %cst_8 = arith.constant dense<0.000000e+00> : vector<64x512xf32>
    %29 = tpu.matmul %27, %28, %cst_8 {dimension_numbers = #tpu.dot_dimension_numbers<[1], [0], [0], [1], [0, 0, 1, 1], [], []>} : vector<64x1920xbf16>, vector<1920x512xbf16>, vector<64x512xf32> -> vector<64x512xf32>
    %c0_9 = arith.constant 0 : index
    %c0_10 = arith.constant 0 : index
    %30 = vector.load %arg5[%c0_9, %c0_10] : memref<1x512xf32, #tpu.memory_space<vmem>>, vector<1x512xf32>
    %31 = vector.broadcast %30 : vector<1x512xf32> to vector<64x512xf32>
    %32 = arith.addf %29, %31 : vector<64x512xf32>
    %cst_11 = arith.constant 0.000000e+00 : f32
    %33 = vector.broadcast %cst_11 : f32 to vector<64x512xf32>
    %34 = arith.maximumf %32, %33 : vector<64x512xf32>
    %35 = vector.extract_strided_slice %34 {offsets = [0, 0], sizes = [64, 256], strides = [1, 1]} : vector<64x512xf32> to vector<64x256xf32>
    %36 = vector.extract_strided_slice %34 {offsets = [0, 256], sizes = [64, 256], strides = [1, 1]} : vector<64x512xf32> to vector<64x256xf32>
    %37 = arith.maximumf %35, %36 : vector<64x256xf32>
    %38 = vector.extract_strided_slice %37 {offsets = [0, 0], sizes = [32, 256], strides = [1, 1]} : vector<64x256xf32> to vector<32x256xf32>
    %39 = vector.extract_strided_slice %37 {offsets = [32, 0], sizes = [32, 256], strides = [1, 1]} : vector<64x256xf32> to vector<32x256xf32>
    %40 = arith.maximumf %38, %39 : vector<32x256xf32>
    %41 = vector.extract_strided_slice %40 {offsets = [0, 0], sizes = [8, 256], strides = [1, 1]} : vector<32x256xf32> to vector<8x256xf32>
    %42 = vector.extract_strided_slice %40 {offsets = [8, 0], sizes = [8, 256], strides = [1, 1]} : vector<32x256xf32> to vector<8x256xf32>
    %43 = vector.extract_strided_slice %40 {offsets = [16, 0], sizes = [8, 256], strides = [1, 1]} : vector<32x256xf32> to vector<8x256xf32>
    %44 = vector.extract_strided_slice %40 {offsets = [24, 0], sizes = [8, 256], strides = [1, 1]} : vector<32x256xf32> to vector<8x256xf32>
    %45 = tpu.concatenate %41, %42, %43, %44 in 1 : vector<8x256xf32>, vector<8x256xf32>, vector<8x256xf32>, vector<8x256xf32> -> vector<8x1024xf32>
    %46 = arith.truncf %45 : vector<8x1024xf32> to vector<8x1024xbf16>
    %c0_12 = arith.constant 0 : index
    %c0_13 = arith.constant 0 : index
    %47 = vector.load %arg6[%c0_12, %c0_13] : memref<1024x512xbf16, #tpu.memory_space<vmem>>, vector<1024x512xbf16>
    %cst_14 = arith.constant dense<0.000000e+00> : vector<8x512xf32>
    %48 = tpu.matmul %46, %47, %cst_14 {dimension_numbers = #tpu.dot_dimension_numbers<[1], [0], [0], [1], [0, 0, 1, 1], [], []>} : vector<8x1024xbf16>, vector<1024x512xbf16>, vector<8x512xf32> -> vector<8x512xf32>
    %c0_15 = arith.constant 0 : index
    %c0_16 = arith.constant 0 : index
    %49 = vector.load %arg7[%c0_15, %c0_16] : memref<1x512xf32, #tpu.memory_space<vmem>>, vector<1x512xf32>
    %50 = vector.broadcast %49 : vector<1x512xf32> to vector<8x512xf32>
    %51 = arith.addf %48, %50 : vector<8x512xf32>
    %cst_17 = arith.constant 0.000000e+00 : f32
    %52 = vector.broadcast %cst_17 : f32 to vector<8x512xf32>
    %53 = arith.maximumf %51, %52 : vector<8x512xf32>
    %54 = arith.truncf %53 : vector<8x512xf32> to vector<8x512xbf16>
    %c0_18 = arith.constant 0 : index
    %c0_19 = arith.constant 0 : index
    %55 = vector.load %arg8[%c0_18, %c0_19] : memref<512x128xbf16, #tpu.memory_space<vmem>>, vector<512x128xbf16>
    %cst_20 = arith.constant dense<0.000000e+00> : vector<8x128xf32>
    %56 = tpu.matmul %54, %55, %cst_20 {dimension_numbers = #tpu.dot_dimension_numbers<[1], [0], [0], [1], [0, 0, 1, 1], [], []>} : vector<8x512xbf16>, vector<512x128xbf16>, vector<8x128xf32> -> vector<8x128xf32>
    %c0_21 = arith.constant 0 : index
    %c0_22 = arith.constant 0 : index
    %57 = vector.load %arg9[%c0_21, %c0_22] : memref<1x128xf32, #tpu.memory_space<vmem>>, vector<1x128xf32>
    %58 = vector.broadcast %57 : vector<1x128xf32> to vector<8x128xf32>
    %59 = arith.addf %56, %58 : vector<8x128xf32>
    %cst_23 = arith.constant dense<0xFF800000> : vector<8xf32>
    %60 = vector.multi_reduction <maximumf>, %59, %cst_23 [1] : vector<8x128xf32> to vector<8xf32>
    %61 = vector.shape_cast %60 : vector<8xf32> to vector<8x1xf32>
    %62 = vector.broadcast %61 : vector<8x1xf32> to vector<8x128xf32>
    %63 = arith.subf %59, %62 : vector<8x128xf32>
    %64 = math.exp %63 : vector<8x128xf32>
    %cst_24 = arith.constant dense<0.000000e+00> : vector<8xf32>
    %65 = vector.multi_reduction <add>, %64, %cst_24 [1] : vector<8x128xf32> to vector<8xf32>
    %66 = vector.shape_cast %65 : vector<8xf32> to vector<8x1xf32>
    %67 = math.log %66 : vector<8x1xf32>
    %68 = vector.broadcast %67 : vector<8x1xf32> to vector<8x128xf32>
    %69 = arith.subf %63, %68 : vector<8x128xf32>
    %c0_25 = arith.constant 0 : index
    %c0_26 = arith.constant 0 : index
    %70 = vector.load %arg10[%c0_25, %c0_26] : memref<8x128xf32, #tpu.memory_space<vmem>>, vector<8x128xf32>
    tpu.vector_store %arg10[%c0_25, %c0_26], %69 {strides = array<i32>} : memref<8x128xf32, #tpu.memory_space<vmem>>, vector<8x128xf32>,
    return
  }
  func.func @transform_0(%arg0: i32) -> (i32, i32) {
    %c0_i32 = arith.constant 0 : i32
    %c0_i32_0 = arith.constant 0 : i32
    return %arg0, %c0_i32 : i32, i32
  }
  func.func @transform_1(%arg0: i32) -> (i32, i32) {
    %c0_i32 = arith.constant 0 : i32
    %c0_i32_0 = arith.constant 0 : i32
    %c0_i32_1 = arith.constant 0 : i32
    return %c0_i32, %c0_i32_0 : i32, i32
  }
  func.func @transform_2(%arg0: i32) -> (i32, i32) {
    %c0_i32 = arith.constant 0 : i32
    %c0_i32_0 = arith.constant 0 : i32
    %c0_i32_1 = arith.constant 0 : i32
    return %c0_i32, %c0_i32_0 : i32, i32
  }
  func.func @transform_3(%arg0: i32) -> (i32, i32) {
    %c0_i32 = arith.constant 0 : i32
    %c0_i32_0 = arith.constant 0 : i32
    %c0_i32_1 = arith.constant 0 : i32
    return %c0_i32, %c0_i32_0 : i32, i32
  }
  func.func @transform_4(%arg0: i32) -> (i32, i32) {
    %c0_i32 = arith.constant 0 : i32
    %c0_i32_0 = arith.constant 0 : i32
    %c0_i32_1 = arith.constant 0 : i32
    return %c0_i32, %c0_i32_0 : i32, i32
  }
  func.func @transform_5(%arg0: i32) -> (i32, i32) {
    %c0_i32 = arith.constant 0 : i32
    %c0_i32_0 = arith.constant 0 : i32
    %c0_i32_1 = arith.constant 0 : i32
    return %c0_i32, %c0_i32_0 : i32, i32
  }
  func.func @transform_6(%arg0: i32) -> (i32, i32) {
    %c0_i32 = arith.constant 0 : i32
    %c0_i32_0 = arith.constant 0 : i32
    %c0_i32_1 = arith.constant 0 : i32
    return %c0_i32, %c0_i32_0 : i32, i32
  }
  func.func @transform_7(%arg0: i32) -> (i32, i32) {
    %c0_i32 = arith.constant 0 : i32
    %c0_i32_0 = arith.constant 0 : i32
    %c0_i32_1 = arith.constant 0 : i32
    return %c0_i32, %c0_i32_0 : i32, i32
  }
  func.func @transform_8(%arg0: i32) -> (i32, i32) {
    %c0_i32 = arith.constant 0 : i32
    %c0_i32_0 = arith.constant 0 : i32
    %c0_i32_1 = arith.constant 0 : i32
    return %c0_i32, %c0_i32_0 : i32, i32
  }
  func.func @transform_9(%arg0: i32) -> (i32, i32) {
    %c0_i32 = arith.constant 0 : i32
    %c0_i32_0 = arith.constant 0 : i32
    return %arg0, %c0_i32 : i32, i32
  }
}

</mosaic_0001>

<bundles_post_ra>
// kernel: cnn_mnist_forward.1
= control target key start
LH: loop header
LB: loop body
LE: loop exit
PB: predicated region body
PF: predicated region fallthrough
CT: control target
= control target key end

     0   :  { %14 = vsyncpa [#allocation3], 0  ;;  %s12030_s0 = inlined_call_operand.vmem [shape: bf16[192,140], index: 0, kind: input, shape index: {}]   ;;  %s12031_s1 = inlined_call_operand.hbm [shape: bf16[140,768], index: 1, kind: input, shape index: {}]   ;;  %s12032_s2 = inlined_call_operand.hbm [shape: f32[1,768], index: 2, kind: input, shape index: {}]   ;;  %s12033_s3 = inlined_call_operand.hbm [shape: bf16[1920,512], index: 3, kind: input, shape index: {}]   ;;  %s12034_s4 = inlined_call_operand.hbm [shape: f32[1,512], index: 4, kind: input, shape index: {}]   ;;  %s12035_s5 = inlined_call_operand.hbm [shape: bf16[1024,512], index: 5, kind: input, shape index: {}]   ;;  %s12036_s6 = inlined_call_operand.hbm [shape: f32[1,512], index: 6, kind: input, shape index: {}]   ;;  %s12037_s7 = inlined_call_operand.hbm [shape: bf16[512,128], index: 7, kind: input, shape index: {}]   ;;  %s12038_s8 = inlined_call_operand.hbm [shape: f32[1,128], index: 8, kind: input, shape index: {}]   ;;  %s12039_s9 = inlined_call_operand.vmem [shape: f32[8,128], index: 9, kind: output, shape index: {}]  }
   0x1   :  { %15 = vsyncpa [#allocation5], 0 }
   0x2   :  { %16 = vsyncpa [#allocation8], 0 }
   0x3   :  { %17 = vsyncpa [#allocation11], 0 }
   0x4   :  { %18 = vsyncpa [#allocation14], 0  ;;  %s10227_s30 = smov [#allocation4]   ;;  %s10228_s11 = smov [#allocation7]  }
   0x5   :  { %s39_s10 = sshll.u32 %s10227_s30, 4  ;;  %s61_s12 = sshll.u32 %s10228_s11, 4  ;;  %s40_s10 = int_to_ptr.vmem [resolvable:$true] %s39_s10  ;;  %s62_s12 = int_to_ptr.vmem [resolvable:$true] %s61_s12 }
   0x6   :  { %s10065_s13 = scalar_lea.vmem %s40_s10, 96  ;;  %p10070_p1 = scmp.lt.s32.totalorder %s40_s10, %s40_s10 }
   0x7   :  { %p10066_p0 = scmp.ne.s32.totalorder %s40_s10, %s10065_s13  ;;  %p10071_p2 = scmp.lt.s32.totalorder %s10065_s13, %s10065_s13 }
   0x9   :  { %p10072_p3 = por %p10071_p2, %p10070_p1 }
   0xb   :  { %p10073_p4 = pnand %p10072_p3, %p10066_p0 }
   0xd   :  { %10076 = shalt.err (!%p10073_p4)
}
   0xe   :  { %42 = dma.hbm_to_vmem [thread:$0]  %s12032_s2, 96, %s40_s10, [#allocation5]  }
   0xf   :  { %s10085_s16 = scalar_lea.vmem %s62_s12, 64  ;;  %p10090_p6 = scmp.lt.s32.totalorder %s62_s12, %s62_s12 }
  0x10   :  { %p10086_p5 = scmp.ne.s32.totalorder %s62_s12, %s10085_s16  ;;  %p10091_p7 = scmp.lt.s32.totalorder %s10085_s16, %s10085_s16 }
  0x12   :  { %p10092_p8 = por %p10091_p7, %p10090_p6 }
  0x14   :  { %p10093_p9 = pnand %p10092_p8, %p10086_p5 }
  0x16   :  { %10096 = shalt.err (!%p10093_p9)
}
  0x17   :  { %64 = dma.hbm_to_vmem [thread:$0]  %s12034_s4, 64, %s62_s12, [#allocation8]  }
  0x18   :  { %s10229_s19 = smov [#allocation10]   ;;  %s10230_s21 = smov [#allocation2]  }
  0x19   :  { %s83_s20 = sshll.u32 %s10229_s19, 4  ;;  %s26_s22 = sshll.u32 %s10230_s21, 4  ;;  %s84_s20 = int_to_ptr.vmem [resolvable:$true] %s83_s20  ;;  %s27_s22 = int_to_ptr.vmem [resolvable:$true] %s26_s22 }
  0x1a   :  { %s10105_s23 = scalar_lea.vmem %s84_s20, 64  ;;  %p10110_p11 = scmp.lt.s32.totalorder %s84_s20, %s84_s20 }
  0x1b   :  { %p10106_p10 = scmp.ne.s32.totalorder %s84_s20, %s10105_s23  ;;  %p10111_p12 = scmp.lt.s32.totalorder %s10105_s23, %s10105_s23 }
  0x1d   :  { %p10112_p13 = por %p10111_p12, %p10110_p11 }
  0x1f   :  { %p10113_p0 = pnand %p10112_p13, %p10106_p10 }
  0x21   :  { %10116 = shalt.err (!%p10113_p0)
}
  0x22   :  { %86 = dma.hbm_to_vmem [thread:$0]  %s12036_s6, 64, %s84_s20, [#allocation11]  }
  0x23   :  { %s10125_s25 = scalar_lea.vmem %s27_s22, 6912  ;;  %p10130_p2 = scmp.lt.s32.totalorder %s27_s22, %s27_s22 }
  0x24   :  { %p10126_p1 = scmp.ne.s32.totalorder %s27_s22, %s10125_s25  ;;  %p10131_p3 = scmp.lt.s32.totalorder %s10125_s25, %s10125_s25 }
  0x26   :  { %p10132_p4 = por %p10131_p3, %p10130_p2 }
  0x28   :  { %p10133_p5 = pnand %p10132_p4, %p10126_p1 }
  0x2a   :  { %10136 = shalt.err (!%p10133_p5)
}
  0x2b   :  { %s10231_s4 = smov 384   ;;  %s10232_s26 = smov 24  }
  0x2c   :  { %32 = dma.hbm_to_vmem [thread:$0]  %s12031_s1, 6912, %s27_s22, [#allocation3], %s10231_s4, %s10231_s4, %s10232_s26  }
  0x2d   :  { %s10233_s29 = smov [#allocation6]  }
  0x2e   :  { %s48_s30 = sshll.u32 %s10233_s29, 4  ;;  %s49_s30 = int_to_ptr.vmem [resolvable:$true] %s48_s30 }
  0x2f   :  { %s10145_s10 = scalar_lea.vmem %s49_s30, 61440  ;;  %p10150_p7 = scmp.lt.s32.totalorder %s49_s30, %s49_s30 }
  0x30   :  { %p10146_p6 = scmp.ne.s32.totalorder %s49_s30, %s10145_s10  ;;  %p10151_p8 = scmp.lt.s32.totalorder %s10145_s10, %s10145_s10 }
  0x32   :  { %p10152_p9 = por %p10151_p8, %p10150_p7 }
  0x34   :  { %p10153_p10 = pnand %p10152_p9, %p10146_p6 }
  0x36   :  { %10156 = shalt.err (!%p10153_p10)
}
  0x37   :  { %s10234_s6 = smov 256   ;;  %s10235_s11 = smov 16  }
  0x38   :  { %54 = dma.hbm_to_vmem [thread:$0]  %s12033_s3, 61440, %s49_s30, [#allocation5], %s10234_s6, %s10234_s6, %s10235_s11  }
  0x39   :  { %s10236_s14 = smov [#allocation9]   ;;  %s10237_s1 = smov [#allocation12]  }
  0x3a   :  { %s70_s15 = sshll.u32 %s10236_s14, 4  ;;  %s92_s16 = sshll.u32 %s10237_s1, 4  ;;  %s71_s15 = int_to_ptr.vmem [resolvable:$true] %s70_s15  ;;  %s93_s16 = int_to_ptr.vmem [resolvable:$true] %s92_s16 }
  0x3b   :  { %s10165_s17 = scalar_lea.vmem %s71_s15, 32768  ;;  %p10170_p12 = scmp.lt.s32.totalorder %s71_s15, %s71_s15 }
  0x3c   :  { %p10166_p11 = scmp.ne.s32.totalorder %s71_s15, %s10165_s17  ;;  %p10171_p13 = scmp.lt.s32.totalorder %s10165_s17, %s10165_s17 }
  0x3e   :  { %p10172_p0 = por %p10171_p13, %p10170_p12 }
  0x40   :  { %p10173_p1 = pnand %p10172_p0, %p10166_p11 }
  0x42   :  { %10176 = shalt.err (!%p10173_p1)
}
  0x43   :  { %76 = dma.hbm_to_vmem [thread:$0]  %s12035_s5, 32768, %s71_s15, [#allocation8], %s10234_s6, %s10234_s6, %s10235_s11  }
  0x44   :  { %s10185_s20 = scalar_lea.vmem %s93_s16, 4096  ;;  %p10190_p3 = scmp.lt.s32.totalorder %s93_s16, %s93_s16 }
  0x45   :  { %p10186_p2 = scmp.ne.s32.totalorder %s93_s16, %s10185_s20  ;;  %p10191_p4 = scmp.lt.s32.totalorder %s10185_s20, %s10185_s20 }
  0x47   :  { %p10192_p5 = por %p10191_p4, %p10190_p3 }
  0x49   :  { %p10193_p6 = pnand %p10192_p5, %p10186_p2 }
  0x4b   :  { %10196 = shalt.err (!%p10193_p6)
}
  0x4c   :  { %s10238_s3 = smov 64   ;;  %s10239_s21 = smov 4  }
  0x4d   :  { %98 = dma.hbm_to_vmem [thread:$0]  %s12037_s7, 4096, %s93_s16, [#allocation11], %s10238_s3, %s10238_s3, %s10239_s21  }
  0x4e   :  { %s10240_s2 = smov [#allocation13]  }
  0x4f   :  { %s105_s24 = sshll.u32 %s10240_s2, 4  ;;  %s106_s24 = int_to_ptr.vmem [resolvable:$true] %s105_s24 }
  0x50   :  { %s10205_s25 = scalar_lea.vmem %s106_s24, 16  ;;  %s10209_s5 = scalar_lea.vmem %s106_s24, 32 }
  0x51   :  { %p10206_p7 = scmp.ne.s32.totalorder %s106_s24, %s10205_s25  ;;  %p10210_p8 = scmp.lt.s32.totalorder %s106_s24, %s106_s24 }
  0x52   :  { %p10211_p9 = scmp.lt.s32.totalorder %s10209_s5, %s10205_s25 }
  0x54   :  { %p10212_p10 = por %p10211_p9, %p10210_p8 }
  0x56   :  { %p10213_p11 = pnand %p10212_p10, %p10206_p7 }
  0x58   :  { %10216 = shalt.err (!%p10213_p11)
}
  0x59   :  { %108 = dma.hbm_to_vmem [thread:$0]  %s12038_s8, 16, %s106_s24, [#allocation14]  }
  0x5a   :  { %10217 = dma.done.wait [#allocation3], 6912  }
  0x5b   :  { %10218 = vsyncadd [#allocation3], 4294960384 }
  0x5c   :  { %10219 = dma.done.wait [#allocation5], 61536  }
  0x5d   :  { %10220 = vsyncadd [#allocation5], 4294905760 }
  0x5e   :  { %10221 = dma.done.wait [#allocation8], 32832  }
  0x5f   :  { %10222 = vsyncadd [#allocation8], 4294934464 }
  0x60   :  { %10223 = dma.done.wait [#allocation11], 4160  }
  0x61   :  { %10224 = vsyncadd [#allocation11], 4294963136 }
  0x62   :  { %10225 = dma.done.wait [#allocation14], 16  }
  0x63   :  { %10226 = vsyncadd [#allocation14], 4294967280  ;;  %v8798_v0 = vld [vmem:[#allocation2 + $0x154] ss:$24 sps:$4 sm:$0xff]   ;;  %v8802_v2 = vld [vmem:[#allocation2 + $0x150] ss:$24 sps:$4 sm:$0xff]  }
  0x64   :  { %v8800_v1 = vld [vmem:[#allocation2 + $0x15c] ss:$24 sps:$4 sm:$0xff]   ;;  %672 = vmatprep.subr.bf16.mxu0 %v8798_v0  ;;  %v8803_v3 = vld [vmem:[#allocation2 + $0x158] ss:$24 sps:$4 sm:$0xff]   ;;  %v8806_v5 = vld [vmem:[#allocation2 + $0x12c] ss:$24 sps:$4 sm:$0xff]  }
  0x65   :  { %825 = vmatprep.subr.bf16.mxu1 %v8800_v1  ;;  %v8804_v4 = vld [vmem:[#allocation2 + $0x124] ss:$24 sps:$4 sm:$0xff]   ;;  %673 = vmatpush1.bf16.msra.mxu0 %v8802_v2  ;;  %v8808_v6 = vld [vmem:[#allocation2 + $0x120] ss:$24 sps:$4 sm:$0xff]   ;;  %v8810_v8 = vld [vmem:[#allocation2 + $0xf4] ss:$24 sps:$4 sm:$0xff]  }
  0x66   :  { %826 = vmatpush1.bf16.msra.mxu1 %v8803_v3  ;;  %674 = vmatprep.subr.bf16.mxu0 %v8804_v4  ;;  %v8809_v7 = vld [vmem:[#allocation2 + $0x128] ss:$24 sps:$4 sm:$0xff]   ;;  %v8812_v9 = vld [vmem:[#allocation2 + $0xfc] ss:$24 sps:$4 sm:$0xff]   ;;  %v8815_v11 = vld [vmem:[#allocation2 + $0xf8] ss:$24 sps:$4 sm:$0xff]  }
  0x67   :  { %827 = vmatprep.subr.bf16.mxu1 %v8806_v5  ;;  %v8814_v10 = vld [vmem:[#allocation2 + $0xf0] ss:$24 sps:$4 sm:$0xff]   ;;  %v8816_v12 = vld [vmem:[#allocation2 + $0xc4] ss:$24 sps:$4 sm:$0xff]   ;;  %v8820_v14 = vld [vmem:[#allocation2 + $0xc0] ss:$24 sps:$4 sm:$0xff]  }
  0x68   :  { %v8818_v13 = vld [vmem:[#allocation2 + $0xcc] ss:$24 sps:$4 sm:$0xff]   ;;  %v8821_v15 = vld [vmem:[#allocation2 + $0xc8] ss:$24 sps:$4 sm:$0xff]   ;;  %v8824_v17 = vld [vmem:[#allocation2 + $0x9c] ss:$24 sps:$4 sm:$0xff]  }
  0x69   :  { %675 = vmatpush1.bf16.msra.mxu0 %v8808_v6  ;;  %v8822_v16 = vld [vmem:[#allocation2 + $0x94] ss:$24 sps:$4 sm:$0xff]   ;;  %v8826_v18 = vld [vmem:[#allocation2 + $0x90] ss:$24 sps:$4 sm:$0xff]   ;;  %v8828_v20 = vld [vmem:[#allocation2 + $0x64] ss:$24 sps:$4 sm:$0xff]  }
  0x6a   :  { %828 = vmatpush1.bf16.msra.mxu1 %v8809_v7  ;;  %676 = vmatprep.subr.bf16.mxu0 %v8810_v8  ;;  %v8827_v19 = vld [vmem:[#allocation2 + $0x98] ss:$24 sps:$4 sm:$0xff]   ;;  %v8830_v21 = vld [vmem:[#allocation2 + $0x6c] ss:$24 sps:$4 sm:$0xff]   ;;  %v8833_v23 = vld [vmem:[#allocation2 + $0x68] ss:$24 sps:$4 sm:$0xff]  }
  0x6b   :  { %829 = vmatprep.subr.bf16.mxu1 %v8812_v9  ;;  %v8832_v22 = vld [vmem:[#allocation2 + $0x60] ss:$24 sps:$4 sm:$0xff]   ;;  %v8834_v24 = vld [vmem:[#allocation2 + $0x34] ss:$24 sps:$4 sm:$0xff]   ;;  %v8838_v26 = vld [vmem:[#allocation2 + $0x30] ss:$24 sps:$4 sm:$0xff]  }
  0x6c   :  { %v8836_v25 = vld [vmem:[#allocation2 + $0x3c] ss:$24 sps:$4 sm:$0xff]   ;;  %v8839_v27 = vld [vmem:[#allocation2 + $0x38] ss:$24 sps:$4 sm:$0xff]   ;;  %vm616_vm0 = vcmask 97280   ;;  %vm653_vm1 = vcmask 1045504  }
  0x6d   :  { %677 = vmatpush1.bf16.msra.mxu0 %v8814_v10  ;;  %v8840_v28 = vld [vmem:[#allocation2 + $0x4] ss:$24 sps:$4 sm:$0xff]   ;;  %v8844_v31 = vld [vmem:[#allocation2] ss:$24 sps:$4 sm:$0xff]   ;;  %v8863_v43 = vld [vmem:[#allocation2 + $0x134] ss:$24 sps:$4 sm:$0xff]  }
  0x6e   :  { %830 = vmatpush1.bf16.msra.mxu1 %v8815_v11  ;;  %678 = vmatprep.subr.bf16.mxu0 %v8816_v12  ;;  %v8842_v29 = vld [vmem:[#allocation2 + $0xc] ss:$24 sps:$4 sm:$0xff]   ;;  %v8845_v32 = vld [vmem:[#allocation2 + $0x8] ss:$24 sps:$4 sm:$0xff]   ;;  %v10337_v42 = vld [vmem:[%s12030_s0 + $0x14] ss:$8 sps:$4 sm:$0xff]  }
  0x6f   :  { %831 = vmatprep.subr.bf16.mxu1 %v8818_v13  ;;  %v10319_v30 = vld [vmem:[%s12030_s0 + $0x4] ss:$8 sps:$4 sm:$0xff]   ;;  %v8850_v35 = vld [vmem:[#allocation2 + $0x180] ss:$24 sps:$4 sm:$0x3f]   ;;  %vm1410_vm2 = vcmask 1043456  }
  0x70   :  { %v8846_v33 = vld [vmem:[#allocation2 + $0x184] ss:$24 sps:$4 sm:$0x3f]   ;;  %7932 = vmatprep.mubr.msk.bf16.mxu0 %vm616_vm0, %v10319_v30  ;;  %7945 = vmatprep.mubr.msk.bf16.mxu1 %vm616_vm0, %v10319_v30  ;;  %v8851_v36 = vld [vmem:[#allocation2 + $0x188] ss:$24 sps:$4 sm:$0x3f]  }
  0x71   :  { %679 = vmatpush1.bf16.msra.mxu0 %v8820_v14  ;;  %v8848_v34 = vld [vmem:[#allocation2 + $0x18c] ss:$24 sps:$4 sm:$0x3f]   ;;  %v655_v37 = vsel %vm653_vm1, %v8850_v35, 0  ;;  %v661_v38 = vsel %vm653_vm1, %v8851_v36, 0 }
  0x72   :  { %832 = vmatpush1.bf16.msra.mxu1 %v8821_v15  ;;  %680 = vmatprep.subr.bf16.mxu0 %v8822_v16  ;;  %v8857_v39 = vld [vmem:[#allocation2 + $0x164] ss:$24 sps:$4 sm:$0xff]   ;;  %v10332_v40 = vld [vmem:[%s12030_s0] ss:$8 sps:$4 sm:$0xff]   ;;  %v10348_v46 = vld [vmem:[%s12030_s0 + $0x10] ss:$8 sps:$4 sm:$0xff]  }
  0x73   :  { %833 = vmatprep.subr.bf16.mxu1 %v8824_v17  ;;  %v8855_v41 = vld [vmem:[#allocation2 + $0x160] ss:$24 sps:$4 sm:$0xff]   ;;  %v8861_v44 = vld [vmem:[#allocation2 + $0x130] ss:$24 sps:$4 sm:$0xff]   ;;  %v8869_v45 = vld [vmem:[#allocation2 + $0x104] ss:$24 sps:$4 sm:$0xff]  }
  0x74   :  { %v10353_v47 = vld [vmem:[%s12030_s0 + $0x24] ss:$8 sps:$4 sm:$0xff]   ;;  %v8867_v48 = vld [vmem:[#allocation2 + $0x100] ss:$24 sps:$4 sm:$0xff]   ;;  %v8876_v51 = vld [vmem:[#allocation2 + $0xd0] ss:$24 sps:$4 sm:$0xff]  }
  0x75   :  { %681 = vmatpush1.bf16.msra.mxu0 %v8826_v18  ;;  %v8878_v49 = vld [vmem:[#allocation2 + $0xd4] ss:$24 sps:$4 sm:$0xff]   ;;  %v10364_v50 = vld [vmem:[%s12030_s0 + $0x20] ss:$8 sps:$4 sm:$0xff]   ;;  %v8884_v52 = vld [vmem:[#allocation2 + $0xa4] ss:$24 sps:$4 sm:$0xff]  }
  0x76   :  { %834 = vmatpush1.bf16.msra.mxu1 %v8827_v19  ;;  %682 = vmatprep.subr.bf16.mxu0 %v8828_v20  ;;  %v10369_v53 = vld [vmem:[%s12030_s0 + $0x34] ss:$8 sps:$4 sm:$0xff]   ;;  %v8882_v54 = vld [vmem:[#allocation2 + $0xa0] ss:$24 sps:$4 sm:$0xff]   ;;  %v8888_v56 = vld [vmem:[#allocation2 + $0x70] ss:$24 sps:$4 sm:$0xff]  }
  0x77   :  { %835 = vmatprep.subr.bf16.mxu1 %v8830_v21  ;;  %v8890_v55 = vld [vmem:[#allocation2 + $0x74] ss:$24 sps:$4 sm:$0xff]   ;;  %v8899_v57 = vld [vmem:[#allocation2 + $0x44] ss:$24 sps:$4 sm:$0xff]   ;;  %v10380_v58 = vld [vmem:[%s12030_s0 + $0x30] ss:$8 sps:$4 sm:$0xff]  }
  0x78   :  { %v10385_v59 = vld [vmem:[%s12030_s0 + $0x44] ss:$8 sps:$4 sm:$0xff]   ;;  %v8897_v60 = vld [vmem:[#allocation2 + $0x40] ss:$24 sps:$4 sm:$0xff]   ;;  %v8903_v62 = vld [vmem:[#allocation2 + $0x10] ss:$24 sps:$4 sm:$0xff]  }
  0x79   :  { %683 = vmatpush1.bf16.msra.mxu0 %v8832_v22  ;;  %v8905_v61 = vld [vmem:[#allocation2 + $0x14] ss:$24 sps:$4 sm:$0xff]   ;;  %v8913_v0 = vld [vmem:[#allocation2 + $0x190] ss:$24 sps:$4 sm:$0x3f]  }
  0x7a   :  { %836 = vmatpush1.bf16.msra.mxu1 %v8833_v23  ;;  %684 = vmatprep.subr.bf16.mxu0 %v8834_v24  ;;  %v8909_v63 = vld [vmem:[#allocation2 + $0x194] ss:$24 sps:$4 sm:$0x3f]   ;;  %v8875_v1 = vld [vmem:[%s12030_s0 + $0x40] ss:$8 sps:$4 sm:$0xff]   ;;  %v667_v3 = vsel %vm653_vm1, %v8913_v0, 0 }
  0x7b   :  { %837 = vmatprep.subr.bf16.mxu1 %v8836_v25  ;;  %v8879_v2 = vld [vmem:[%s12030_s0 + $0x54] ss:$8 sps:$4 sm:$0xff]   ;;  %v8881_v4 = vld [vmem:[%s12030_s0 + $0x50] ss:$8 sps:$4 sm:$0xff]   ;;  %v8885_v5 = vld [vmem:[%s12030_s0 + $0x64] ss:$8 sps:$4 sm:$0xff]  }
  0x7c   :  { %v8887_v6 = vld [vmem:[%s12030_s0 + $0x60] ss:$8 sps:$4 sm:$0xff]   ;;  %v8891_v7 = vld [vmem:[%s12030_s0 + $0x74] ss:$8 sps:$4 sm:$0xff]   ;;  %v8893_v8 = vld [vmem:[%s12030_s0 + $0x70] ss:$8 sps:$4 sm:$0xff]  }
  0x7d   :  { %685 = vmatpush1.bf16.msra.mxu0 %v8838_v26  ;;  %v8894_v9 = vld [vmem:[%s12030_s0 + $0x84] ss:$8 sps:$4 sm:$0xff]   ;;  %v8896_v10 = vld [vmem:[%s12030_s0 + $0x80] ss:$8 sps:$4 sm:$0xff]   ;;  %v8900_v11 = vld [vmem:[%s12030_s0 + $0x94] ss:$8 sps:$4 sm:$0xff]  }
  0x7e   :  { %838 = vmatpush1.bf16.msra.mxu1 %v8839_v27  ;;  %686 = vmatprep.subr.bf16.mxu0 %v8840_v28  ;;  %v8902_v12 = vld [vmem:[%s12030_s0 + $0x90] ss:$8 sps:$4 sm:$0xff]   ;;  %v8906_v13 = vld [vmem:[%s12030_s0 + $0xa4] ss:$8 sps:$4 sm:$0xff]   ;;  %v8908_v14 = vld [vmem:[%s12030_s0 + $0xa0] ss:$8 sps:$4 sm:$0xff]  }
  0x7f   :  { %839 = vmatprep.subr.bf16.mxu1 %v8842_v29  ;;  %v8911_v15 = vld [vmem:[%s12030_s0 + $0xb4] ss:$8 sps:$4 sm:$0xff]   ;;  %v8914_v16 = vld [vmem:[%s12030_s0 + $0xb0] ss:$8 sps:$4 sm:$0xff]  }
  0x80   :  { %v8915_v17 = vld [vmem:[#allocation6 + $0xe0] ss:$16 sps:$4 sm:$0xff]   ;;  %v8917_v18 = vld [vmem:[#allocation6 + $0xe4] ss:$16 sps:$4 sm:$0xff]  }
  0x81   :  { %687 = vmatpush1.bf16.msra.mxu0 %v8844_v31  ;;  %v8918_v19 = vld [vmem:[#allocation6 + $0xc0] ss:$16 sps:$4 sm:$0xff]   ;;  %v8920_v20 = vld [vmem:[#allocation6 + $0xc4] ss:$16 sps:$4 sm:$0xff]  }
  0x82   :  { %840 = vmatpush1.bf16.msra.mxu1 %v8845_v32  ;;  %7931 = vmatprep.subr.msk.bf16.mxu0 %vm653_vm1, %v8846_v33  ;;  %v8921_v21 = vld [vmem:[#allocation6 + $0xa0] ss:$16 sps:$4 sm:$0xff]   ;;  %v8923_v22 = vld [vmem:[#allocation6 + $0xa4] ss:$16 sps:$4 sm:$0xff]  }
  0x83   :  { %7944 = vmatprep.subr.msk.bf16.mxu1 %vm653_vm1, %v8848_v34  ;;  %v8924_v23 = vld [vmem:[#allocation6 + $0x80] ss:$16 sps:$4 sm:$0xff]   ;;  %v8926_v24 = vld [vmem:[#allocation6 + $0x84] ss:$16 sps:$4 sm:$0xff]  }
  0x84   :  { %v8927_v25 = vld [vmem:[#allocation6 + $0x60] ss:$16 sps:$4 sm:$0xff]   ;;  %v8929_v26 = vld [vmem:[#allocation6 + $0x64] ss:$16 sps:$4 sm:$0xff]  }
  0x85   :  { %703 = vmatpush2.bf16.msra.mxu0 %v655_v37  ;;  %v8930_v27 = vld [vmem:[#allocation6 + $0x40] ss:$16 sps:$4 sm:$0xff]   ;;  %v8932_v28 = vld [vmem:[#allocation6 + $0x44] ss:$16 sps:$4 sm:$0xff]  }
  0x86   :  { %856 = vmatpush2.bf16.msra.mxu1 %v661_v38  ;;  %978 = vmatprep.subr.bf16.mxu0 %v8857_v39  ;;  %v8933_v29 = vld [vmem:[#allocation6 + $0x20] ss:$16 sps:$4 sm:$0xff]   ;;  %v8938_v32 = vld [vmem:[#allocation6 + $0x4] ss:$16 sps:$4 sm:$0xff]  }
  0x87   :  { %4364 = vmatprep.subr.bf16.mxu1 %v8917_v18  ;;  %v8936_v31 = vld [vmem:[#allocation6] ss:$16 sps:$4 sm:$0xff]   ;;  %v8941_v34 = vld [vmem:[#allocation6 + $0x1e4] ss:$16 sps:$4 sm:$0xff]  }
  0x88   :  { %705 = vmatmul.mubr.bf16.vlgmr.msra.gmra.mxu0 %v10332_v40  ;;  %v8939_v33 = vld [vmem:[#allocation6 + $0x1e0] ss:$16 sps:$4 sm:$0xff]   ;;  %v8947_v35 = vld [vmem:[#allocation6 + $0x4e4] ss:$16 sps:$4 sm:$0xff]  }
  0x89   :  { %858 = vmatmul.mubr.bf16.vlgmr.msra.gmra.mxu1 %v10332_v40  ;;  %979 = vmatpush1.bf16.msra.mxu0 %v8855_v41  ;;  %v8945_v36 = vld [vmem:[#allocation6 + $0x4e0] ss:$16 sps:$4 sm:$0xff]   ;;  %v8944_v38 = vld [vmem:[#allocation6 + $0x1c4] ss:$16 sps:$4 sm:$0xff]  }
  0x8a   :  { %7933 = vmatprep.mubr.msk.bf16.mxu0 %vm616_vm0, %v10337_v42  ;;  %7946 = vmatprep.mubr.msk.bf16.mxu1 %vm616_vm0, %v10337_v42  ;;  %v8942_v37 = vld [vmem:[#allocation6 + $0x1c0] ss:$16 sps:$4 sm:$0xff]   ;;  %v8953_v39 = vld [vmem:[#allocation6 + $0x4c4] ss:$16 sps:$4 sm:$0xff]  }
  0x8b   :  { %980 = vmatprep.subr.bf16.mxu0 %v8863_v43  ;;  %4365 = vmatpush1.bf16.msra.mxu1 %v8915_v17  ;;  %v8956_v43 = vld [vmem:[#allocation6 + $0x4a4] ss:$16 sps:$4 sm:$0xff]   ;;  %v8975_v18 = vld [vmem:[#allocation6 + $0x420] ss:$16 sps:$4 sm:$0xff]  }
  0x8c   :  { %4366 = vmatprep.subr.bf16.mxu1 %v8920_v20 }
  0x8d   :  { %981 = vmatpush1.bf16.msra.mxu0 %v8861_v44  ;;  %v8948_v44 = vld [vmem:[#allocation6 + $0x1a0] ss:$16 sps:$4 sm:$0xff]  }
  0x8e   :  { %982 = vmatprep.subr.bf16.mxu0 %v8869_v45  ;;  %v8950_v45 = vld [vmem:[#allocation6 + $0x1a4] ss:$16 sps:$4 sm:$0xff]  }
  0x8f   :  { %4367 = vmatpush1.bf16.msra.mxu1 %v8918_v19 }
  0x90   :  { %715 = vmatmul.mubr.bf16.gmra.mxu0 %v10348_v46  ;;  %4368 = vmatprep.subr.bf16.mxu1 %v8923_v22 }
  0x91   :  { %868 = vmatmul.mubr.bf16.gmra.mxu1 %v10348_v46  ;;  %7934 = vmatprep.mubr.msk.bf16.mxu0 %vm616_vm0, %v10353_v47 }
  0x92   :  { %7947 = vmatprep.mubr.msk.bf16.mxu1 %vm616_vm0, %v10353_v47  ;;  %983 = vmatpush1.bf16.msra.mxu0 %v8867_v48 }
  0x93   :  { %984 = vmatprep.subr.bf16.mxu0 %v8878_v49  ;;  %4369 = vmatpush1.bf16.msra.mxu1 %v8921_v21  ;;  %v214_v49 = vlaneseq  ;;  %v8974_v21 = vld [vmem:[#allocation6 + $0x144] ss:$16 sps:$4 sm:$0xff]  }
  0x94   :  { %4370 = vmatprep.subr.bf16.mxu1 %v8926_v24 }
  0x96   :  { %985 = vmatpush1.bf16.msra.mxu0 %v8876_v51 }
  0x97   :  { %986 = vmatprep.subr.bf16.mxu0 %v8884_v52  ;;  %4371 = vmatpush1.bf16.msra.mxu1 %v8924_v23  ;;  %v8962_v52 = vld [vmem:[#allocation6 + $0x484] ss:$16 sps:$4 sm:$0xff]   ;;  %v8972_v23 = vld [vmem:[#allocation6 + $0x140] ss:$16 sps:$4 sm:$0xff]  }
  0x98   :  { %725 = vmatmul.mubr.bf16.gmra.mxu0 %v10364_v50  ;;  %4372 = vmatprep.subr.bf16.mxu1 %v8929_v26  ;;  %v8983_v26 = vld [vmem:[#allocation6 + $0x404] ss:$16 sps:$4 sm:$0xff]  }
  0x99   :  { %878 = vmatmul.mubr.bf16.gmra.mxu1 %v10364_v50  ;;  %7935 = vmatprep.mubr.msk.bf16.mxu0 %vm616_vm0, %v10369_v53 }
  0x9a   :  { %7948 = vmatprep.mubr.msk.bf16.mxu1 %vm616_vm0, %v10369_v53  ;;  %987 = vmatpush1.bf16.msra.mxu0 %v8882_v54 }
  0x9b   :  { %988 = vmatprep.subr.bf16.mxu0 %v8890_v55  ;;  %4373 = vmatpush1.bf16.msra.mxu1 %v8927_v25 }
  0x9c   :  { %4374 = vmatprep.subr.bf16.mxu1 %v8932_v28 }
  0x9e   :  { %989 = vmatpush1.bf16.msra.mxu0 %v8888_v56  ;;  %v10491_v56 = vshrl.u32 %v214_v49, 7  ;;  %v8992_v49 = vld [vmem:[#allocation6 + $0x5c4] ss:$16 sps:$4 sm:$0xff]  }
  0x9f   :  { %990 = vmatprep.subr.bf16.mxu0 %v8899_v57  ;;  %4375 = vmatpush1.bf16.msra.mxu1 %v8930_v27  ;;  %v8957_v57 = vld [vmem:[#allocation6 + $0x180] ss:$16 sps:$4 sm:$0xff]  }
  0xa0   :  { %735 = vmatmul.mubr.bf16.gmra.mxu0 %v10380_v58 }
  0xa1   :  { %888 = vmatmul.mubr.bf16.gmra.mxu1 %v10380_v58  ;;  %7936 = vmatprep.mubr.msk.bf16.mxu0 %vm616_vm0, %v10385_v59 }
  0xa2   :  { %7949 = vmatprep.mubr.msk.bf16.mxu1 %vm616_vm0, %v10385_v59  ;;  %991 = vmatpush1.bf16.msra.mxu0 %v8897_v60 }
  0xa3   :  { %992 = vmatprep.subr.bf16.mxu0 %v8905_v61  ;;  %v8968_v61 = vld [vmem:[#allocation6 + $0x464] ss:$16 sps:$4 sm:$0xff]  }
  0xa6   :  { %993 = vmatpush1.bf16.msra.mxu0 %v8903_v62  ;;  %v8966_v62 = vld [vmem:[#allocation6 + $0x460] ss:$16 sps:$4 sm:$0xff]  }
  0xa7   :  { %7957 = vmatprep.subr.msk.bf16.mxu0 %vm653_vm1, %v8909_v63  ;;  %v10497_v63 = vld [vmem:[#allocation4] sm:$0x3f] }
  0xa8   :  { %745 = vmatmul.mubr.bf16.gmra.mxu0 %v8875_v1 }
  0xa9   :  { %898 = vmatmul.mubr.bf16.gmra.mxu1 %v8875_v1  ;;  %7937 = vmatprep.mubr.msk.bf16.mxu0 %vm616_vm0, %v8879_v2 }
  0xaa   :  { %7950 = vmatprep.mubr.msk.bf16.mxu1 %vm616_vm0, %v8879_v2  ;;  %1009 = vmatpush2.bf16.msra.mxu0 %v667_v3 }
  0xab   :  { %4510 = vmatprep.subr.bf16.mxu0 %v8947_v35 }
  0xb0   :  { %755 = vmatmul.mubr.bf16.gmra.mxu0 %v8881_v4 }
  0xb1   :  { %908 = vmatmul.mubr.bf16.gmra.mxu1 %v8881_v4  ;;  %7938 = vmatprep.mubr.msk.bf16.mxu0 %vm616_vm0, %v8885_v5 }
  0xb2   :  { %7951 = vmatprep.mubr.msk.bf16.mxu1 %vm616_vm0, %v8885_v5 }
  0xb8   :  { %765 = vmatmul.mubr.bf16.gmra.mxu0 %v8887_v6 }
  0xb9   :  { %918 = vmatmul.mubr.bf16.gmra.mxu1 %v8887_v6  ;;  %7939 = vmatprep.mubr.msk.bf16.mxu0 %vm616_vm0, %v8891_v7 }
  0xba   :  { %7952 = vmatprep.mubr.msk.bf16.mxu1 %vm616_vm0, %v8891_v7 }
  0xc0   :  { %775 = vmatmul.mubr.bf16.gmra.mxu0 %v8893_v8 }
  0xc1   :  { %928 = vmatmul.mubr.bf16.gmra.mxu1 %v8893_v8  ;;  %7940 = vmatprep.mubr.msk.bf16.mxu0 %vm616_vm0, %v8894_v9 }
  0xc2   :  { %7953 = vmatprep.mubr.msk.bf16.mxu1 %vm616_vm0, %v8894_v9 }
  0xc8   :  { %785 = vmatmul.mubr.bf16.gmra.mxu0 %v8896_v10 }
  0xc9   :  { %938 = vmatmul.mubr.bf16.gmra.mxu1 %v8896_v10  ;;  %7941 = vmatprep.mubr.msk.bf16.mxu0 %vm616_vm0, %v8900_v11 }
  0xca   :  { %7954 = vmatprep.mubr.msk.bf16.mxu1 %vm616_vm0, %v8900_v11 }
  0xd0   :  { %795 = vmatmul.mubr.bf16.gmra.mxu0 %v8902_v12 }
  0xd1   :  { %948 = vmatmul.mubr.bf16.gmra.mxu1 %v8902_v12  ;;  %7942 = vmatprep.mubr.msk.bf16.mxu0 %vm616_vm0, %v8906_v13 }
  0xd2   :  { %7955 = vmatprep.mubr.msk.bf16.mxu1 %vm616_vm0, %v8906_v13 }
  0xd8   :  { %805 = vmatmul.mubr.bf16.gmra.mxu0 %v8908_v14 }
  0xd9   :  { %958 = vmatmul.mubr.bf16.gmra.mxu1 %v8908_v14  ;;  %7943 = vmatprep.mubr.msk.bf16.mxu0 %vm616_vm0, %v8911_v15 }
  0xda   :  { %7956 = vmatprep.mubr.msk.bf16.mxu1 %vm616_vm0, %v8911_v15 }
  0xe0   :  { %815 = vmatmul.mubr.bf16.gmra.mxu0 %v8914_v16 }
  0xe1   :  { %968 = vmatmul.mubr.bf16.gmra.mxu1 %v8914_v16  ;;  %7958 = vmatprep.mubr.msk.bf16.mxu0 %vm616_vm0, %v10319_v30  ;;  %v8935_v30 = vld [vmem:[#allocation6 + $0x24] ss:$16 sps:$4 sm:$0xff]  }
  0xe2   :  { %4376 = vmatprep.subr.bf16.mxu1 %v8935_v30 }
  0xe3   :  { %4377 = vmatpush1.bf16.msra.mxu1 %v8933_v29  ;;  %v8981_v29 = vld [vmem:[#allocation6 + $0x400] ss:$16 sps:$4 sm:$0xff]  }
  0xe4   :  { %4378 = vmatprep.subr.bf16.mxu1 %v8938_v32  ;;  %v8980_v32 = vld [vmem:[#allocation6 + $0x124] ss:$16 sps:$4 sm:$0xff]  }
  0xe7   :  { %4379 = vmatpush1.bf16.msra.mxu1 %v8936_v31 }
  0xe8   :  { %1011 = vmatmul.mubr.bf16.vlgmr.msra.gmra.mxu0 %v10332_v40  ;;  %4380 = vmatprep.subr.bf16.mxu1 %v8941_v34  ;;  %v8951_v40 = vld [vmem:[#allocation6 + $0x4c0] ss:$16 sps:$4 sm:$0xff]  }
  0xe9   :  { %7959 = vmatprep.mubr.msk.bf16.mxu0 %vm616_vm0, %v10337_v42  ;;  %4511 = vmatpush1.bf16.msra.mxu0 %v8945_v36  ;;  %v8978_v34 = vld [vmem:[#allocation6 + $0x120] ss:$16 sps:$4 sm:$0xff]  }
  0xea   :  { %4512 = vmatprep.subr.bf16.mxu0 %v8953_v39 }
  0xeb   :  { %4381 = vmatpush2.bf16.msra.mxu1 %v8939_v33 }
  0xec   :  { %4382 = vmatprep.subr.bf16.mxu1 %v8944_v38  ;;  %v8984_v38 = vld [vmem:[#allocation6 + $0x5e0] ss:$16 sps:$4 sm:$0xff]  }
  0xed   :  { %4513 = vmatpush1.bf16.msra.mxu0 %v8951_v40 }
  0xee   :  { %4514 = vmatprep.subr.bf16.mxu0 %v8956_v43  ;;  %v8989_v43 = vld [vmem:[#allocation6 + $0x104] ss:$16 sps:$4 sm:$0xff]  }
  0xef   :  { %4383 = vmatpush2.bf16.msra.mxu1 %v8942_v37  ;;  %v8986_v37 = vld [vmem:[#allocation6 + $0x5e4] ss:$16 sps:$4 sm:$0xff]  }
  0xf0   :  { %1021 = vmatmul.mubr.bf16.gmra.mxu0 %v10348_v46  ;;  %v8954_v46 = vld [vmem:[#allocation6 + $0x4a0] ss:$16 sps:$4 sm:$0xff]   ;;  %4384 = vmatprep.subr.bf16.mxu1 %v8950_v45 }
  0xf1   :  { %7960 = vmatprep.mubr.msk.bf16.mxu0 %vm616_vm0, %v10353_v47  ;;  %4515 = vmatpush1.bf16.msra.mxu0 %v8954_v46 }
  0xf2   :  { %4516 = vmatprep.subr.bf16.mxu0 %v8962_v52  ;;  %v8990_v52 = vld [vmem:[#allocation6 + $0x5c0] ss:$16 sps:$4 sm:$0xff]  }
  0xf3   :  { %4385 = vmatpush2.bf16.msra.mxu1 %v8948_v44  ;;  %v8987_v44 = vld [vmem:[#allocation6 + $0x100] ss:$16 sps:$4 sm:$0xff]  }
  0xf8   :  { %1031 = vmatmul.mubr.bf16.gmra.mxu0 %v10364_v50 }
  0xf9   :  { %7961 = vmatprep.mubr.msk.bf16.mxu0 %vm616_vm0, %v10369_v53  ;;  %v8960_v53 = vld [vmem:[#allocation6 + $0x480] ss:$16 sps:$4 sm:$0xff]  }
  0xfa   :  { %4517 = vmatpush1.bf16.msra.mxu0 %v8960_v53 }
  0xfb   :  { %4518 = vmatprep.subr.bf16.mxu0 %v8968_v61 }
  0xfe   :  { %4519 = vmatpush1.bf16.msra.mxu0 %v8966_v62 }
 0x100   :  { %1041 = vmatmul.mubr.bf16.gmra.mxu0 %v10380_v58  ;;  %v8959_v58 = vld [vmem:[#allocation6 + $0x184] ss:$16 sps:$4 sm:$0xff]  }
 0x101   :  { %7962 = vmatprep.mubr.msk.bf16.mxu0 %vm616_vm0, %v10385_v59  ;;  %4386 = vmatprep.subr.bf16.mxu1 %v8959_v58  ;;  %v8995_v58 = vld [vmem:[#allocation6 + $0x2e4] ss:$16 sps:$4 sm:$0xff]  }
 0x102   :  { %4387 = vmatpush2.bf16.msra.mxu1 %v8957_v57 }
 0x108   :  { %1051 = vmatmul.mubr.bf16.gmra.mxu0 %v8875_v1 }
 0x109   :  { %7963 = vmatprep.mubr.msk.bf16.mxu0 %vm616_vm0, %v8879_v2  ;;  %v10504_v2 = vsub.s32 0, %v10491_v56 }
 0x10b   :  { %12074 = vst [vmem:[#allocation20_spill] sm:$0xff] %v10504_v2 }
 0x110   :  { %1061 = vmatmul.mubr.bf16.gmra.mxu0 %v8881_v4 }
 0x111   :  { %7964 = vmatprep.mubr.msk.bf16.mxu0 %vm616_vm0, %v8885_v5  ;;  %v8971_v5 = vld [vmem:[#allocation6 + $0x444] ss:$16 sps:$4 sm:$0xff]  }
 0x112   :  { %4520 = vmatprep.subr.bf16.mxu0 %v8971_v5  ;;  %v8998_v5 = vld [vmem:[#allocation6 + $0x5a4] ss:$16 sps:$4 sm:$0xff]  }
 0x118   :  { %1071 = vmatmul.mubr.bf16.gmra.mxu0 %v8887_v6  ;;  %v10511_v6 = vsub.s32 3, %v10491_v56 }
 0x119   :  { %7965 = vmatprep.mubr.msk.bf16.mxu0 %vm616_vm0, %v8891_v7  ;;  %v8963_v7 = vld [vmem:[#allocation6 + $0x160] ss:$16 sps:$4 sm:$0xff]  }
 0x11a   :  { %12075 = vst [vmem:[#allocation21_spill] sm:$0xff] %v10511_v6 }
 0x120   :  { %1081 = vmatmul.mubr.bf16.gmra.mxu0 %v8893_v8  ;;  %v8965_v8 = vld [vmem:[#allocation6 + $0x164] ss:$16 sps:$4 sm:$0xff]  }
 0x121   :  { %7966 = vmatprep.mubr.msk.bf16.mxu0 %vm616_vm0, %v8894_v9  ;;  %4388 = vmatprep.subr.bf16.mxu1 %v8965_v8 }
 0x122   :  { %4389 = vmatpush2.bf16.msra.mxu1 %v8963_v7 }
 0x123   :  { %4390 = vmatprep.subr.bf16.mxu1 %v8974_v21  ;;  %v9002_v21 = vld [vmem:[#allocation6 + $0x580] ss:$16 sps:$4 sm:$0xff]  }
 0x126   :  { %4391 = vmatpush2.bf16.msra.mxu1 %v8972_v23 }
 0x127   :  { %4392 = vmatprep.subr.bf16.mxu1 %v8980_v32  ;;  %v9008_v32 = vld [vmem:[#allocation6 + $0x560] ss:$16 sps:$4 sm:$0xff]  }
 0x128   :  { %1091 = vmatmul.mubr.bf16.gmra.mxu0 %v8896_v10 }
 0x129   :  { %7967 = vmatprep.mubr.msk.bf16.mxu0 %vm616_vm0, %v8900_v11  ;;  %v8969_v11 = vld [vmem:[#allocation6 + $0x440] ss:$16 sps:$4 sm:$0xff]  }
 0x12a   :  { %4521 = vmatpush1.bf16.msra.mxu0 %v8969_v11  ;;  %4393 = vmatpush2.bf16.msra.mxu1 %v8978_v34  ;;  %v8996_v11 = vld [vmem:[#allocation6 + $0x5a0] ss:$16 sps:$4 sm:$0xff]  }
 0x12b   :  { %4394 = vmatprep.subr.bf16.mxu1 %v8989_v43 }
 0x12e   :  { %4395 = vmatpush2.bf16.msra.mxu1 %v8987_v44 }
 0x12f   :  { %4437 = vmatprep.subr.bf16.mxu1 %v8995_v58 }
 0x130   :  { %1101 = vmatmul.mubr.bf16.gmra.mxu0 %v8902_v12  ;;  %v10519_v12 = vrot.slane %v10497_v63, %v10504_v2 }
 0x131   :  { %7968 = vmatprep.mubr.msk.bf16.mxu0 %vm616_vm0, %v8906_v13 }
 0x138   :  { %1111 = vmatmul.mubr.bf16.gmra.mxu0 %v8908_v14 }
 0x139   :  { %7969 = vmatprep.mubr.msk.bf16.mxu0 %vm616_vm0, %v8911_v15  ;;  %v8977_v15 = vld [vmem:[#allocation6 + $0x424] ss:$16 sps:$4 sm:$0xff]  }
 0x13a   :  { %4522 = vmatprep.subr.bf16.mxu0 %v8977_v15 }
 0x13b   :  { %4523 = vmatpush1.bf16.msra.mxu0 %v8975_v18 }
 0x13c   :  { %4524 = vmatprep.subr.bf16.mxu0 %v8983_v26 }
 0x13f   :  { %4525 = vmatpush1.bf16.msra.mxu0 %v8981_v29 }
 0x140   :  { %1121 = vmatmul.mubr.bf16.gmra.mxu0 %v8914_v16  ;;  %v10525_v16 = vrot.slane %v10497_v63, %v10511_v6  ;;  %4526 = vmatprep.subr.bf16.mxu0 %v8986_v37  ;;  %v9020_v6 = vld [vmem:[#allocation6 + $0x520] ss:$16 sps:$4 sm:$0xff]  }
 0x143   :  { %4527 = vmatpush2.bf16.msra.mxu0 %v8984_v38 }
 0x144   :  { %4528 = vmatprep.subr.bf16.mxu0 %v8992_v49  ;;  %v9016_v49 = vld [vmem:[#allocation6 + $0x544] ss:$16 sps:$4 sm:$0xff]  }
 0x147   :  { %4529 = vmatpush2.bf16.msra.mxu0 %v8990_v52 }
 0x148   :  { %v10475_v41 = vpop.f32.mrf.mxu0  ;;  %4530 = vmatprep.subr.bf16.mxu0 %v8998_v5  ;;  %v9014_v5 = vld [vmem:[#allocation6 + $0x540] ss:$16 sps:$4 sm:$0xff]  }
 0x149   :  { %v10477_v42 = vpop.f32.mrf.mxu1 }
 0x14a   :  { %v10479_v47 = vpop.f32.mrf.mxu0 }
 0x14b   :  { %v10481_v48 = vpop.f32.mrf.mxu1  ;;  %4531 = vmatpush2.bf16.msra.mxu0 %v8996_v11 }
 0x14c   :  { %v10483_v50 = vpop.f32.mrf.mxu0  ;;  %v862_v11 = vadd.f32 %v10481_v48, %v10525_v16 }
 0x14d   :  { %v10485_v51 = vpop.f32.mrf.mxu1 }
 0x14e   :  { %v10487_v54 = vpop.f32.mrf.mxu0  ;;  %v1134_v2 = vmax.f32 %v862_v11, 0.0 }
 0x14f   :  { %v10489_v55 = vpop.f32.mrf.mxu1 }
 0x150   :  { %v10493_v59 = vpop.f32.mrf.mxu0 }
 0x151   :  { %v10495_v60 = vpop.f32.mrf.mxu1 }
 0x152   :  { %v10499_v0 = vpop.f32.mrf.mxu0 }
 0x153   :  { %v10501_v1 = vpop.f32.mrf.mxu1 }
 0x154   :  { %v10506_v3 = vpop.f32.mrf.mxu0 }
 0x155   :  { %v10508_v4 = vpop.f32.mrf.mxu1 }
 0x156   :  { %v10513_v9 = vpop.f32.mrf.mxu0 }
 0x157   :  { %v10515_v10 = vpop.f32.mrf.mxu1 }
 0x158   :  { %v726_v13 = vpop.f32.mrf.mxu0 }
 0x159   :  { %v10521_v14 = vpop.f32.mrf.mxu1  ;;  %v727_v17 = vadd.f32 %v726_v13, %v10519_v12 }
 0x15a   :  { %v10528_v19 = vpop.f32.mrf.mxu0 }
 0x15b   :  { %v881_v20 = vpop.f32.mrf.mxu1  ;;  %v1155_v27 = vmax.f32 %v727_v17, 0.0  ;;  %v9004_v17 = vld [vmem:[#allocation6 + $0x584] ss:$16 sps:$4 sm:$0xff]  }
 0x15c   :  { %v882_v22 = vadd.f32 %v881_v20, %v10525_v16  ;;  %v10531_v24 = vpop.f32.mrf.mxu0  ;;  %4532 = vmatprep.subr.bf16.mxu0 %v9004_v17 }
 0x15d   :  { %v10533_v25 = vpop.f32.mrf.mxu1  ;;  %4533 = vmatpush2.bf16.msra.mxu0 %v9002_v21  ;;  %v707_v21 = vadd.f32 %v10475_v41, %v10519_v12 }
 0x15e   :  { %v1158_v28 = vmax.f32 %v882_v22, 0.0  ;;  %v10535_v30 = vpop.f32.mrf.mxu0 }
 0x15f   :  { %v10537_v31 = vpop.f32.mrf.mxu1 }
 0x160   :  { %v10539_v33 = vmax.f32 %v1155_v27, %v1158_v28  ;;  %v10541_v35 = vpop.f32.mrf.mxu0  ;;  %v9010_v27 = vld [vmem:[#allocation6 + $0x564] ss:$16 sps:$4 sm:$0xff]  }
 0x161   :  { %v10543_v36 = vpop.f32.mrf.mxu1  ;;  %4534 = vmatprep.subr.bf16.mxu0 %v9010_v27 }
 0x162   :  { %v10545_v39 = vpop.f32.mrf.mxu0  ;;  %4535 = vmatpush2.bf16.msra.mxu0 %v9008_v32 }
 0x163   :  { %v10547_v40 = vpop.f32.mrf.mxu1  ;;  %4536 = vmatprep.subr.bf16.mxu0 %v9016_v49 }
 0x164   :  { %v10549_v45 = vpop.f32.mrf.mxu0 }
 0x165   :  { %v10551_v46 = vpop.f32.mrf.mxu1 }
 0x166   :  { %v10553_v53 = vpop.f32.mrf.mxu0  ;;  %4537 = vmatpush2.bf16.msra.mxu0 %v9014_v5 }
 0x167   :  { %v10555_v57 = vpop.f32.mrf.mxu1 }
 0x168   :  { %v10557_v61 = vpop.f32.mrf.mxu0 }
 0x169   :  { %v10559_v62 = vpop.f32.mrf.mxu1 }
 0x16a   :  { %v10561_v7 = vpop.f32.mrf.mxu0 }
 0x16b   :  { %v10563_v8 = vpop.f32.mrf.mxu1 }
 0x16c   :  { %v10565_v13 = vpop.f32.mrf.mxu0 }
 0x16d   :  { %v10567_v15 = vpop.f32.mrf.mxu1 }
 0x16e   :  { %12076 = vst [vmem:[#allocation22_spill] sm:$0xff] %v10567_v15  ;;  %v10569_v18 = vpop.f32.mrf.mxu0 }
 0x16f   :  { %12077 = vst [vmem:[#allocation23_spill] sm:$0xff] %v10569_v18  ;;  %v10571_v20 = vpop.f32.mrf.mxu1  ;;  %v9034_v18 = vld [vmem:[#allocation6 + $0x8e4] ss:$16 sps:$4 sm:$0xff]  }
 0x170   :  { %v756_v22 = vpop.f32.mrf.mxu0 }
 0x171   :  { %v10573_v23 = vpop.f32.mrf.mxu1  ;;  %v757_v26 = vadd.f32 %v756_v22, %v10519_v12 }
 0x172   :  { %v10576_v28 = vpop.f32.mrf.mxu0 }
 0x173   :  { %v911_v29 = vpop.f32.mrf.mxu1  ;;  %v1191_v43 = vmax.f32 %v757_v26, 0.0 }
 0x174   :  { %v912_v34 = vadd.f32 %v911_v29, %v10525_v16  ;;  %v10579_v37 = vpop.f32.mrf.mxu0  ;;  %v9022_v29 = vld [vmem:[#allocation6 + $0x524] ss:$16 sps:$4 sm:$0xff]  }
 0x175   :  { %v10581_v38 = vpop.f32.mrf.mxu1  ;;  %4538 = vmatprep.subr.bf16.mxu0 %v9022_v29  ;;  %v9026_v29 = vld [vmem:[#allocation6 + $0x500] ss:$16 sps:$4 sm:$0xff]  }
 0x176   :  { %12078 = vst [vmem:[#allocation24_spill] sm:$0xff] %v10581_v38  ;;  %v1194_v44 = vmax.f32 %v912_v34, 0.0  ;;  %v10583_v52 = vpop.f32.mrf.mxu0  ;;  %4539 = vmatpush2.bf16.msra.mxu0 %v9020_v6 }
 0x177   :  { %12079 = vst [vmem:[#allocation25_spill] sm:$0xff] %v10583_v52  ;;  %v10585_v58 = vpop.f32.mrf.mxu1 }
 0x178   :  { %v10589_v17 = vmax.f32 %v1191_v43, %v1194_v44  ;;  %v766_v22 = vpop.f32.mrf.mxu0  ;;  %v1131_v43 = vmax.f32 %v707_v21, 0.0  ;;  %v866_v44 = vadd.f32 %v10489_v55, %v10525_v16  ;;  %v872_v55 = vadd.f32 %v10501_v1, %v10525_v16 }
 0x179   :  { %v10593_v27 = vpop.f32.mrf.mxu1  ;;  %v767_v26 = vadd.f32 %v766_v22, %v10519_v12  ;;  %v9028_v22 = vld [vmem:[#allocation6 + $0x504] ss:$16 sps:$4 sm:$0xff]  }
 0x17a   :  { %12080 = vst [vmem:[#allocation26_spill] sm:$0xff] %v10593_v27  ;;  %v10596_v32 = vpop.f32.mrf.mxu0  ;;  %v1275_v21 = vmax.f32 %v1131_v43, %v1134_v2  ;;  %4540 = vmatprep.subr.bf16.mxu0 %v9028_v22 }
 0x17b   :  { %12081 = vst [vmem:[#allocation27_spill] sm:$0xff] %v10596_v32  ;;  %v921_v34 = vpop.f32.mrf.mxu1  ;;  %v1203_v5 = vmax.f32 %v767_v26, 0.0  ;;  %v711_v32 = vadd.f32 %v10483_v50, %v10519_v12  ;;  %4541 = vmatpush2.bf16.msra.mxu0 %v9026_v29  ;;  %v717_v50 = vadd.f32 %v10493_v59, %v10519_v12 }
 0x17c   :  { %v922_v48 = vadd.f32 %v921_v34, %v10525_v16  ;;  %v770_v41 = vpop.f32.mrf.mxu0  ;;  %4656 = vmatprep.subr.bf16.mxu0 %v9034_v18 }
 0x17d   :  { %v10601_v49 = vpop.f32.mrf.mxu1  ;;  %v771_v27 = vadd.f32 %v770_v41, %v10519_v12  ;;  %v1137_v2 = vmax.f32 %v711_v32, 0.0 }
 0x17e   :  { %12082 = vst [vmem:[#allocation28_spill] sm:$0xff] %v10601_v49  ;;  %v1206_v38 = vmax.f32 %v922_v48, 0.0  ;;  %v10606_v11 = vpop.f32.mrf.mxu0  ;;  %v1140_v49 = vmax.f32 %v866_v44, 0.0  ;;  %v1146_v44 = vmax.f32 %v872_v55, 0.0 }
 0x17f   :  { %12083 = vst [vmem:[#allocation29_spill] sm:$0xff] %v10606_v11  ;;  %v925_v34 = vpop.f32.mrf.mxu1  ;;  %v1209_v43 = vmax.f32 %v771_v27, 0.0  ;;  %v721_v27 = vadd.f32 %v10506_v3, %v10519_v12 }
 0x180   :  { %v1311_v52 = vmax.f32 %v1203_v5, %v1206_v38  ;;  %v926_v6 = vadd.f32 %v925_v34, %v10525_v16  ;;  %v776_v26 = vpop.f32.mrf.mxu0  ;;  %v1278_v22 = vmax.f32 %v1137_v2, %v1140_v49  ;;  %v876_v34 = vadd.f32 %v10515_v10, %v10525_v16 }
 0x181   :  { %v10611_v48 = vpop.f32.mrf.mxu1  ;;  %v777_v11 = vadd.f32 %v776_v26, %v10519_v12  ;;  %v1149_v3 = vmax.f32 %v721_v27, 0.0  ;;  %v731_v27 = vadd.f32 %v10531_v24, %v10519_v12  ;;  %v737_v24 = vadd.f32 %v10541_v35, %v10519_v12 }
 0x182   :  { %v1347_v41 = vmax.f32 %v1275_v21, %v1311_v52  ;;  %v1212_v15 = vmax.f32 %v926_v6, 0.0  ;;  %v10616_v1 = vpop.f32.mrf.mxu0  ;;  %v1143_v21 = vmax.f32 %v717_v50, 0.0 }
 0x183   :  { %12084 = vst [vmem:[#allocation30_spill] sm:$0xff] %v10616_v1  ;;  %v931_v38 = vpop.f32.mrf.mxu1  ;;  %v1215_v26 = vmax.f32 %v777_v11, 0.0 }
 0x184   :  { %v932_v5 = vadd.f32 %v931_v38, %v10525_v16  ;;  %v1314_v29 = vmax.f32 %v1209_v43, %v1212_v15  ;;  %v780_v59 = vpop.f32.mrf.mxu0  ;;  %v1281_v49 = vmax.f32 %v1143_v21, %v1146_v44  ;;  %v1152_v38 = vmax.f32 %v876_v34, 0.0 }
 0x185   :  { %v10621_v52 = vpop.f32.mrf.mxu1  ;;  %v781_v55 = vadd.f32 %v780_v59, %v10519_v12 }
 0x186   :  { %v1218_v32 = vmax.f32 %v932_v5, 0.0  ;;  %v1350_v6 = vmax.f32 %v1278_v22, %v1314_v29  ;;  %v10626_v1 = vpop.f32.mrf.mxu0  ;;  %v1284_v21 = vmax.f32 %v1149_v3, %v1152_v38 }
 0x187   :  { %12085 = vst [vmem:[#allocation31_spill] sm:$0xff] %v10626_v1  ;;  %v935_v18 = vpop.f32.mrf.mxu1  ;;  %v1221_v22 = vmax.f32 %v781_v55, 0.0 }
 0x188   :  { %v1317_v2 = vmax.f32 %v1215_v26, %v1218_v32  ;;  %v10628_v10 = vpack.c.bf16 %v1350_v6, %v1347_v41  ;;  %v936_v15 = vadd.f32 %v935_v18, %v10525_v16  ;;  %v786_v43 = vpop.f32.mrf.mxu0  ;;  %v886_v41 = vadd.f32 %v10537_v31, %v10525_v16 }
 0x189   :  { %v10631_v50 = vpop.f32.mrf.mxu1  ;;  %v787_v5 = vadd.f32 %v786_v43, %v10519_v12 }
 0x18a   :  { %12086 = vst [vmem:[#allocation32_spill] sm:$0xff] %v10628_v10  ;;  %v1353_v11 = vmax.f32 %v1281_v49, %v1317_v2  ;;  %v1224_v29 = vmax.f32 %v936_v15, 0.0  ;;  %v10634_v59 = vpop.f32.mrf.mxu0  ;;  %v1164_v31 = vmax.f32 %v886_v41, 0.0 }
 0x18b   :  { %v941_v1 = vpop.f32.mrf.mxu1  ;;  %v1227_v6 = vmax.f32 %v787_v5, 0.0 }
 0x18c   :  { %v942_v44 = vadd.f32 %v941_v1, %v10525_v16  ;;  %v1320_v34 = vmax.f32 %v1221_v22, %v1224_v29  ;;  %v790_v26 = vpop.f32.mrf.mxu0  ;;  %v892_v1 = vadd.f32 %v10547_v40, %v10525_v16 }
 0x18d   :  { %v10639_v32 = vpop.f32.mrf.mxu1  ;;  %v791_v49 = vadd.f32 %v790_v26, %v10519_v12 }
 0x18e   :  { %v1230_v18 = vmax.f32 %v942_v44, 0.0  ;;  %v1356_v55 = vmax.f32 %v1284_v21, %v1320_v34  ;;  %v10644_v2 = vpop.f32.mrf.mxu0  ;;  %v1161_v21 = vmax.f32 %v731_v27, 0.0  ;;  %v741_v27 = vadd.f32 %v10549_v45, %v10519_v12 }
 0x18f   :  { %v945_v15 = vpop.f32.mrf.mxu1  ;;  %v1233_v34 = vmax.f32 %v791_v49, 0.0  ;;  %v747_v45 = vadd.f32 %v10557_v61, %v10519_v12 }
 0x190   :  { %v1323_v38 = vmax.f32 %v1227_v6, %v1230_v18  ;;  %v10648_v43 = vpack.c.bf16 %v1356_v55, %v1353_v11  ;;  %v946_v3 = vadd.f32 %v945_v15, %v10525_v16  ;;  %v796_v5 = vpop.f32.mrf.mxu0  ;;  %v1170_v11 = vmax.f32 %v892_v1, 0.0 }
 0x191   :  { %v10651_v22 = vpop.f32.mrf.mxu1  ;;  %v797_v44 = vadd.f32 %v796_v5, %v10519_v12  ;;  %v1290_v18 = vmax.f32 %v1161_v21, %v1164_v31  ;;  %v896_v55 = vadd.f32 %v10555_v57, %v10525_v16  ;;  %v902_v57 = vadd.f32 %v10563_v8, %v10525_v16 }
 0x192   :  { %12087 = vst [vmem:[#allocation33_spill] sm:$0xff] %v10648_v43  ;;  %v1359_v29 = vmax.f32 %v10539_v33, %v1323_v38  ;;  %v1236_v26 = vmax.f32 %v946_v3, 0.0  ;;  %v10657_v40 = vpop.f32.mrf.mxu0  ;;  %v1167_v33 = vmax.f32 %v737_v24, 0.0  ;;  %v1179_v61 = vmax.f32 %v747_v45, 0.0 }
 0x193   :  { %v951_v41 = vpop.f32.mrf.mxu1  ;;  %v1239_v38 = vmax.f32 %v797_v44, 0.0 }
 0x194   :  { %v952_v6 = vadd.f32 %v951_v41, %v10525_v16  ;;  %v1326_v15 = vmax.f32 %v1233_v34, %v1236_v26  ;;  %v800_v43 = vpop.f32.mrf.mxu0  ;;  %v1293_v31 = vmax.f32 %v1167_v33, %v1170_v11  ;;  %v1176_v34 = vmax.f32 %v896_v55, 0.0 }
 0x195   :  { %v10662_v35 = vpop.f32.mrf.mxu1  ;;  %v801_v3 = vadd.f32 %v800_v43, %v10519_v12  ;;  %v1182_v55 = vmax.f32 %v902_v57, 0.0 }
 0x196   :  { %v1242_v5 = vmax.f32 %v952_v6, 0.0  ;;  %v1362_v49 = vmax.f32 %v1290_v18, %v1326_v15  ;;  %v10667_v1 = vpop.f32.mrf.mxu0  ;;  %v1173_v15 = vmax.f32 %v741_v27, 0.0  ;;  %v751_v27 = vadd.f32 %v10565_v13, %v10519_v12 }
 0x197   :  { %v955_v41 = vpop.f32.mrf.mxu1  ;;  %v1245_v11 = vmax.f32 %v801_v3, 0.0 }
 0x198   :  { %v1329_v21 = vmax.f32 %v1239_v38, %v1242_v5  ;;  %v10671_v26 = vpack.c.bf16 %v1362_v49, %v1359_v29  ;;  %v956_v24 = vadd.f32 %v955_v41, %v10525_v16  ;;  %v806_v44 = vpop.f32.mrf.mxu0  ;;  %v1296_v38 = vmax.f32 %v1173_v15, %v1176_v34 }
 0x199   :  { %v10674_v6 = vpop.f32.mrf.mxu1  ;;  %v807_v18 = vadd.f32 %v806_v44, %v10519_v12  ;;  %v906_v5 = vadd.f32 %v10571_v20, %v10525_v16  ;;  %v1299_v34 = vmax.f32 %v1179_v61, %v1182_v55 }
 0x19a   :  { %12088 = vst [vmem:[#allocation34_spill] sm:$0xff] %v10671_v26  ;;  %v1365_v43 = vmax.f32 %v1293_v31, %v1329_v21  ;;  %v1248_v33 = vmax.f32 %v956_v24, 0.0  ;;  %v10679_v10 = vpop.f32.mrf.mxu0 }
 0x19b   :  { %v961_v8 = vpop.f32.mrf.mxu1  ;;  %v1251_v31 = vmax.f32 %v807_v18, 0.0  ;;  %v10697_v18 = vsub.s32 2, %v10491_v56 }
 0x19c   :  { %v962_v29 = vadd.f32 %v961_v8, %v10525_v16  ;;  %v1332_v49 = vmax.f32 %v1245_v11, %v1248_v33  ;;  %v810_v41 = vpop.f32.mrf.mxu0  ;;  %v1188_v8 = vmax.f32 %v906_v5, 0.0  ;;  %v236_v5 = vsub.s32 5, %v10491_v56 }
 0x19d   :  { %v10684_v26 = vpop.f32.mrf.mxu1  ;;  %v811_v24 = vadd.f32 %v810_v41, %v10519_v12  ;;  %12092 = vst [vmem:[#allocation38_spill] sm:$0xff] %v10697_v18 }
 0x19e   :  { %v1254_v21 = vmax.f32 %v962_v29, 0.0  ;;  %v1368_v3 = vmax.f32 %v1296_v38, %v1332_v49  ;;  %v10689_v57 = vpop.f32.mrf.mxu0  ;;  %v1185_v38 = vmax.f32 %v751_v27, 0.0  ;;  %v10710_v27 = vrot.slane %v10497_v63, %v10697_v18 }
 0x19f   :  { %12089 = vst [vmem:[#allocation35_spill] sm:$0xff] %v10689_v57  ;;  %v965_v44 = vpop.f32.mrf.mxu1  ;;  %v1257_v49 = vmax.f32 %v811_v24, 0.0 }
 0x1a0   :  { %v1335_v15 = vmax.f32 %v1251_v31, %v1254_v21  ;;  %v10691_v20 = vpack.c.bf16 %v1368_v3, %v1365_v43  ;;  %v966_v11 = vadd.f32 %v965_v44, %v10525_v16  ;;  %v816_v33 = vpop.f32.mrf.mxu0  ;;  %v1302_v61 = vmax.f32 %v1185_v38, %v1188_v8 }
 0x1a1   :  { %v10694_v45 = vpop.f32.mrf.mxu1  ;;  %v817_v29 = vadd.f32 %v816_v33, %v10519_v12  ;;  %v916_v31 = vadd.f32 %v10585_v58, %v10525_v16 }
 0x1a2   :  { %12090 = vst [vmem:[#allocation36_spill] sm:$0xff] %v10691_v20  ;;  %12091 = vst [vmem:[#allocation37_spill] sm:$0xff] %v10694_v45  ;;  %v1371_v13 = vmax.f32 %v1299_v34, %v1335_v15  ;;  %v1260_v41 = vmax.f32 %v966_v11, 0.0  ;;  %v10700_v57 = vpop.f32.mrf.mxu0  ;;  %v761_v15 = vadd.f32 %v10579_v37, %v10519_v12  ;;  %v860_v37 = vadd.f32 %v10477_v42, %v10710_v27 }
 0x1a3   :  { %12093 = vst [vmem:[#allocation39_spill] sm:$0xff] %v10700_v57  ;;  %v971_v55 = vpop.f32.mrf.mxu1  ;;  %v1263_v24 = vmax.f32 %v817_v29, 0.0  ;;  %v12117_v57 = vld [vmem:[#allocation28_spill] sm:$0xff] }
 0x1a4   :  { %v972_v43 = vadd.f32 %v971_v55, %v10525_v16  ;;  %v1338_v21 = vmax.f32 %v1257_v49, %v1260_v41  ;;  %v820_v3 = vpop.f32.mrf.mxu0  ;;  %v10718_v49 = vrot.slane %v10497_v63, %v236_v5  ;;  %v1200_v41 = vmax.f32 %v916_v31, 0.0 }
 0x1a5   :  { %v10706_v44 = vpop.f32.mrf.mxu1  ;;  %v821_v33 = vadd.f32 %v820_v3, %v10519_v12  ;;  %v1197_v12 = vmax.f32 %v761_v15, 0.0  ;;  %v870_v15 = vadd.f32 %v10495_v60, %v10710_v27 }
 0x1a6   :  { %12094 = vst [vmem:[#allocation40_spill] sm:$0xff] %v10706_v44  ;;  %v1266_v34 = vmax.f32 %v972_v43, 0.0  ;;  %v1374_v11 = vmax.f32 %v1302_v61, %v1338_v21  ;;  %v10715_v8 = vpop.f32.mrf.mxu0 }
 0x1a7   :  { %12095 = vst [vmem:[#allocation41_spill] sm:$0xff] %v10715_v8  ;;  %v975_v38 = vpop.f32.mrf.mxu1  ;;  %v1269_v61 = vmax.f32 %v821_v33, 0.0  ;;  %v1308_v63 = vmax.f32 %v1197_v12, %v1200_v41  ;;  %v10055_v12 = vld [vmem:[#allocation4] sm:$0x3f] }
 0x1a8   :  { %v1341_v58 = vmax.f32 %v1263_v24, %v1266_v34  ;;  %v10720_v55 = vpack.c.bf16 %v1374_v11, %v1371_v13  ;;  %v976_v18 = vadd.f32 %v975_v38, %v10525_v16  ;;  %v10723_v29 = vpop.f32.mrf.mxu0  ;;  %v1133_v13 = vmax.f32 %v860_v37, 0.0 }
 0x1aa   :  { %12096 = vst [vmem:[#allocation42_spill] sm:$0xff] %v10720_v55  ;;  %v1377_v43 = vmax.f32 %v10589_v17, %v1341_v58  ;;  %v1272_v21 = vmax.f32 %v976_v18, 0.0  ;;  %v1014_v3 = vpop.f32.mrf.mxu0  ;;  %v10740_v18 = vsub.s32 1, %v10491_v56  ;;  %v232_v58 = vsub.s32 4, %v10491_v56 }
 0x1ab   :  { %v1015_v24 = vadd.f32 %v1014_v3, %v10718_v49  ;;  %v10839_v55 = vadd.f32 %v10559_v62, %v10710_v27 }
 0x1ac   :  { %v1344_v5 = vmax.f32 %v1269_v61, %v1272_v21  ;;  %v10729_v31 = vpop.f32.mrf.mxu0  ;;  %12098 = vst [vmem:[#allocation44_spill] sm:$0xff] %v10740_v18  ;;  %v10749_v61 = vrot.slane %v10055_v12, %v10740_v18 }
 0x1ad   :  { %v1136_v34 = vmax.f32 %v1015_v24, 0.0  ;;  %12106 = vst [vmem:[#allocation52_spill] sm:$0xff] %v10839_v55 }
 0x1ae   :  { %v1380_v16 = vmax.f32 %v1308_v63, %v1344_v5  ;;  %v10731_v11 = vpop.f32.mrf.mxu0  ;;  %v729_v24 = vadd.f32 %v10528_v19, %v10749_v61  ;;  %v10755_v63 = vrot.slane %v10055_v12, %v232_v58  ;;  %v880_v5 = vadd.f32 %v10521_v14, %v10710_v27 }
 0x1af   :  { %v10733_v38 = vmax.f32 %v1133_v13, %v1136_v34 }
 0x1b0   :  { %v10735_v42 = vpack.c.bf16 %v1380_v16, %v1377_v43  ;;  %v10737_v17 = vpop.f32.mrf.mxu0  ;;  %v1145_v43 = vmax.f32 %v870_v15, 0.0  ;;  %v1156_v16 = vmax.f32 %v729_v24, 0.0  ;;  %v1157_v18 = vmax.f32 %v880_v5, 0.0 }
 0x1b2   :  { %12097 = vst [vmem:[#allocation43_spill] sm:$0xff] %v10735_v42  ;;  %v1024_v33 = vpop.f32.mrf.mxu0 }
 0x1b3   :  { %v1025_v41 = vadd.f32 %v1024_v33, %v10718_v49 }
 0x1b4   :  { %v10746_v37 = vpop.f32.mrf.mxu0 }
 0x1b5   :  { %v1148_v21 = vmax.f32 %v1025_v41, 0.0 }
 0x1b6   :  { %v10751_v3 = vpop.f32.mrf.mxu0 }
 0x1b7   :  { %v10757_v60 = vmax.f32 %v1145_v43, %v1148_v21 }
 0x1b8   :  { %v1032_v56 = vpop.f32.mrf.mxu0 }
 0x1b9   :  { %v1033_v13 = vadd.f32 %v1032_v56, %v10755_v63  ;;  %v10781_v56 = vadd.f32 %v10479_v47, %v10749_v61  ;;  %v10801_v47 = vadd.f32 %v10508_v4, %v10710_v27 }
 0x1ba   :  { %v1034_v34 = vpop.f32.mrf.mxu0 }
 0x1bb   :  { %v1159_v33 = vmax.f32 %v1033_v13, 0.0  ;;  %v1035_v15 = vadd.f32 %v1034_v34, %v10718_v49  ;;  %v10787_v13 = vadd.f32 %v10485_v51, %v10710_v27  ;;  %v10795_v34 = vadd.f32 %v10499_v0, %v10749_v61 }
 0x1bc   :  { %v10763_v41 = vpop.f32.mrf.mxu0  ;;  %v10809_v51 = vadd.f32 %v10533_v25, %v10710_v27  ;;  %v10814_v0 = vadd.f32 %v10535_v30, %v10749_v61  ;;  %v10829_v25 = vadd.f32 %v10551_v46, %v10710_v27  ;;  %v10833_v30 = vadd.f32 %v10553_v53, %v10749_v61 }
 0x1bd   :  { %v10765_v42 = vmax.f32 %v1156_v16, %v1159_v33  ;;  %v1160_v19 = vmax.f32 %v1035_v15, 0.0  ;;  %v10805_v33 = vadd.f32 %v10513_v9, %v10749_v61  ;;  %v10818_v15 = vadd.f32 %v10543_v36, %v10710_v27 }
 0x1be   :  { %v10767_v58 = vpop.f32.mrf.mxu0  ;;  %v10825_v9 = vadd.f32 %v10545_v39, %v10749_v61  ;;  %12104 = vst [vmem:[#allocation50_spill] sm:$0xff] %v10829_v25  ;;  %12105 = vst [vmem:[#allocation51_spill] sm:$0xff] %v10833_v30  ;;  %v759_v53 = vadd.f32 %v10576_v28, %v10749_v61  ;;  %v910_v36 = vadd.f32 %v10573_v23, %v10710_v27  ;;  %v12111_v23 = vld [vmem:[#allocation23_spill] sm:$0xff]  ;;  %v12113_v39 = vld [vmem:[#allocation25_spill] sm:$0xff] }
 0x1bf   :  { %v10769_v12 = vmax.f32 %v1157_v18, %v1160_v19  ;;  %v10791_v18 = vadd.f32 %v10487_v54, %v10749_v61  ;;  %12102 = vst [vmem:[#allocation48_spill] sm:$0xff] %v10818_v15  ;;  %v10859_v28 = vadd.f32 %v10561_v7, %v10749_v61  ;;  %v12109_v54 = vld [vmem:[#allocation22_spill] sm:$0xff]  ;;  %v10871_v25 = vadd.f32 %v12113_v39, %v10749_v61 }
 0x1c0   :  { %v10771_v43 = vpop.f32.mrf.mxu0  ;;  %v10863_v44 = vadd.f32 %v12109_v54, %v10710_v27  ;;  %v1193_v55 = vmax.f32 %v910_v36, 0.0  ;;  %v12115_v7 = vld [vmem:[#allocation26_spill] sm:$0xff]  ;;  %v12116_v54 = vld [vmem:[#allocation27_spill] sm:$0xff] }
 0x1c1   :  { %12099 = vst [vmem:[#allocation45_spill] sm:$0xff] %v10769_v12  ;;  %12108 = vst [vmem:[#allocation54_spill] sm:$0xff] %v10859_v28  ;;  %v920_v30 = vadd.f32 %v12115_v7, %v10710_v27  ;;  %v769_v15 = vadd.f32 %v12116_v54, %v10749_v61  ;;  %v10894_v54 = vadd.f32 %v10611_v48, %v10710_v27  ;;  %v12124_v48 = vld [vmem:[#allocation31_spill] sm:$0xff] }
 0x1c2   :  { %v10773_v14 = vpop.f32.mrf.mxu0  ;;  %12110 = vst [vmem:[#allocation22_spill] sm:$0xff] %v10863_v44  ;;  %12114 = vst [vmem:[#allocation25_spill] sm:$0xff] %v10871_v25  ;;  %v10912_v7 = vadd.f32 %v12124_v48, %v10749_v61 }
 0x1c3   :  { %v1204_v45 = vmax.f32 %v769_v15, 0.0  ;;  %v10922_v15 = vadd.f32 %v10631_v50, %v10710_v27 }
 0x1c4   :  { %v10775_v21 = vpop.f32.mrf.mxu0 }
 0x1c6   :  { %v10777_v24 = vpop.f32.mrf.mxu0 }
 0x1c8   :  { %v10783_v5 = vpop.f32.mrf.mxu0 }
 0x1c9   :  { %12100 = vst [vmem:[#allocation46_spill] sm:$0xff] %v10783_v5 }
 0x1ca   :  { %v10797_v16 = vpop.f32.mrf.mxu0 }
 0x1cb   :  { %12101 = vst [vmem:[#allocation47_spill] sm:$0xff] %v10797_v16  ;;  %v10867_v16 = vadd.f32 %v12111_v23, %v10749_v61  ;;  %v10880_v23 = vadd.f32 %v12117_v57, %v10710_v27  ;;  %v12121_v57 = vld [vmem:[#allocation30_spill] sm:$0xff] }
 0x1cc   :  { %v10820_v4 = vpop.f32.mrf.mxu0 }
 0x1cd   :  { %12103 = vst [vmem:[#allocation49_spill] sm:$0xff] %v10820_v4  ;;  %12112 = vst [vmem:[#allocation23_spill] sm:$0xff] %v10867_v16 }
 0x1ce   :  { %v10841_v19 = vpop.f32.mrf.mxu0 }
 0x1cf   :  { %12107 = vst [vmem:[#allocation53_spill] sm:$0xff] %v10841_v19  ;;  %v1192_v19 = vmax.f32 %v759_v53, 0.0  ;;  %v12119_v53 = vld [vmem:[#allocation29_spill] sm:$0xff] }
 0x1d0   :  { %v1062_v62 = vpop.f32.mrf.mxu0  ;;  %v773_v39 = vadd.f32 %v12119_v53, %v10749_v61  ;;  %v1211_v53 = vmax.f32 %v10880_v23, 0.0  ;;  %v10929_v23 = vadd.f32 %v10634_v59, %v10749_v61 }
 0x1d1   :  { %v1063_v8 = vadd.f32 %v1062_v62, %v10755_v63 }
 0x1d2   :  { %v1064_v20 = vpop.f32.mrf.mxu0  ;;  %v1210_v44 = vmax.f32 %v773_v39, 0.0 }
 0x1d3   :  { %v1195_v62 = vmax.f32 %v1063_v8, 0.0  ;;  %v1065_v46 = vadd.f32 %v1064_v20, %v10718_v49  ;;  %v1013_v8 = vadd.f32 %v10723_v29, %v10755_v63 }
 0x1d4   :  { %v10882_v4 = vpop.f32.mrf.mxu0 }
 0x1d5   :  { %12118 = vst [vmem:[#allocation26_spill] sm:$0xff] %v10882_v4  ;;  %v10888_v20 = vmax.f32 %v1192_v19, %v1195_v62  ;;  %v1196_v36 = vmax.f32 %v1065_v46, 0.0  ;;  %v10898_v4 = vadd.f32 %v12121_v57, %v10749_v61  ;;  %v10906_v19 = vadd.f32 %v10621_v52, %v10710_v27 }
 0x1d6   :  { %v10900_v12 = vpop.f32.mrf.mxu0  ;;  %v1205_v62 = vmax.f32 %v920_v30, 0.0  ;;  %v1017_v57 = vadd.f32 %v10729_v31, %v10755_v63  ;;  %v1135_v29 = vmax.f32 %v1013_v8, 0.0  ;;  %v1019_v30 = vadd.f32 %v10731_v11, %v10718_v49 }
 0x1d7   :  { %12120 = vst [vmem:[#allocation27_spill] sm:$0xff] %v10888_v20  ;;  %12122 = vst [vmem:[#allocation28_spill] sm:$0xff] %v10900_v12  ;;  %v10908_v46 = vmax.f32 %v1193_v55, %v1196_v36  ;;  %v1216_v55 = vmax.f32 %v10898_v4, 0.0  ;;  %v10935_v4 = vadd.f32 %v10639_v32, %v10710_v27  ;;  %v1023_v11 = vadd.f32 %v10737_v17, %v10755_v63 }
 0x1d8   :  { %v1072_v20 = vpop.f32.mrf.mxu0  ;;  %v1141_v50 = vmax.f32 %v1017_v57, 0.0  ;;  %v12125_v31 = vmax.f32 %v10781_v56, 0.0  ;;  %v1142_v32 = vmax.f32 %v1019_v30, 0.0  ;;  %v1228_v57 = vmax.f32 %v10929_v23, 0.0 }
 0x1d9   :  { %12123 = vst [vmem:[#allocation29_spill] sm:$0xff] %v10908_v46  ;;  %v1073_v25 = vadd.f32 %v1072_v20, %v10755_v63  ;;  %v1235_v56 = vmax.f32 %v10935_v4, 0.0 }
 0x1da   :  { %v1074_v36 = vpop.f32.mrf.mxu0  ;;  %v1276_v52 = vmax.f32 %v12125_v31, %v1135_v29  ;;  %v1147_v31 = vmax.f32 %v1023_v11, 0.0 }
 0x1db   :  { %v1207_v39 = vmax.f32 %v1073_v25, 0.0  ;;  %v1075_v8 = vadd.f32 %v1074_v36, %v10718_v49  ;;  %v12126_v36 = vld [vmem:[#allocation24_spill] sm:$0xff] }
 0x1dc   :  { %v1076_v48 = vpop.f32.mrf.mxu0  ;;  %v10944_v12 = vadd.f32 %v12126_v36, %v10710_v27 }
 0x1dd   :  { %v1312_v46 = vmax.f32 %v1204_v45, %v1207_v39  ;;  %v1208_v59 = vmax.f32 %v1075_v8, 0.0  ;;  %v1077_v25 = vadd.f32 %v1076_v48, %v10755_v63  ;;  %v12127_v45 = vmax.f32 %v10791_v18, 0.0 }
 0x1de   :  { %v1078_v16 = vpop.f32.mrf.mxu0  ;;  %v1027_v39 = vadd.f32 %v10746_v37, %v10755_v63  ;;  %v10965_v18 = vadd.f32 %v10657_v40, %v10749_v61  ;;  %v12128_v37 = vmax.f32 %v10787_v13, 0.0  ;;  %v1029_v40 = vadd.f32 %v10751_v3, %v10718_v49 }
 0x1df   :  { %v1348_v28 = vmax.f32 %v1276_v52, %v1312_v46  ;;  %v1213_v17 = vmax.f32 %v1077_v25, 0.0  ;;  %v1079_v5 = vadd.f32 %v1078_v16, %v10718_v49  ;;  %v1279_v29 = vmax.f32 %v12127_v45, %v1141_v50 }
 0x1e0   :  { %v1082_v8 = vpop.f32.mrf.mxu0  ;;  %v1313_v48 = vmax.f32 %v1205_v62, %v1208_v59  ;;  %v10957_v46 = vadd.f32 %v10644_v2, %v10749_v61  ;;  %v10961_v16 = vadd.f32 %v10651_v22, %v10710_v27  ;;  %v1280_v52 = vmax.f32 %v12128_v37, %v1142_v32 }
 0x1e1   :  { %v1315_v36 = vmax.f32 %v1210_v44, %v1213_v17  ;;  %v1214_v30 = vmax.f32 %v1079_v5, 0.0  ;;  %v1083_v20 = vadd.f32 %v1082_v8, %v10755_v63  ;;  %v10972_v2 = vadd.f32 %v10662_v35, %v10710_v27 }
 0x1e2   :  { %v1084_v62 = vpop.f32.mrf.mxu0  ;;  %v12129_v22 = vmax.f32 %v10795_v34, 0.0  ;;  %v1153_v25 = vmax.f32 %v1027_v39, 0.0  ;;  %v1349_v13 = vmax.f32 %v10733_v38, %v1313_v48  ;;  %v8993_v34 = vld [vmem:[#allocation6 + $0x2e0] ss:$16 sps:$4 sm:$0xff]   ;;  %v9001_v38 = vld [vmem:[#allocation6 + $0x2c4] ss:$16 sps:$4 sm:$0xff]   ;;  %v1037_v37 = vadd.f32 %v10763_v41, %v10755_v63 }
 0x1e3   :  { %v1351_v44 = vmax.f32 %v1279_v29, %v1315_v36  ;;  %v1316_v5 = vmax.f32 %v1211_v53, %v1214_v30  ;;  %v1219_v50 = vmax.f32 %v1083_v20, 0.0  ;;  %v1085_v11 = vadd.f32 %v1084_v62, %v10718_v49 }
 0x1e4   :  { %v1282_v59 = vmax.f32 %v12129_v22, %v1147_v31  ;;  %v1086_v17 = vpop.f32.mrf.mxu0  ;;  %v1234_v20 = vmax.f32 %v10957_v46, 0.0  ;;  %v1241_v29 = vmax.f32 %v10961_v16, 0.0  ;;  %v1240_v31 = vmax.f32 %v10965_v18, 0.0  ;;  %v9025_v18 = vld [vmem:[#allocation6 + $0x244] ss:$16 sps:$4 sm:$0xff]  }
 0x1e5   :  { %v1352_v32 = vmax.f32 %v1280_v52, %v1316_v5  ;;  %v1318_v45 = vmax.f32 %v1216_v55, %v1219_v50  ;;  %v1087_v53 = vadd.f32 %v1086_v17, %v10755_v63  ;;  %v1220_v35 = vmax.f32 %v1085_v11, 0.0  ;;  %v12156_v16 = vld [vmem:[#allocation47_spill] sm:$0xff] }
 0x1e6   :  { %v1088_v8 = vpop.f32.mrf.mxu0  ;;  %v10982_v36 = vpack.c.bf16 %v1351_v44, %v1348_v28  ;;  %v1247_v55 = vmax.f32 %v10972_v2, 0.0  ;;  %v1154_v48 = vmax.f32 %v1029_v40, 0.0  ;;  %v10994_v62 = vadd.f32 %v10667_v1, %v10749_v61 }
 0x1e7   :  { %v10985_v39 = vpack.c.bf16 %v1352_v32, %v1349_v13  ;;  %v1354_v3 = vmax.f32 %v1282_v59, %v1318_v45  ;;  %v1225_v30 = vmax.f32 %v1087_v53, 0.0  ;;  %v1089_v52 = vadd.f32 %v1088_v8, %v10718_v49  ;;  %v12132_v59 = vld [vmem:[#allocation32_spill] sm:$0xff] }
 0x1e8   :  { %4396 = vmatprep.mubr.bf16.mxu1 %v10982_v36  ;;  %v1092_v28 = vpop.f32.mrf.mxu0  ;;  %v12130_v44 = vmax.f32 %v10805_v33, 0.0  ;;  %v12131_v50 = vmax.f32 %v10912_v7, 0.0  ;;  %v11004_v41 = vadd.f32 %v10674_v6, %v10710_v27  ;;  %v1039_v40 = vadd.f32 %v10767_v58, %v10718_v49  ;;  %v9007_v6 = vld [vmem:[#allocation6 + $0x2a4] ss:$16 sps:$4 sm:$0xff]  }
 0x1e9   :  { %v1093_v22 = vadd.f32 %v1092_v28, %v10755_v63  ;;  %4397 = vmatmul.mubr.bf16.vlgmr.msra.gmra.mxu1 %v12132_v59  ;;  %v12133_v1 = vmax.f32 %v10894_v54, 0.0  ;;  %v1226_v13 = vmax.f32 %v1089_v52, 0.0  ;;  %v11012_v7 = vadd.f32 %v10679_v10, %v10749_v61 }
 0x1ea   :  { %v1285_v5 = vmax.f32 %v12130_v44, %v1153_v25  ;;  %v1321_v11 = vmax.f32 %v12131_v50, %v1225_v30  ;;  %4438 = vmatpush1.bf16.msra.mxu1 %v8993_v34  ;;  %v1094_v33 = vpop.f32.mrf.mxu0  ;;  %v8999_v25 = vld [vmem:[#allocation6 + $0x2c0] ss:$16 sps:$4 sm:$0xff]   ;;  %v12134_v8 = vmax.f32 %v10801_v47, 0.0  ;;  %v1165_v30 = vmax.f32 %v1037_v37, 0.0 }
 0x1eb   :  { %v1319_v17 = vmax.f32 %v12133_v1, %v1220_v35  ;;  %v1231_v45 = vmax.f32 %v1093_v22, 0.0  ;;  %v1095_v53 = vadd.f32 %v1094_v33, %v10718_v49  ;;  %4439 = vmatprep.subr.bf16.mxu1 %v9001_v38  ;;  %v1043_v54 = vadd.f32 %v10771_v43, %v10755_v63  ;;  %v9005_v50 = vld [vmem:[#allocation6 + $0x2a0] ss:$16 sps:$4 sm:$0xff]  }
 0x1ec   :  { %v1357_v32 = vmax.f32 %v1285_v5, %v1321_v11  ;;  %v1286_v58 = vmax.f32 %v12134_v8, %v1154_v48  ;;  %v12135_v35 = vmax.f32 %v10906_v19, 0.0  ;;  %v1096_v52 = vpop.f32.mrf.mxu0  ;;  %v1246_v5 = vmax.f32 %v10994_v62, 0.0  ;;  %v12159_v62 = vld [vmem:[#allocation53_spill] sm:$0xff] }
 0x1ed   :  { %v1324_v10 = vmax.f32 %v1228_v57, %v1231_v45  ;;  %v1232_v44 = vmax.f32 %v1095_v53, 0.0  ;;  %v1097_v38 = vadd.f32 %v1096_v52, %v10755_v63  ;;  %v1166_v47 = vmax.f32 %v1039_v40, 0.0  ;;  %v9013_v57 = vld [vmem:[#allocation6 + $0x284] ss:$16 sps:$4 sm:$0xff]  }
 0x1ee   :  { %v1322_v34 = vmax.f32 %v12135_v35, %v1226_v13  ;;  %v11021_v28 = vpack.c.bf16 %v1357_v32, %v1354_v3  ;;  %v1355_v48 = vmax.f32 %v10757_v60, %v1319_v17  ;;  %4440 = vmatpush1.bf16.msra.mxu1 %v8999_v25  ;;  %v1098_v43 = vpop.f32.mrf.mxu0  ;;  %v1253_v19 = vmax.f32 %v11004_v41, 0.0  ;;  %v12139_v53 = vld [vmem:[#allocation33_spill] sm:$0xff] }
 0x1ef   :  { %v1360_v3 = vmax.f32 %v10765_v42, %v1324_v10  ;;  %v1237_v11 = vmax.f32 %v1097_v38, 0.0  ;;  %v1099_v23 = vadd.f32 %v1098_v43, %v10718_v49  ;;  %4441 = vmatprep.subr.bf16.mxu1 %v9007_v6  ;;  %v1252_v22 = vmax.f32 %v11012_v7, 0.0  ;;  %v9032_v7 = vld [vmem:[#allocation6 + $0x8e0] ss:$16 sps:$4 sm:$0xff]  }
 0x1f0   :  { %12136 = vst [vmem:[#allocation30_spill] sm:$0xff] %v11021_v28  ;;  %v1358_v37 = vmax.f32 %v1286_v58, %v1322_v34  ;;  %4406 = vmatprep.mubr.bf16.mxu1 %v11021_v28  ;;  %v1171_v40 = vmax.f32 %v1043_v54, 0.0  ;;  %v12137_v60 = vmax.f32 %v10922_v15, 0.0  ;;  %v1102_v13 = vpop.f32.mrf.mxu0  ;;  %v12138_v33 = vmax.f32 %v10814_v0, 0.0  ;;  %v9019_v34 = vld [vmem:[#allocation6 + $0x264] ss:$16 sps:$4 sm:$0xff]  }
 0x1f1   :  { %v1327_v42 = vmax.f32 %v1234_v20, %v1237_v11  ;;  %v1238_v32 = vmax.f32 %v1099_v23, 0.0  ;;  %v1103_v45 = vadd.f32 %v1102_v13, %v10755_v63  ;;  %4407 = vmatmul.mubr.bf16.gmra.mxu1 %v12139_v53  ;;  %v12140_v6 = vmax.f32 %v10809_v51, 0.0  ;;  %v9011_v20 = vld [vmem:[#allocation6 + $0x280] ss:$16 sps:$4 sm:$0xff]  }
 0x1f2   :  { %v11033_v1 = vpack.c.bf16 %v1358_v37, %v1355_v48  ;;  %v1325_v17 = vmax.f32 %v12137_v60, %v1232_v44  ;;  %v1291_v25 = vmax.f32 %v12138_v33, %v1165_v30  ;;  %v1045_v58 = vadd.f32 %v10773_v14, %v10718_v49  ;;  %4442 = vmatpush1.bf16.msra.mxu1 %v9005_v50  ;;  %v1104_v46 = vpop.f32.mrf.mxu0  ;;  %v12143_v44 = vld [vmem:[#allocation45_spill] sm:$0xff] }
 0x1f3   :  { %v1292_v8 = vmax.f32 %v12140_v6, %v1166_v47  ;;  %v1047_v15 = vadd.f32 %v10775_v21, %v10755_v63  ;;  %v1049_v0 = vadd.f32 %v10777_v24, %v10718_v49  ;;  %v1328_v54 = vmax.f32 %v1235_v56, %v1238_v32  ;;  %4443 = vmatprep.subr.bf16.mxu1 %v9013_v57  ;;  %v12142_v24 = vld [vmem:[#allocation46_spill] sm:$0xff]  ;;  %v12145_v57 = vld [vmem:[#allocation35_spill] sm:$0xff] }
 0x1f4   :  { %v1363_v30 = vmax.f32 %v1291_v25, %v1327_v42  ;;  %v1243_v35 = vmax.f32 %v1103_v45, 0.0  ;;  %v1105_v51 = vadd.f32 %v1104_v46, %v10718_v49  ;;  %v11056_v14 = vadd.f32 %v10684_v26, %v10710_v27  ;;  %v1106_v47 = vpop.f32.mrf.mxu0  ;;  %v9017_v23 = vld [vmem:[#allocation6 + $0x260] ss:$16 sps:$4 sm:$0xff]  }
 0x1f5   :  { %v12141_v21 = vmax.f32 %v10825_v9, 0.0  ;;  %v1053_v10 = vadd.f32 %v12142_v24, %v10755_v63  ;;  %v1361_v38 = vmax.f32 %v12143_v44, %v1325_v17  ;;  %v1364_v56 = vmax.f32 %v1292_v8, %v1328_v54  ;;  %v12148_v25 = vld [vmem:[#allocation49_spill] sm:$0xff]  ;;  %v12149_v6 = vld [vmem:[#allocation39_spill] sm:$0xff]  ;;  %v12150_v46 = vld [vmem:[#allocation48_spill] sm:$0xff] }
 0x1f6   :  { %v11063_v4 = vpack.c.bf16 %v1363_v30, %v1360_v3  ;;  %v1330_v48 = vmax.f32 %v1240_v31, %v1243_v35  ;;  %v1244_v37 = vmax.f32 %v1105_v51, 0.0  ;;  %v1172_v43 = vmax.f32 %v1045_v58, 0.0  ;;  %4444 = vmatpush1.bf16.msra.mxu1 %v9011_v20  ;;  %v1108_v9 = vpop.f32.mrf.mxu0  ;;  %v12147_v31 = vld [vmem:[#allocation37_spill] sm:$0xff]  ;;  %v12152_v54 = vld [vmem:[#allocation51_spill] sm:$0xff] }
 0x1f7   :  { %v1294_v52 = vmax.f32 %v12141_v21, %v1171_v40  ;;  %v1177_v50 = vmax.f32 %v1047_v15, 0.0  ;;  %v1178_v26 = vmax.f32 %v1049_v0, 0.0  ;;  %v1107_v11 = vadd.f32 %v1106_v47, %v10755_v63  ;;  %4445 = vmatprep.subr.bf16.mxu1 %v9019_v34  ;;  %v12154_v34 = vld [vmem:[#allocation50_spill] sm:$0xff] }
 0x1f8   :  { %12144 = vst [vmem:[#allocation31_spill] sm:$0xff] %v11063_v4  ;;  %v813_v40 = vadd.f32 %v12145_v57, %v10749_v61  ;;  %v11070_v60 = vpack.c.bf16 %v1364_v56, %v1361_v38  ;;  %v1109_v17 = vadd.f32 %v1108_v9, %v10718_v49  ;;  %v11075_v13 = vadd.f32 %v12147_v31, %v10710_v27  ;;  %v1112_v45 = vpop.f32.mrf.mxu0  ;;  %v9023_v44 = vld [vmem:[#allocation6 + $0x240] ss:$16 sps:$4 sm:$0xff]  }
 0x1f9   :  { %v1366_v3 = vmax.f32 %v1294_v52, %v1330_v48  ;;  %v1183_v33 = vmax.f32 %v1053_v10, 0.0  ;;  %v1057_v42 = vadd.f32 %v12148_v25, %v10755_v63  ;;  %v1249_v32 = vmax.f32 %v1107_v11, 0.0  ;;  %v9031_v48 = vld [vmem:[#allocation6 + $0x224] ss:$16 sps:$4 sm:$0xff]  }
 0x1fa   :  { %12146 = vst [vmem:[#allocation24_spill] sm:$0xff] %v11070_v60  ;;  %v11081_v8 = vadd.f32 %v12149_v6, %v10749_v61  ;;  %v1331_v58 = vmax.f32 %v1241_v29, %v1244_v37  ;;  %v1250_v15 = vmax.f32 %v1109_v17, 0.0  ;;  %v1113_v0 = vadd.f32 %v1112_v45, %v10755_v63  ;;  %4446 = vmatpush1.bf16.msra.mxu1 %v9017_v23  ;;  %v1114_v10 = vpop.f32.mrf.mxu0  ;;  %v12157_v37 = vld [vmem:[#allocation54_spill] sm:$0xff] }
 0x1fb   :  { %v12151_v20 = vmax.f32 %v12150_v46, 0.0  ;;  %v12153_v35 = vmax.f32 %v12152_v54, 0.0  ;;  %v12155_v21 = vmax.f32 %v12154_v34, 0.0  ;;  %v1333_v24 = vmax.f32 %v1246_v5, %v1249_v32  ;;  %4447 = vmatprep.subr.bf16.mxu1 %v9025_v18  ;;  %v12161_v54 = vld [vmem:[#allocation23_spill] sm:$0xff] }
 0x1fc   :  { %v1055_v29 = vadd.f32 %v12156_v16, %v10718_v49  ;;  %v1334_v38 = vmax.f32 %v1247_v55, %v1250_v15  ;;  %v1255_v47 = vmax.f32 %v1113_v0, 0.0  ;;  %v1115_v56 = vadd.f32 %v1114_v10, %v10718_v49  ;;  %v1116_v9 = vpop.f32.mrf.mxu0 }
 0x1fd   :  { %v1295_v30 = vmax.f32 %v12151_v20, %v1172_v43  ;;  %v1297_v51 = vmax.f32 %v12153_v35, %v1177_v50  ;;  %v1298_v52 = vmax.f32 %v12155_v21, %v1178_v26  ;;  %v12158_v43 = vmax.f32 %v12157_v37, 0.0  ;;  %v9040_v20 = vld [vmem:[#allocation6 + $0x8c4] ss:$16 sps:$4 sm:$0xff]  }
 0x1fe   :  { %v1189_v26 = vmax.f32 %v1057_v42, 0.0  ;;  %v1059_v5 = vadd.f32 %v12159_v62, %v10718_v49  ;;  %v1336_v2 = vmax.f32 %v1252_v22, %v1255_v47  ;;  %v1117_v55 = vadd.f32 %v1116_v9, %v10755_v63  ;;  %4448 = vmatpush1.bf16.msra.mxu1 %v9023_v44  ;;  %v9029_v42 = vld [vmem:[#allocation6 + $0x220] ss:$16 sps:$4 sm:$0xff]   ;;  %v9037_v22 = vld [vmem:[#allocation6 + $0x204] ss:$16 sps:$4 sm:$0xff]  }
 0x1ff   :  { %v1300_v50 = vmax.f32 %v12158_v43, %v1183_v33  ;;  %v1369_v11 = vmax.f32 %v1297_v51, %v1333_v24  ;;  %v1367_v23 = vmax.f32 %v1295_v30, %v1331_v58  ;;  %v1370_v57 = vmax.f32 %v1298_v52, %v1334_v38  ;;  %v1118_v33 = vpop.f32.mrf.mxu0  ;;  %4449 = vmatprep.subr.bf16.mxu1 %v9031_v48  ;;  %v12163_v52 = vld [vmem:[#allocation36_spill] sm:$0xff]  ;;  %v12165_v44 = vld [vmem:[#allocation41_spill] sm:$0xff] }
 0x200   :  { %v1259_v17 = vmax.f32 %v11056_v14, 0.0  ;;  %v1258_v18 = vmax.f32 %v813_v40, 0.0  ;;  %v1256_v25 = vmax.f32 %v1115_v56, 0.0  ;;  %v1265_v32 = vmax.f32 %v11075_v13, 0.0  ;;  %v12160_v14 = vld [vmem:[#allocation26_spill] sm:$0xff]  ;;  %v12164_v24 = vld [vmem:[#allocation40_spill] sm:$0xff] }
 0x201   :  { %v11107_v31 = vpack.c.bf16 %v1369_v11, %v1366_v3  ;;  %v11110_v45 = vpack.c.bf16 %v1370_v57, %v1367_v23  ;;  %v1372_v6 = vmax.f32 %v1300_v50, %v1336_v2  ;;  %v1261_v58 = vmax.f32 %v1117_v55, 0.0  ;;  %v1122_v46 = vpop.f32.mrf.mxu0  ;;  %v9035_v47 = vld [vmem:[#allocation6 + $0x200] ss:$16 sps:$4 sm:$0xff]   ;;  %v9043_v57 = vld [vmem:[#allocation6 + $0x3e4] ss:$16 sps:$4 sm:$0xff]  }
 0x202   :  { %v1184_v15 = vmax.f32 %v1055_v29, 0.0  ;;  %v1190_v0 = vmax.f32 %v1059_v5, 0.0  ;;  %v1067_v40 = vadd.f32 %v12160_v14, %v10755_v63  ;;  %v1119_v3 = vadd.f32 %v1118_v33, %v10718_v49  ;;  %4450 = vmatpush1.bf16.msra.mxu1 %v9029_v42  ;;  %v12166_v56 = vld [vmem:[#allocation28_spill] sm:$0xff]  ;;  %v9046_v2 = vld [vmem:[#allocation6 + $0x8a4] ss:$16 sps:$4 sm:$0xff]  }
 0x203   :  { %4416 = vmatprep.mubr.bf16.mxu1 %v11107_v31  ;;  %v1264_v30 = vmax.f32 %v11081_v8, 0.0  ;;  %v12162_v35 = vmax.f32 %v12161_v54, 0.0  ;;  %v1339_v34 = vmax.f32 %v1258_v18, %v1261_v58  ;;  %v1123_v21 = vadd.f32 %v1122_v46, %v10755_v63  ;;  %4542 = vmatprep.mubr.bf16.mxu0 %v11110_v45  ;;  %v1124_v38 = vpop.f32.mrf.mxu0  ;;  %v9041_v14 = vld [vmem:[#allocation6 + $0x3e0] ss:$16 sps:$4 sm:$0xff]  }
 0x204   :  { %4417 = vmatmul.mubr.bf16.gmra.mxu1 %v12163_v52  ;;  %v974_v10 = vadd.f32 %v12164_v24, %v10710_v27  ;;  %v823_v16 = vadd.f32 %v12165_v44, %v10749_v61  ;;  %v1337_v29 = vmax.f32 %v1253_v19, %v1256_v25  ;;  %v1262_v8 = vmax.f32 %v1119_v3, 0.0  ;;  %4543 = vmatmul.mubr.bf16.vlgmr.msra.gmra.mxu0 %v11107_v31  ;;  %v9038_v27 = vld [vmem:[#allocation6 + $0x8c0] ss:$16 sps:$4 sm:$0xff]   ;;  %v9052_v44 = vld [vmem:[#allocation6 + $0x884] ss:$16 sps:$4 sm:$0xff]  }
 0x205   :  { %v1303_v51 = vmax.f32 %v12162_v35, %v1189_v26  ;;  %v1069_v48 = vadd.f32 %v12166_v56, %v10718_v49  ;;  %v1267_v43 = vmax.f32 %v1123_v21, 0.0  ;;  %v1125_v50 = vadd.f32 %v1124_v38, %v10718_v49  ;;  %4657 = vmatpush1.bf16.msra.mxu0 %v9032_v7  ;;  %4451 = vmatprep.subr.bf16.mxu1 %v9037_v22  ;;  %v12167_v61 = vld [vmem:[#allocation52_spill] sm:$0xff]  ;;  %v12169_v19 = vld [vmem:[#allocation22_spill] sm:$0xff]  ;;  %v1126_v23 = vpop.f32.mrf.mxu0  ;;  %v12173_v35 = vld [vmem:[#allocation25_spill] sm:$0xff] }
 0x206   :  { %v12168_v26 = vmax.f32 %v12167_v61, 0.0  ;;  %v12170_v62 = vmax.f32 %v12169_v19, 0.0  ;;  %v1201_v11 = vmax.f32 %v1067_v40, 0.0  ;;  %v1340_v9 = vmax.f32 %v1259_v17, %v1262_v8  ;;  %4658 = vmatprep.subr.bf16.mxu0 %v9040_v20  ;;  %4452 = vmatpush1.bf16.msra.mxu1 %v9035_v47  ;;  %v12171_v40 = vld [vmem:[#allocation27_spill] sm:$0xff] }
 0x207   :  { %v1375_v37 = vmax.f32 %v1303_v51, %v1339_v34  ;;  %v1342_v18 = vmax.f32 %v1264_v30, %v1267_v43  ;;  %v1268_v25 = vmax.f32 %v1125_v50, 0.0  ;;  %v1127_v33 = vadd.f32 %v1126_v23, %v10755_v63  ;;  %4453 = vmatprep.subr.bf16.mxu1 %v9043_v57  ;;  %v9049_v30 = vld [vmem:[#allocation6 + $0x3c4] ss:$16 sps:$4 sm:$0xff]   ;;  %v9050_v13 = vld [vmem:[#allocation6 + $0x880] ss:$16 sps:$4 sm:$0xff]  }
 0x208   :  { %v1301_v41 = vmax.f32 %v12168_v26, %v1184_v15  ;;  %v1304_v5 = vmax.f32 %v12170_v62, %v1190_v0  ;;  %v1271_v42 = vmax.f32 %v974_v10, 0.0  ;;  %v1270_v58 = vmax.f32 %v823_v16, 0.0  ;;  %v1128_v15 = vpop.f32.mrf.mxu0  ;;  %v12175_v10 = vld [vmem:[#allocation42_spill] sm:$0xff]  ;;  %v9058_v56 = vld [vmem:[#allocation6 + $0x864] ss:$16 sps:$4 sm:$0xff]  }
 0x209   :  { %v11136_v55 = vpack.c.bf16 %v1375_v37, %v1372_v6  ;;  %v1202_v0 = vmax.f32 %v1069_v48, 0.0  ;;  %v1378_v17 = vmax.f32 %v12171_v40, %v1342_v18  ;;  %v1273_v3 = vmax.f32 %v1127_v33, 0.0  ;;  %4659 = vmatpush1.bf16.msra.mxu0 %v9038_v27  ;;  %v9044_v6 = vld [vmem:[#allocation6 + $0x8a0] ss:$16 sps:$4 sm:$0xff]   ;;  %v9061_v19 = vld [vmem:[#allocation6 + $0x384] ss:$16 sps:$4 sm:$0xff]  }
 0x20a   :  { %v1373_v7 = vmax.f32 %v1301_v41, %v1337_v29  ;;  %v1376_v22 = vmax.f32 %v1304_v5, %v1340_v9  ;;  %v1129_v46 = vadd.f32 %v1128_v15, %v10718_v49  ;;  %v1199_v20 = vmax.f32 %v10944_v12, 0.0  ;;  %4660 = vmatprep.subr.bf16.mxu0 %v9046_v2  ;;  %4454 = vmatpush2.bf16.msra.mxu1 %v9041_v14  ;;  %v9047_v12 = vld [vmem:[#allocation6 + $0x3c0] ss:$16 sps:$4 sm:$0xff]   ;;  %v9064_v5 = vld [vmem:[#allocation6 + $0x844] ss:$16 sps:$4 sm:$0xff]  }
 0x20b   :  { %4426 = vmatprep.mubr.bf16.mxu1 %v11136_v55  ;;  %v1418_v54 = vrot.slane %v11033_v1, 4  ;;  %v12174_v51 = vmax.f32 %v12173_v35, 0.0  ;;  %v1343_v21 = vmax.f32 %v1265_v32, %v1268_v25  ;;  %v1345_v49 = vmax.f32 %v1270_v58, %v1273_v3  ;;  %v9055_v32 = vld [vmem:[#allocation6 + $0x3a4] ss:$16 sps:$4 sm:$0xff]   ;;  %4455 = vmatprep.subr.bf16.mxu1 %v9049_v30  ;;  %v9053_v27 = vld [vmem:[#allocation6 + $0x3a0] ss:$16 sps:$4 sm:$0xff]  }
 0x20c   :  { %v11143_v63 = vpack.c.bf16 %v1376_v22, %v1373_v7  ;;  %v1274_v24 = vmax.f32 %v1129_v46, 0.0  ;;  %4427 = vmatmul.mubr.bf16.gmra.mxu1 %v12175_v10  ;;  %v1417_v16 = vrot.slane %v10985_v39, 4  ;;  %v1310_v29 = vmax.f32 %v1199_v20, %v1202_v0  ;;  %v12176_v48 = vld [vmem:[#allocation29_spill] sm:$0xff] }
 0x20d   :  { %v1309_v34 = vmax.f32 %v12174_v51, %v1201_v11  ;;  %4469 = vmatprep.mubr.bf16.mxu1 %v12163_v52  ;;  %4661 = vmatpush1.bf16.msra.mxu0 %v9044_v6  ;;  %v1379_v37 = vmax.f32 %v12176_v48, %v1343_v21  ;;  %v9056_v26 = vld [vmem:[#allocation6 + $0x860] ss:$16 sps:$4 sm:$0xff]   ;;  %v1415_v41 = vrot.slane %v11021_v28, 4  ;;  %v1424_v62 = vrot.slane %v11070_v60, 4  ;;  %v9067_v2 = vld [vmem:[#allocation6 + $0x364] ss:$16 sps:$4 sm:$0xff]  }
 0x20e   :  { %12172 = vst [vmem:[#allocation32_spill] sm:$0xff] %v11143_v63  ;;  %v1346_v38 = vmax.f32 %v1271_v42, %v1274_v24  ;;  %4552 = vmatprep.mubr.bf16.mxu0 %v11143_v63  ;;  %v11156_v47 = vsel %vm1410_vm2, %v1417_v16, %v1418_v54  ;;  %4662 = vmatprep.subr.bf16.mxu0 %v9052_v44  ;;  %v1414_v11 = vrot.slane %v10982_v36, 4  ;;  %v9059_v9 = vld [vmem:[#allocation6 + $0x380] ss:$16 sps:$4 sm:$0xff]   ;;  %v9070_v25 = vld [vmem:[#allocation6 + $0x824] ss:$16 sps:$4 sm:$0xff]  }
 0x20f   :  { %v1381_v8 = vmax.f32 %v1309_v34, %v1345_v49  ;;  %4553 = vmatmul.mubr.bf16.gmra.mxu0 %v11136_v55  ;;  %4456 = vmatpush2.bf16.msra.mxu1 %v9047_v12  ;;  %v9062_v57 = vld [vmem:[#allocation6 + $0x840] ss:$16 sps:$4 sm:$0xff]   ;;  %v11172_v18 = vsel %vm1410_vm2, %v1418_v54, %v1424_v62  ;;  %v1422_v58 = vrot.slane %v11063_v4, 4  ;;  %v9073_v7 = vld [vmem:[#allocation6 + $0x344] ss:$16 sps:$4 sm:$0xff]   ;;  %v1442_v22 = vrot.slane %v12175_v10, 4 }
 0x210   :  { %v1382_v50 = vmax.f32 %v1310_v29, %v1346_v38  ;;  %4562 = vmatprep.mubr.bf16.mxu0 %v11156_v47  ;;  %4457 = vmatprep.subr.bf16.mxu1 %v9055_v32  ;;  %v11168_v23 = vsel %vm1410_vm2, %v1414_v11, %v1415_v41  ;;  %v9065_v33 = vld [vmem:[#allocation6 + $0x360] ss:$16 sps:$4 sm:$0xff]   ;;  %v9076_v15 = vld [vmem:[#allocation6 + $0x804] ss:$16 sps:$4 sm:$0xff]   ;;  %v1441_v0 = vrot.slane %v12163_v52, 4  ;;  %v1412_v32 = vrot.slane %v12139_v53, 4 }
 0x211   :  { %v11159_v43 = vpack.c.bf16 %v1381_v8, %v1378_v17  ;;  %4663 = vmatpush1.bf16.msra.mxu0 %v9050_v13  ;;  %v9068_v42 = vld [vmem:[#allocation6 + $0x820] ss:$16 sps:$4 sm:$0xff]   ;;  %v11179_v40 = vsel %vm1410_vm2, %v1415_v41, %v1422_v58  ;;  %v9079_v3 = vld [vmem:[#allocation6 + $0x324] ss:$16 sps:$4 sm:$0xff]   ;;  %v1411_v48 = vrot.slane %v12132_v59, 4 }
 0x212   :  { %v11162_v61 = vpack.c.bf16 %v1382_v50, %v1379_v37  ;;  %4664 = vmatprep.subr.bf16.mxu0 %v9058_v56  ;;  %v9071_v14 = vld [vmem:[#allocation6 + $0x340] ss:$16 sps:$4 sm:$0xff]   ;;  %v11185_v46 = vsel %vm1410_vm2, %v1441_v0, %v1442_v22  ;;  %v9082_v6 = vld [vmem:[#allocation6 + $0x9e4] ss:$16 sps:$4 sm:$0xff]  }
 0x213   :  { %12177 = vst [vmem:[#allocation33_spill] sm:$0xff] %v11159_v43  ;;  %4458 = vmatpush2.bf16.msra.mxu1 %v9053_v27  ;;  %v9074_v17 = vld [vmem:[#allocation6 + $0x800] ss:$16 sps:$4 sm:$0xff]   ;;  %v9085_v54 = vld [vmem:[#allocation6 + $0x304] ss:$16 sps:$4 sm:$0xff]  }
 0x214   :  { %12178 = vst [vmem:[#allocation46_spill] sm:$0xff] %v11162_v61  ;;  %4459 = vmatprep.subr.bf16.mxu1 %v9061_v19  ;;  %v9077_v20 = vld [vmem:[#allocation6 + $0x320] ss:$16 sps:$4 sm:$0xff]   ;;  %v9088_v35 = vld [vmem:[#allocation6 + $0x9c4] ss:$16 sps:$4 sm:$0xff]  }
 0x215   :  { %4665 = vmatpush1.bf16.msra.mxu0 %v9056_v26  ;;  %v9080_v30 = vld [vmem:[#allocation6 + $0x9e0] ss:$16 sps:$4 sm:$0xff]   ;;  %v9091_v21 = vld [vmem:[#allocation6 + $0x6e4] ss:$16 sps:$4 sm:$0xff]   ;;  %v11194_v26 = vsel %vm1410_vm2, %v1411_v48, %v1412_v32 }
 0x216   :  { %4666 = vmatprep.subr.bf16.mxu0 %v9064_v5  ;;  %v9083_v51 = vld [vmem:[#allocation6 + $0x300] ss:$16 sps:$4 sm:$0xff]   ;;  %v9094_v49 = vld [vmem:[#allocation6 + $0x9a4] ss:$16 sps:$4 sm:$0xff]  }
 0x217   :  { %4563 = vmatmul.mubr.bf16.gmra.mxu0 %v11168_v23  ;;  %4460 = vmatpush2.bf16.msra.mxu1 %v9059_v9  ;;  %v9086_v34 = vld [vmem:[#allocation6 + $0x9c0] ss:$16 sps:$4 sm:$0xff]   ;;  %v9097_v12 = vld [vmem:[#allocation6 + $0x6c4] ss:$16 sps:$4 sm:$0xff]  }
 0x218   :  { %4572 = vmatprep.mubr.bf16.mxu0 %v11172_v18  ;;  %4461 = vmatprep.subr.bf16.mxu1 %v9067_v2  ;;  %v9089_v24 = vld [vmem:[#allocation6 + $0x6e0] ss:$16 sps:$4 sm:$0xff]   ;;  %v9100_v16 = vld [vmem:[#allocation6 + $0x984] ss:$16 sps:$4 sm:$0xff]  }
 0x219   :  { %4667 = vmatpush1.bf16.msra.mxu0 %v9062_v57  ;;  %v9092_v44 = vld [vmem:[#allocation6 + $0x9a0] ss:$16 sps:$4 sm:$0xff]   ;;  %v9103_v38 = vld [vmem:[#allocation6 + $0x6a4] ss:$16 sps:$4 sm:$0xff]  }
 0x21a   :  { %4668 = vmatprep.subr.bf16.mxu0 %v9070_v25  ;;  %v9095_v29 = vld [vmem:[#allocation6 + $0x6c0] ss:$16 sps:$4 sm:$0xff]   ;;  %v9106_v13 = vld [vmem:[#allocation6 + $0x964] ss:$16 sps:$4 sm:$0xff]  }
 0x21b   :  { %4462 = vmatpush2.bf16.msra.mxu1 %v9065_v33  ;;  %v9098_v8 = vld [vmem:[#allocation6 + $0x980] ss:$16 sps:$4 sm:$0xff]   ;;  %v9109_v50 = vld [vmem:[#allocation6 + $0x684] ss:$16 sps:$4 sm:$0xff]  }
 0x21c   :  { %4463 = vmatprep.subr.bf16.mxu1 %v9073_v7  ;;  %v9101_v56 = vld [vmem:[#allocation6 + $0x6a0] ss:$16 sps:$4 sm:$0xff]   ;;  %v9112_v27 = vld [vmem:[#allocation6 + $0x944] ss:$16 sps:$4 sm:$0xff]  }
 0x21d   :  { %4669 = vmatpush1.bf16.msra.mxu0 %v9068_v42  ;;  %v9104_v37 = vld [vmem:[#allocation6 + $0x960] ss:$16 sps:$4 sm:$0xff]   ;;  %v9115_v62 = vld [vmem:[#allocation6 + $0x664] ss:$16 sps:$4 sm:$0xff]  }
 0x21e   :  { %4670 = vmatprep.subr.bf16.mxu0 %v9076_v15  ;;  %v9107_v41 = vld [vmem:[#allocation6 + $0x680] ss:$16 sps:$4 sm:$0xff]   ;;  %v9118_v5 = vld [vmem:[#allocation6 + $0x924] ss:$16 sps:$4 sm:$0xff]  }
 0x21f   :  { %4573 = vmatmul.mubr.bf16.gmra.mxu0 %v11179_v40  ;;  %4464 = vmatpush2.bf16.msra.mxu1 %v9071_v14  ;;  %v9110_v19 = vld [vmem:[#allocation6 + $0x940] ss:$16 sps:$4 sm:$0xff]   ;;  %v9121_v25 = vld [vmem:[#allocation6 + $0x644] ss:$16 sps:$4 sm:$0xff]  }
 0x220   :  { %4688 = vmatprep.mubr.bf16.mxu0 %v11185_v46  ;;  %4465 = vmatprep.subr.bf16.mxu1 %v9079_v3  ;;  %v12179_v11 = vld [vmem:[#allocation34_spill] sm:$0xff]  ;;  %v9124_v33 = vld [vmem:[#allocation6 + $0x904] ss:$16 sps:$4 sm:$0xff]  }
 0x221   :  { %4671 = vmatpush1.bf16.msra.mxu0 %v9074_v17  ;;  %v1420_v9 = vrot.slane %v12179_v11, 4  ;;  %v9113_v57 = vld [vmem:[#allocation6 + $0x660] ss:$16 sps:$4 sm:$0xff]   ;;  %v9127_v15 = vld [vmem:[#allocation6 + $0x624] ss:$16 sps:$4 sm:$0xff]  }
 0x222   :  { %4672 = vmatprep.subr.bf16.mxu0 %v9082_v6  ;;  %v9116_v2 = vld [vmem:[#allocation6 + $0x920] ss:$16 sps:$4 sm:$0xff]   ;;  %v9130_v14 = vld [vmem:[#allocation6 + $0xce4] ss:$16 sps:$4 sm:$0xff]  }
 0x223   :  { %4466 = vmatpush2.bf16.msra.mxu1 %v9077_v20  ;;  %v11200_v42 = vsel %vm1410_vm2, %v1412_v32, %v1420_v9  ;;  %v9119_v58 = vld [vmem:[#allocation6 + $0x640] ss:$16 sps:$4 sm:$0xff]   ;;  %v9133_v6 = vld [vmem:[#allocation6 + $0x604] ss:$16 sps:$4 sm:$0xff]   ;;  %v1454_v9 = vrot.slane %v11162_v61, 4 }
 0x224   :  { %4467 = vmatprep.subr.bf16.mxu1 %v9085_v54  ;;  %v9122_v7 = vld [vmem:[#allocation6 + $0x900] ss:$16 sps:$4 sm:$0xff]   ;;  %v9157_v32 = vld [vmem:[#allocation6 + $0x784] ss:$16 sps:$4 sm:$0xff]  }
 0x225   :  { %4673 = vmatpush2.bf16.msra.mxu0 %v9080_v30  ;;  %v9125_v0 = vld [vmem:[#allocation6 + $0x620] ss:$16 sps:$4 sm:$0xff]   ;;  %v9136_v30 = vld [vmem:[#allocation6 + $0xcc4] ss:$16 sps:$4 sm:$0xff]  }
 0x226   :  { %4674 = vmatprep.subr.bf16.mxu0 %v9088_v35  ;;  %v12180_v17 = vld [vmem:[#allocation43_spill] sm:$0xff] }
 0x227   :  { %4468 = vmatpush2.bf16.msra.mxu1 %v9083_v51  ;;  %v1450_v3 = vrot.slane %v12180_v17, 4  ;;  %v9128_v20 = vld [vmem:[#allocation6 + $0xce0] ss:$16 sps:$4 sm:$0xff]   ;;  %v9139_v51 = vld [vmem:[#allocation6 + $0x7e4] ss:$16 sps:$4 sm:$0xff]  }
 0x228   :  { %4583 = vmatprep.subr.bf16.mxu1 %v9091_v21  ;;  %v9131_v54 = vld [vmem:[#allocation6 + $0x600] ss:$16 sps:$4 sm:$0xff]   ;;  %v9142_v21 = vld [vmem:[#allocation6 + $0xca4] ss:$16 sps:$4 sm:$0xff]  }
 0x229   :  { %4675 = vmatpush2.bf16.msra.mxu0 %v9086_v34  ;;  %v11210_v35 = vsel %vm1410_vm2, %v1442_v22, %v1450_v3  ;;  %v9134_v34 = vld [vmem:[#allocation6 + $0xcc0] ss:$16 sps:$4 sm:$0xff]   ;;  %v9151_v22 = vld [vmem:[#allocation6 + $0x7a4] ss:$16 sps:$4 sm:$0xff]  }
 0x22a   :  { %4676 = vmatprep.subr.bf16.mxu0 %v9094_v49  ;;  %4470 = vmatmul.mubr.bf16.vlgmr.msra.gmra.mxu1 %v10985_v39  ;;  %v9137_v49 = vld [vmem:[#allocation6 + $0x7e0] ss:$16 sps:$4 sm:$0xff]   ;;  %v9181_v3 = vld [vmem:[#allocation6 + $0x704] ss:$16 sps:$4 sm:$0xff]  }
 0x22b   :  { %4479 = vmatprep.mubr.bf16.mxu1 %v12175_v10  ;;  %4584 = vmatpush1.bf16.msra.mxu1 %v9089_v24  ;;  %v9145_v24 = vld [vmem:[#allocation6 + $0x7c4] ss:$16 sps:$4 sm:$0xff]   ;;  %v9152_v48 = vld [vmem:[#allocation6 + $0xc60] ss:$16 sps:$4 sm:$0xff]  }
 0x22c   :  { %4585 = vmatprep.subr.bf16.mxu1 %v9097_v12  ;;  %v9148_v12 = vld [vmem:[#allocation6 + $0xc84] ss:$16 sps:$4 sm:$0xff]  }
 0x22d   :  { %4677 = vmatpush2.bf16.msra.mxu0 %v9092_v44  ;;  %v9140_v44 = vld [vmem:[#allocation6 + $0xca0] ss:$16 sps:$4 sm:$0xff]  }
 0x22e   :  { %4678 = vmatprep.subr.bf16.mxu0 %v9100_v16  ;;  %v9143_v16 = vld [vmem:[#allocation6 + $0x7c0] ss:$16 sps:$4 sm:$0xff]  }
 0x22f   :  { %4586 = vmatpush1.bf16.msra.mxu1 %v9095_v29  ;;  %v9146_v29 = vld [vmem:[#allocation6 + $0xc80] ss:$16 sps:$4 sm:$0xff]  }
 0x230   :  { %4587 = vmatprep.subr.bf16.mxu1 %v9103_v38  ;;  %v9149_v38 = vld [vmem:[#allocation6 + $0x7a0] ss:$16 sps:$4 sm:$0xff]  }
 0x231   :  { %4679 = vmatpush2.bf16.msra.mxu0 %v9098_v8  ;;  %v9154_v8 = vld [vmem:[#allocation6 + $0xc64] ss:$16 sps:$4 sm:$0xff]  }
 0x232   :  { %4680 = vmatprep.subr.bf16.mxu0 %v9106_v13  ;;  %4480 = vmatmul.mubr.bf16.gmra.mxu1 %v11033_v1  ;;  %v1448_v13 = vrot.slane %v11143_v63, 4 }
 0x233   :  { %4489 = vmatprep.mubr.bf16.mxu1 %v11194_v26  ;;  %4588 = vmatpush1.bf16.msra.mxu1 %v9101_v56  ;;  %v1447_v56 = vrot.slane %v11110_v45, 4 }
 0x234   :  { %4589 = vmatprep.subr.bf16.mxu1 %v9109_v50 }
 0x235   :  { %4681 = vmatpush2.bf16.msra.mxu0 %v9104_v37  ;;  %v9160_v37 = vld [vmem:[#allocation6 + $0xc44] ss:$16 sps:$4 sm:$0xff]   ;;  %v11218_v50 = vsel %vm1410_vm2, %v1447_v56, %v1448_v13  ;;  %v9200_v56 = vld [vmem:[#allocation6 + $0xd60] ss:$16 sps:$4 sm:$0xff]  }
 0x236   :  { %4682 = vmatprep.subr.bf16.mxu0 %v9112_v27  ;;  %v9155_v27 = vld [vmem:[#allocation6 + $0x780] ss:$16 sps:$4 sm:$0xff]  }
 0x237   :  { %4590 = vmatpush1.bf16.msra.mxu1 %v9107_v41  ;;  %v9163_v41 = vld [vmem:[#allocation6 + $0x764] ss:$16 sps:$4 sm:$0xff]  }
 0x238   :  { %4591 = vmatprep.subr.bf16.mxu1 %v9115_v62  ;;  %v9166_v62 = vld [vmem:[#allocation6 + $0xc24] ss:$16 sps:$4 sm:$0xff]  }
 0x239   :  { %4683 = vmatpush2.bf16.msra.mxu0 %v9110_v19  ;;  %v9158_v19 = vld [vmem:[#allocation6 + $0xc40] ss:$16 sps:$4 sm:$0xff]  }
 0x23a   :  { %4684 = vmatprep.subr.bf16.mxu0 %v9118_v5  ;;  %4490 = vmatmul.mubr.bf16.gmra.mxu1 %v11110_v45  ;;  %v9161_v5 = vld [vmem:[#allocation6 + $0x760] ss:$16 sps:$4 sm:$0xff]  }
 0x23b   :  { %4499 = vmatprep.mubr.bf16.mxu1 %v11200_v42  ;;  %4592 = vmatpush1.bf16.msra.mxu1 %v9113_v57  ;;  %v9169_v57 = vld [vmem:[#allocation6 + $0x744] ss:$16 sps:$4 sm:$0xff]  }
 0x23c   :  { %4593 = vmatprep.subr.bf16.mxu1 %v9121_v25  ;;  %v9172_v25 = vld [vmem:[#allocation6 + $0xc04] ss:$16 sps:$4 sm:$0xff]  }
 0x23d   :  { %4685 = vmatpush2.bf16.msra.mxu0 %v9116_v2  ;;  %v9164_v2 = vld [vmem:[#allocation6 + $0xc20] ss:$16 sps:$4 sm:$0xff]  }
 0x23e   :  { %4686 = vmatprep.subr.bf16.mxu0 %v9124_v33  ;;  %v11224_v33 = vsel %vm1410_vm2, %v1448_v13, %v1454_v9  ;;  %v1444_v13 = vrot.slane %v11107_v31, 4  ;;  %v9209_v9 = vld [vmem:[#allocation6 + $0xa60] ss:$16 sps:$4 sm:$0xff]  }
 0x23f   :  { %4594 = vmatpush1.bf16.msra.mxu1 %v9119_v58  ;;  %v9167_v58 = vld [vmem:[#allocation6 + $0x740] ss:$16 sps:$4 sm:$0xff]  }
 0x240   :  { %4595 = vmatprep.subr.bf16.mxu1 %v9127_v15  ;;  %v9170_v15 = vld [vmem:[#allocation6 + $0xc00] ss:$16 sps:$4 sm:$0xff]  }
 0x241   :  { %4687 = vmatpush2.bf16.msra.mxu0 %v9122_v7  ;;  %v9175_v7 = vld [vmem:[#allocation6 + $0x724] ss:$16 sps:$4 sm:$0xff]  }
 0x242   :  { %4802 = vmatprep.subr.bf16.mxu0 %v9130_v14  ;;  %4500 = vmatmul.mubr.bf16.gmra.mxu1 %v11143_v63  ;;  %v9178_v14 = vld [vmem:[#allocation6 + $0xde4] ss:$16 sps:$4 sm:$0xff]  }
 0x243   :  { %4596 = vmatpush1.bf16.msra.mxu1 %v9125_v0  ;;  %4615 = vmatprep.mubr.bf16.mxu1 %v11168_v23  ;;  %v9173_v0 = vld [vmem:[#allocation6 + $0x720] ss:$16 sps:$4 sm:$0xff]  }
 0x244   :  { %4689 = vmatmul.mubr.bf16.vlgmr.msra.gmra.mxu0 %v11156_v47  ;;  %4597 = vmatprep.subr.bf16.mxu1 %v9133_v6  ;;  %v9176_v6 = vld [vmem:[#allocation6 + $0xde0] ss:$16 sps:$4 sm:$0xff]  }
 0x245   :  { %4698 = vmatprep.mubr.bf16.mxu0 %v11210_v35  ;;  %4803 = vmatpush1.bf16.msra.mxu0 %v9128_v20  ;;  %v9184_v20 = vld [vmem:[#allocation6 + $0xdc4] ss:$16 sps:$4 sm:$0xff]  }
 0x246   :  { %4804 = vmatprep.subr.bf16.mxu0 %v9136_v30  ;;  %v9179_v30 = vld [vmem:[#allocation6 + $0x700] ss:$16 sps:$4 sm:$0xff]  }
 0x247   :  { %4598 = vmatpush1.bf16.msra.mxu1 %v9131_v54  ;;  %v9187_v54 = vld [vmem:[#allocation6 + $0xae4] ss:$16 sps:$4 sm:$0xff]  }
 0x248   :  { %4599 = vmatprep.subr.bf16.mxu1 %v9139_v51  ;;  %v9182_v51 = vld [vmem:[#allocation6 + $0xdc0] ss:$16 sps:$4 sm:$0xff]  }
 0x249   :  { %4805 = vmatpush1.bf16.msra.mxu0 %v9134_v34  ;;  %v9190_v34 = vld [vmem:[#allocation6 + $0xda4] ss:$16 sps:$4 sm:$0xff]  }
 0x24a   :  { %4806 = vmatprep.subr.bf16.mxu0 %v9142_v21  ;;  %v9185_v21 = vld [vmem:[#allocation6 + $0xae0] ss:$16 sps:$4 sm:$0xff]  }
 0x24b   :  { %4600 = vmatpush2.bf16.msra.mxu1 %v9137_v49  ;;  %v9193_v49 = vld [vmem:[#allocation6 + $0xac4] ss:$16 sps:$4 sm:$0xff]  }
 0x24c   :  { %4699 = vmatmul.mubr.bf16.gmra.mxu0 %v11172_v18  ;;  %4601 = vmatprep.subr.bf16.mxu1 %v9145_v24  ;;  %v9188_v24 = vld [vmem:[#allocation6 + $0xda0] ss:$16 sps:$4 sm:$0xff]  }
 0x24d   :  { %4708 = vmatprep.mubr.bf16.mxu0 %v12139_v53  ;;  %4807 = vmatpush1.bf16.msra.mxu0 %v9140_v44  ;;  %v9196_v44 = vld [vmem:[#allocation6 + $0xd84] ss:$16 sps:$4 sm:$0xff]  }
 0x24e   :  { %4808 = vmatprep.subr.bf16.mxu0 %v9148_v12  ;;  %v9191_v12 = vld [vmem:[#allocation6 + $0xac0] ss:$16 sps:$4 sm:$0xff]  }
 0x24f   :  { %4602 = vmatpush2.bf16.msra.mxu1 %v9143_v16  ;;  %v9199_v16 = vld [vmem:[#allocation6 + $0xaa4] ss:$16 sps:$4 sm:$0xff]  }
 0x250   :  { %4603 = vmatprep.subr.bf16.mxu1 %v9151_v22  ;;  %v9194_v22 = vld [vmem:[#allocation6 + $0xd80] ss:$16 sps:$4 sm:$0xff]  }
 0x251   :  { %4809 = vmatpush1.bf16.msra.mxu0 %v9146_v29  ;;  %v1445_v29 = vrot.slane %v11136_v55, 4 }
 0x252   :  { %4810 = vmatprep.subr.bf16.mxu0 %v9154_v8  ;;  %v9202_v8 = vld [vmem:[#allocation6 + $0xd64] ss:$16 sps:$4 sm:$0xff]  }
 0x253   :  { %4604 = vmatpush2.bf16.msra.mxu1 %v9149_v38  ;;  %v9197_v38 = vld [vmem:[#allocation6 + $0xaa0] ss:$16 sps:$4 sm:$0xff]  }
 0x254   :  { %4709 = vmatmul.mubr.bf16.gmra.mxu0 %v11218_v50  ;;  %4605 = vmatprep.subr.bf16.mxu1 %v9157_v32  ;;  %v9205_v32 = vld [vmem:[#allocation6 + $0xa84] ss:$16 sps:$4 sm:$0xff]  }
 0x255   :  { %4718 = vmatprep.mubr.bf16.mxu0 %v12179_v11  ;;  %4811 = vmatpush1.bf16.msra.mxu0 %v9152_v48  ;;  %v11234_v48 = vsel %vm1410_vm2, %v1444_v13, %v1445_v29  ;;  %v9253_v13 = vld [vmem:[#allocation6 + $0xb84] ss:$16 sps:$4 sm:$0xff]  }
 0x256   :  { %4812 = vmatprep.subr.bf16.mxu0 %v9160_v37  ;;  %v9208_v37 = vld [vmem:[#allocation6 + $0xd44] ss:$16 sps:$4 sm:$0xff]  }
 0x257   :  { %4606 = vmatpush2.bf16.msra.mxu1 %v9155_v27  ;;  %v9203_v27 = vld [vmem:[#allocation6 + $0xa80] ss:$16 sps:$4 sm:$0xff]  }
 0x258   :  { %4607 = vmatprep.subr.bf16.mxu1 %v9163_v41  ;;  %v9211_v41 = vld [vmem:[#allocation6 + $0xa64] ss:$16 sps:$4 sm:$0xff]  }
 0x259   :  { %4813 = vmatpush1.bf16.msra.mxu0 %v9158_v19  ;;  %v9206_v19 = vld [vmem:[#allocation6 + $0xd40] ss:$16 sps:$4 sm:$0xff]  }
 0x25a   :  { %4814 = vmatprep.subr.bf16.mxu0 %v9166_v62  ;;  %v1452_v62 = vrot.slane %v11159_v43, 4 }
 0x25b   :  { %4608 = vmatpush2.bf16.msra.mxu1 %v9161_v5  ;;  %v9214_v5 = vld [vmem:[#allocation6 + $0xd24] ss:$16 sps:$4 sm:$0xff]  }
 0x25c   :  { %4719 = vmatmul.mubr.bf16.gmra.mxu0 %v11224_v33  ;;  %4609 = vmatprep.subr.bf16.mxu1 %v9169_v57  ;;  %v9217_v57 = vld [vmem:[#allocation6 + $0xa44] ss:$16 sps:$4 sm:$0xff]  }
 0x25d   :  { %4815 = vmatpush1.bf16.msra.mxu0 %v9164_v2  ;;  %4834 = vmatprep.mubr.bf16.mxu0 %v11021_v28  ;;  %v9212_v2 = vld [vmem:[#allocation6 + $0xd20] ss:$16 sps:$4 sm:$0xff]  }
 0x25e   :  { %4816 = vmatprep.subr.bf16.mxu0 %v9172_v25  ;;  %v11240_v25 = vsel %vm1410_vm2, %v1445_v29, %v1452_v62  ;;  %v9242_v29 = vld [vmem:[#allocation6 + $0x88] ss:$16 sps:$4 sm:$0xff]   ;;  %v9257_v62 = vld [vmem:[#allocation6 + $0xb60] ss:$16 sps:$4 sm:$0xff]  }
 0x25f   :  { %4610 = vmatpush2.bf16.msra.mxu1 %v9167_v58  ;;  %v9220_v58 = vld [vmem:[#allocation6 + $0xd04] ss:$16 sps:$4 sm:$0xff]  }
 0x260   :  { %4611 = vmatprep.subr.bf16.mxu1 %v9175_v7  ;;  %v9215_v7 = vld [vmem:[#allocation6 + $0xa40] ss:$16 sps:$4 sm:$0xff]  }
 0x261   :  { %4817 = vmatpush1.bf16.msra.mxu0 %v9170_v15  ;;  %v9223_v15 = vld [vmem:[#allocation6 + $0xa24] ss:$16 sps:$4 sm:$0xff]  }
 0x262   :  { %4818 = vmatprep.subr.bf16.mxu0 %v9178_v14  ;;  %v9218_v14 = vld [vmem:[#allocation6 + $0xd00] ss:$16 sps:$4 sm:$0xff]  }
 0x263   :  { %4612 = vmatpush2.bf16.msra.mxu1 %v9173_v0  ;;  %v9226_v0 = vld [vmem:[#allocation6 + $0xec] ss:$16 sps:$4 sm:$0xff]  }
 0x264   :  { %4613 = vmatprep.subr.bf16.mxu1 %v9181_v3  ;;  %v9221_v3 = vld [vmem:[#allocation6 + $0xa20] ss:$16 sps:$4 sm:$0xff]  }
 0x265   :  { %4819 = vmatpush2.bf16.msra.mxu0 %v9176_v6  ;;  %v9229_v6 = vld [vmem:[#allocation6 + $0xa04] ss:$16 sps:$4 sm:$0xff]  }
 0x266   :  { %4820 = vmatprep.subr.bf16.mxu0 %v9184_v20  ;;  %v9224_v20 = vld [vmem:[#allocation6 + $0xe8] ss:$16 sps:$4 sm:$0xff]  }
 0x267   :  { %4614 = vmatpush2.bf16.msra.mxu1 %v9179_v30  ;;  %v9232_v30 = vld [vmem:[#allocation6 + $0xcc] ss:$16 sps:$4 sm:$0xff]  }
 0x268   :  { %4729 = vmatprep.subr.bf16.mxu1 %v9187_v54  ;;  %v9227_v54 = vld [vmem:[#allocation6 + $0xa00] ss:$16 sps:$4 sm:$0xff]  }
 0x269   :  { %4821 = vmatpush2.bf16.msra.mxu0 %v9182_v51  ;;  %v9235_v51 = vld [vmem:[#allocation6 + $0xbe4] ss:$16 sps:$4 sm:$0xff]  }
 0x26a   :  { %4616 = vmatmul.mubr.bf16.vlgmr.msra.gmra.mxu1 %v11194_v26  ;;  %4822 = vmatprep.subr.bf16.mxu0 %v9190_v34  ;;  %v9230_v34 = vld [vmem:[#allocation6 + $0xc8] ss:$16 sps:$4 sm:$0xff]  }
 0x26b   :  { %4625 = vmatprep.mubr.bf16.mxu1 %v11179_v40  ;;  %4730 = vmatpush1.bf16.msra.mxu1 %v9185_v21  ;;  %v9238_v21 = vld [vmem:[#allocation6 + $0xac] ss:$16 sps:$4 sm:$0xff]  }
 0x26c   :  { %4731 = vmatprep.subr.bf16.mxu1 %v9193_v49  ;;  %v9233_v49 = vld [vmem:[#allocation6 + $0xbe0] ss:$16 sps:$4 sm:$0xff]  }
 0x26d   :  { %4823 = vmatpush2.bf16.msra.mxu0 %v9188_v24  ;;  %v9241_v24 = vld [vmem:[#allocation6 + $0xbc4] ss:$16 sps:$4 sm:$0xff]  }
 0x26e   :  { %4824 = vmatprep.subr.bf16.mxu0 %v9196_v44  ;;  %v9236_v44 = vld [vmem:[#allocation6 + $0xa8] ss:$16 sps:$4 sm:$0xff]  }
 0x26f   :  { %4732 = vmatpush1.bf16.msra.mxu1 %v9191_v12  ;;  %v9244_v12 = vld [vmem:[#allocation6 + $0x8c] ss:$16 sps:$4 sm:$0xff]  }
 0x270   :  { %4733 = vmatprep.subr.bf16.mxu1 %v9199_v16  ;;  %v9239_v16 = vld [vmem:[#allocation6 + $0xbc0] ss:$16 sps:$4 sm:$0xff]  }
 0x271   :  { %4825 = vmatpush2.bf16.msra.mxu0 %v9194_v22  ;;  %v9247_v22 = vld [vmem:[#allocation6 + $0xba4] ss:$16 sps:$4 sm:$0xff]  }
 0x272   :  { %4626 = vmatmul.mubr.bf16.gmra.mxu1 %v11200_v42  ;;  %4826 = vmatprep.subr.bf16.mxu0 %v9202_v8  ;;  %v9250_v8 = vld [vmem:[#allocation6 + $0x6c] ss:$16 sps:$4 sm:$0xff]  }
 0x273   :  { %4635 = vmatprep.mubr.bf16.mxu1 %v11234_v48  ;;  %4734 = vmatpush1.bf16.msra.mxu1 %v9197_v38  ;;  %v9245_v38 = vld [vmem:[#allocation6 + $0xba0] ss:$16 sps:$4 sm:$0xff]  }
 0x274   :  { %4735 = vmatprep.subr.bf16.mxu1 %v9205_v32  ;;  %v9248_v32 = vld [vmem:[#allocation6 + $0x68] ss:$16 sps:$4 sm:$0xff]  }
 0x275   :  { %4827 = vmatpush2.bf16.msra.mxu0 %v9200_v56  ;;  %v9256_v56 = vld [vmem:[#allocation6 + $0x4c] ss:$16 sps:$4 sm:$0xff]  }
 0x276   :  { %4828 = vmatprep.subr.bf16.mxu0 %v9208_v37  ;;  %v9251_v37 = vld [vmem:[#allocation6 + $0xb80] ss:$16 sps:$4 sm:$0xff]  }
 0x277   :  { %4736 = vmatpush1.bf16.msra.mxu1 %v9203_v27  ;;  %v9259_v27 = vld [vmem:[#allocation6 + $0xb64] ss:$16 sps:$4 sm:$0xff]  }
 0x278   :  { %4737 = vmatprep.subr.bf16.mxu1 %v9211_v41  ;;  %v9254_v41 = vld [vmem:[#allocation6 + $0x48] ss:$16 sps:$4 sm:$0xff]  }
 0x279   :  { %4829 = vmatpush2.bf16.msra.mxu0 %v9206_v19  ;;  %v9262_v19 = vld [vmem:[#allocation6 + $0x2c] ss:$16 sps:$4 sm:$0xff]  }
 0x27a   :  { %4636 = vmatmul.mubr.bf16.gmra.mxu1 %v11185_v46  ;;  %4830 = vmatprep.subr.bf16.mxu0 %v9214_v5  ;;  %v9265_v5 = vld [vmem:[#allocation6 + $0xb44] ss:$16 sps:$4 sm:$0xff]  }
 0x27b   :  { %4645 = vmatprep.mubr.bf16.mxu1 %v11240_v25  ;;  %4738 = vmatpush1.bf16.msra.mxu1 %v9209_v9  ;;  %v9260_v9 = vld [vmem:[#allocation6 + $0x28] ss:$16 sps:$4 sm:$0xff]  }
 0x27c   :  { %4739 = vmatprep.subr.bf16.mxu1 %v9217_v57  ;;  %v9268_v57 = vld [vmem:[#allocation6 + $0xc] ss:$16 sps:$4 sm:$0xff]  }
 0x27d   :  { %4831 = vmatpush2.bf16.msra.mxu0 %v9212_v2  ;;  %v9263_v2 = vld [vmem:[#allocation6 + $0xb40] ss:$16 sps:$4 sm:$0xff]  }
 0x27e   :  { %4832 = vmatprep.subr.bf16.mxu0 %v9220_v58  ;;  %v9271_v58 = vld [vmem:[#allocation6 + $0xb24] ss:$16 sps:$4 sm:$0xff]  }
 0x27f   :  { %4740 = vmatpush1.bf16.msra.mxu1 %v9215_v7  ;;  %v9266_v7 = vld [vmem:[#allocation6 + $0x8] ss:$16 sps:$4 sm:$0xff]  }
 0x280   :  { %4741 = vmatprep.subr.bf16.mxu1 %v9223_v15  ;;  %v9274_v15 = vld [vmem:[#allocation6 + $0x1ec] ss:$16 sps:$4 sm:$0xff]  }
 0x281   :  { %4833 = vmatpush2.bf16.msra.mxu0 %v9218_v14  ;;  %v9269_v14 = vld [vmem:[#allocation6 + $0xb20] ss:$16 sps:$4 sm:$0xff]  }
 0x282   :  { %4646 = vmatmul.mubr.bf16.gmra.mxu1 %v11210_v35  ;;  %4948 = vmatprep.subr.bf16.mxu0 %v9226_v0  ;;  %v9277_v0 = vld [vmem:[#allocation6 + $0xb04] ss:$16 sps:$4 sm:$0xff]  }
 0x283   :  { %4742 = vmatpush1.bf16.msra.mxu1 %v9221_v3  ;;  %4761 = vmatprep.mubr.bf16.mxu1 %v11218_v50  ;;  %v9272_v3 = vld [vmem:[#allocation6 + $0x1e8] ss:$16 sps:$4 sm:$0xff]  }
 0x284   :  { %4835 = vmatmul.mubr.bf16.vlgmr.msra.gmra.mxu0 %v12139_v53  ;;  %4743 = vmatprep.subr.bf16.mxu1 %v9229_v6  ;;  %v9280_v6 = vld [vmem:[#allocation6 + $0x1cc] ss:$16 sps:$4 sm:$0xff]  }
 0x285   :  { %4844 = vmatprep.mubr.bf16.mxu0 %v11063_v4  ;;  %4949 = vmatpush1.bf16.msra.mxu0 %v9224_v20  ;;  %v9275_v20 = vld [vmem:[#allocation6 + $0xb00] ss:$16 sps:$4 sm:$0xff]  }
 0x286   :  { %4950 = vmatprep.subr.bf16.mxu0 %v9232_v30  ;;  %v9283_v30 = vld [vmem:[#allocation6 + $0xee4] ss:$16 sps:$4 sm:$0xff]  }
 0x287   :  { %4744 = vmatpush1.bf16.msra.mxu1 %v9227_v54  ;;  %v9278_v54 = vld [vmem:[#allocation6 + $0x1c8] ss:$16 sps:$4 sm:$0xff]  }
 0x288   :  { %4745 = vmatprep.subr.bf16.mxu1 %v9235_v51  ;;  %v9286_v51 = vld [vmem:[#allocation6 + $0x1ac] ss:$16 sps:$4 sm:$0xff]  }
 0x289   :  { %4951 = vmatpush1.bf16.msra.mxu0 %v9230_v34  ;;  %v9289_v34 = vld [vmem:[#allocation6 + $0xec4] ss:$16 sps:$4 sm:$0xff]  }
 0x28a   :  { %4952 = vmatprep.subr.bf16.mxu0 %v9238_v21  ;;  %v9284_v21 = vld [vmem:[#allocation6 + $0x1a8] ss:$16 sps:$4 sm:$0xff]  }
 0x28b   :  { %4746 = vmatpush2.bf16.msra.mxu1 %v9233_v49 }
 0x28c   :  { %4845 = vmatmul.mubr.bf16.gmra.mxu0 %v12179_v11  ;;  %4747 = vmatprep.subr.bf16.mxu1 %v9241_v24  ;;  %v9292_v24 = vld [vmem:[#allocation6 + $0x18c] ss:$16 sps:$4 sm:$0xff]  }
 0x28d   :  { %4854 = vmatprep.mubr.bf16.mxu0 %v11136_v55  ;;  %4953 = vmatpush1.bf16.msra.mxu0 %v9236_v44  ;;  %v9287_v44 = vld [vmem:[#allocation6 + $0xec0] ss:$16 sps:$4 sm:$0xff]  }
 0x28e   :  { %4954 = vmatprep.subr.bf16.mxu0 %v9244_v12 }
 0x28f   :  { %4748 = vmatpush2.bf16.msra.mxu1 %v9239_v16  ;;  %v9295_v16 = vld [vmem:[#allocation6 + $0xea4] ss:$16 sps:$4 sm:$0xff]  }
 0x290   :  { %4749 = vmatprep.subr.bf16.mxu1 %v9247_v22  ;;  %v9290_v22 = vld [vmem:[#allocation6 + $0x188] ss:$16 sps:$4 sm:$0xff]  }
 0x291   :  { %4955 = vmatpush1.bf16.msra.mxu0 %v9242_v29  ;;  %v11259_v29 = vld [vmem:[#allocation7] sm:$0xf] }
 0x292   :  { %4956 = vmatprep.subr.bf16.mxu0 %v9250_v8 }
 0x293   :  { %4750 = vmatpush2.bf16.msra.mxu1 %v9245_v38  ;;  %v9298_v38 = vld [vmem:[#allocation6 + $0x16c] ss:$16 sps:$4 sm:$0xff]  }
 0x294   :  { %4855 = vmatmul.mubr.bf16.gmra.mxu0 %v12175_v10  ;;  %4751 = vmatprep.subr.bf16.mxu1 %v9253_v13  ;;  %v9293_v13 = vld [vmem:[#allocation6 + $0xea0] ss:$16 sps:$4 sm:$0xff]  }
 0x295   :  { %4864 = vmatprep.mubr.bf16.mxu0 %v11159_v43  ;;  %4957 = vmatpush1.bf16.msra.mxu0 %v9248_v32 }
 0x296   :  { %4958 = vmatprep.subr.bf16.mxu0 %v9256_v56  ;;  %v9301_v56 = vld [vmem:[#allocation6 + $0xe84] ss:$16 sps:$4 sm:$0xff]  }
 0x297   :  { %4752 = vmatpush2.bf16.msra.mxu1 %v9251_v37  ;;  %v12181_v37 = vld [vmem:[#allocation20_spill] sm:$0xff] }
 0x298   :  { %4753 = vmatprep.subr.bf16.mxu1 %v9259_v27  ;;  %v11267_v27 = vrot.slane %v11259_v29, %v12181_v37 }
 0x299   :  { %4959 = vmatpush1.bf16.msra.mxu0 %v9254_v41  ;;  %v9296_v41 = vld [vmem:[#allocation6 + $0x168] ss:$16 sps:$4 sm:$0xff]  }
 0x29a   :  { %4960 = vmatprep.subr.bf16.mxu0 %v9262_v19 }
 0x29b   :  { %4754 = vmatpush2.bf16.msra.mxu1 %v9257_v62  ;;  %v9304_v62 = vld [vmem:[#allocation6 + $0x14c] ss:$16 sps:$4 sm:$0xff]  }
 0x29c   :  { %4865 = vmatmul.mubr.bf16.gmra.mxu0 %v12180_v17  ;;  %4755 = vmatprep.subr.bf16.mxu1 %v9265_v5 }
 0x29d   :  { %4961 = vmatpush1.bf16.msra.mxu0 %v9260_v9  ;;  %4980 = vmatprep.mubr.bf16.mxu0 %v10982_v36  ;;  %v9281_v36 = vld [vmem:[#allocation6 + $0xee0] ss:$16 sps:$4 sm:$0xff]  }
 0x29e   :  { %4962 = vmatprep.subr.bf16.mxu0 %v9268_v57  ;;  %v9299_v9 = vld [vmem:[#allocation6 + $0xe80] ss:$16 sps:$4 sm:$0xff]  }
 0x29f   :  { %4756 = vmatpush2.bf16.msra.mxu1 %v9263_v2  ;;  %v9307_v2 = vld [vmem:[#allocation6 + $0xe64] ss:$16 sps:$4 sm:$0xff]  }
 0x2a0   :  { %4757 = vmatprep.subr.bf16.mxu1 %v9271_v58  ;;  %v9302_v58 = vld [vmem:[#allocation6 + $0x148] ss:$16 sps:$4 sm:$0xff]  }
 0x2a1   :  { %4963 = vmatpush1.bf16.msra.mxu0 %v9266_v7 }
 0x2a2   :  { %4964 = vmatprep.subr.bf16.mxu0 %v9274_v15  ;;  %v9310_v15 = vld [vmem:[#allocation6 + $0x12c] ss:$16 sps:$4 sm:$0xff]  }
 0x2a3   :  { %4758 = vmatpush2.bf16.msra.mxu1 %v9269_v14 }
 0x2a4   :  { %4759 = vmatprep.subr.bf16.mxu1 %v9277_v0  ;;  %v9305_v0 = vld [vmem:[#allocation6 + $0xe60] ss:$16 sps:$4 sm:$0xff]  }
 0x2a5   :  { %4965 = vmatpush2.bf16.msra.mxu0 %v9272_v3  ;;  %v9313_v3 = vld [vmem:[#allocation6 + $0xe44] ss:$16 sps:$4 sm:$0xff]  }
 0x2a6   :  { %4966 = vmatprep.subr.bf16.mxu0 %v9280_v6  ;;  %v9308_v6 = vld [vmem:[#allocation6 + $0x128] ss:$16 sps:$4 sm:$0xff]  }
 0x2a7   :  { %4760 = vmatpush2.bf16.msra.mxu1 %v9275_v20  ;;  %v9316_v20 = vld [vmem:[#allocation6 + $0x10c] ss:$16 sps:$4 sm:$0xff]  }
 0x2a8   :  { %4875 = vmatprep.subr.bf16.mxu1 %v9283_v30  ;;  %v9311_v30 = vld [vmem:[#allocation6 + $0xe40] ss:$16 sps:$4 sm:$0xff]  }
 0x2a9   :  { %4967 = vmatpush2.bf16.msra.mxu0 %v9278_v54  ;;  %v11254_v49 = vpop.f32.mrf.mxu1  ;;  %v9319_v54 = vld [vmem:[#allocation6 + $0xe24] ss:$16 sps:$4 sm:$0xff]  }
 0x2aa   :  { %4762 = vmatmul.mubr.bf16.vlgmr.msra.gmra.mxu1 %v11234_v48  ;;  %4968 = vmatprep.subr.bf16.mxu0 %v9286_v51  ;;  %v9314_v51 = vld [vmem:[#allocation6 + $0x108] ss:$16 sps:$4 sm:$0xff]  }
 0x2ab   :  { %4771 = vmatprep.mubr.bf16.mxu1 %v11224_v33  ;;  %4876 = vmatpush1.bf16.msra.mxu1 %v9281_v36  ;;  %v11257_v12 = vpop.f32.mrf.mxu1  ;;  %v9322_v36 = vld [vmem:[#allocation6 + $0x4ec] ss:$16 sps:$4 sm:$0xff]  }
 0x2ac   :  { %4877 = vmatprep.subr.bf16.mxu1 %v9289_v34  ;;  %v9317_v34 = vld [vmem:[#allocation6 + $0xe20] ss:$16 sps:$4 sm:$0xff]  }
 0x2ad   :  { %4969 = vmatpush2.bf16.msra.mxu0 %v9284_v21  ;;  %v11261_v8 = vpop.f32.mrf.mxu1 }
 0x2ae   :  { %4970 = vmatprep.subr.bf16.mxu0 %v9292_v24  ;;  %v9325_v24 = vld [vmem:[#allocation6 + $0xe04] ss:$16 sps:$4 sm:$0xff]   ;;  %v4403_v43 = vadd.f32 %v11261_v8, %v11267_v27  ;;  %v9392_v8 = vld [vmem:[#allocation6 + $0x568] ss:$16 sps:$4 sm:$0xff]  }
 0x2af   :  { %4878 = vmatpush1.bf16.msra.mxu1 %v9287_v44  ;;  %v11263_v32 = vpop.f32.mrf.mxu1  ;;  %v9320_v44 = vld [vmem:[#allocation6 + $0x4e8] ss:$16 sps:$4 sm:$0xff]  }
 0x2b0   :  { %4879 = vmatprep.subr.bf16.mxu1 %v9295_v16 }
 0x2b1   :  { %4971 = vmatpush2.bf16.msra.mxu0 %v9290_v22  ;;  %v4408_v19 = vpop.f32.mrf.mxu1  ;;  %v9328_v22 = vld [vmem:[#allocation6 + $0x4cc] ss:$16 sps:$4 sm:$0xff]  }
 0x2b2   :  { %4772 = vmatmul.mubr.bf16.gmra.mxu1 %v11240_v25  ;;  %4972 = vmatprep.subr.bf16.mxu0 %v9298_v38  ;;  %v11271_v5 = vadd.f32 %v4408_v19, %v11267_v27  ;;  %v9323_v38 = vld [vmem:[#allocation6 + $0xe00] ss:$16 sps:$4 sm:$0xff]   ;;  %v9326_v19 = vld [vmem:[#allocation6 + $0x4c8] ss:$16 sps:$4 sm:$0xff]  }
 0x2b3   :  { %4781 = vmatprep.mubr.bf16.mxu1 %v11033_v1  ;;  %4880 = vmatpush1.bf16.msra.mxu1 %v9293_v13  ;;  %v11274_v57 = vpop.f32.mrf.mxu1  ;;  %v12062_v13 = vmov 0  }
 0x2b4   :  { %4881 = vmatprep.subr.bf16.mxu1 %v9301_v56 }
 0x2b5   :  { %4973 = vmatpush2.bf16.msra.mxu0 %v9296_v41  ;;  %v4412_v7 = vpop.f32.mrf.mxu1  ;;  %v9331_v41 = vld [vmem:[#allocation6 + $0x2ec] ss:$16 sps:$4 sm:$0xff]  }
 0x2b6   :  { %4974 = vmatprep.subr.bf16.mxu0 %v9304_v62  ;;  %v11277_v14 = vadd.f32 %v4412_v7, %v11267_v27  ;;  %v9337_v7 = vld [vmem:[#allocation6 + $0x2cc] ss:$16 sps:$4 sm:$0xff]  }
 0x2b7   :  { %4882 = vmatpush1.bf16.msra.mxu1 %v9299_v9  ;;  %v11281_v21 = vpop.f32.mrf.mxu1  ;;  %v9334_v9 = vld [vmem:[#allocation6 + $0x4ac] ss:$16 sps:$4 sm:$0xff]  }
 0x2b8   :  { %4883 = vmatprep.subr.bf16.mxu1 %v9307_v2  ;;  %v9329_v2 = vld [vmem:[#allocation6 + $0x2e8] ss:$16 sps:$4 sm:$0xff]  }
 0x2b9   :  { %4975 = vmatpush2.bf16.msra.mxu0 %v9302_v58 }
 0x2ba   :  { %4782 = vmatmul.mubr.bf16.gmra.mxu1 %v11021_v28  ;;  %4976 = vmatprep.subr.bf16.mxu0 %v9310_v15 }
 0x2bb   :  { %4791 = vmatprep.mubr.bf16.mxu1 %v11070_v60  ;;  %4884 = vmatpush1.bf16.msra.mxu1 %v9305_v0 }
 0x2bc   :  { %4885 = vmatprep.subr.bf16.mxu1 %v9313_v3  ;;  %v9340_v3 = vld [vmem:[#allocation6 + $0x48c] ss:$16 sps:$4 sm:$0xff]  }
 0x2bd   :  { %4977 = vmatpush2.bf16.msra.mxu0 %v9308_v6 }
 0x2be   :  { %4978 = vmatprep.subr.bf16.mxu0 %v9316_v20  ;;  %v9335_v20 = vld [vmem:[#allocation6 + $0x2c8] ss:$16 sps:$4 sm:$0xff]  }
 0x2bf   :  { %4886 = vmatpush1.bf16.msra.mxu1 %v9311_v30 }
 0x2c0   :  { %4887 = vmatprep.subr.bf16.mxu1 %v9319_v54  ;;  %v9343_v54 = vld [vmem:[#allocation6 + $0x2ac] ss:$16 sps:$4 sm:$0xff]  }
 0x2c1   :  { %4979 = vmatpush2.bf16.msra.mxu0 %v9314_v51  ;;  %v9338_v51 = vld [vmem:[#allocation6 + $0x488] ss:$16 sps:$4 sm:$0xff]  }
 0x2c2   :  { %4792 = vmatmul.mubr.bf16.gmra.mxu1 %v11063_v4  ;;  %5094 = vmatprep.subr.bf16.mxu0 %v9322_v36 }
 0x2c3   :  { %4888 = vmatpush1.bf16.msra.mxu1 %v9317_v34  ;;  %4907 = vmatprep.mubr.bf16.mxu1 %v12062_v13 }
 0x2c4   :  { %v11284_v16 = vpop.f32.mrf.mxu1  ;;  %4981 = vmatmul.mubr.bf16.vlgmr.msra.gmra.mxu0 %v12132_v59  ;;  %4889 = vmatprep.subr.bf16.mxu1 %v9325_v24  ;;  %v9332_v59 = vld [vmem:[#allocation6 + $0x4a8] ss:$16 sps:$4 sm:$0xff]   ;;  %v11295_v15 = vpop.f32.mrf.mxu0  ;;  %v9346_v24 = vld [vmem:[#allocation6 + $0x46c] ss:$16 sps:$4 sm:$0xff]  }
 0x2c5   :  { %4990 = vmatprep.mubr.bf16.mxu0 %v11021_v28  ;;  %5095 = vmatpush1.bf16.msra.mxu0 %v9320_v44 }
 0x2c6   :  { %v11288_v56 = vpop.f32.mrf.mxu1  ;;  %5096 = vmatprep.subr.bf16.mxu0 %v9328_v22  ;;  %v11306_v36 = vpop.f32.mrf.mxu0  ;;  %v9341_v22 = vld [vmem:[#allocation6 + $0x2a8] ss:$16 sps:$4 sm:$0xff]  }
 0x2c7   :  { %4890 = vmatpush1.bf16.msra.mxu1 %v9323_v38  ;;  %v9349_v38 = vld [vmem:[#allocation6 + $0x28c] ss:$16 sps:$4 sm:$0xff]  }
 0x2c8   :  { %v11291_v62 = vpop.f32.mrf.mxu1  ;;  %5021 = vmatprep.subr.bf16.mxu1 %v9331_v41  ;;  %v9344_v41 = vld [vmem:[#allocation6 + $0x468] ss:$16 sps:$4 sm:$0xff]  }
 0x2c9   :  { %5097 = vmatpush1.bf16.msra.mxu0 %v9326_v19  ;;  %v11311_v19 = vpop.f32.mrf.mxu0 }
 0x2ca   :  { %v11293_v58 = vpop.f32.mrf.mxu1  ;;  %4908 = vmatmul.mubr.bf16.vlgmr.msra.gmra.mxu1 %v11033_v1  ;;  %5098 = vmatprep.subr.bf16.mxu0 %v9334_v9  ;;  %v9352_v9 = vld [vmem:[#allocation6 + $0x44c] ss:$16 sps:$4 sm:$0xff]  }
 0x2cb   :  { %5022 = vmatpush1.bf16.msra.mxu1 %v9329_v2  ;;  %4917 = vmatprep.mubr.bf16.mxu1 %v12062_v13  ;;  %v9347_v2 = vld [vmem:[#allocation6 + $0x288] ss:$16 sps:$4 sm:$0xff]  }
 0x2cc   :  { %v4428_v0 = vpop.f32.mrf.mxu1  ;;  %4991 = vmatmul.mubr.bf16.gmra.mxu0 %v12139_v53  ;;  %5023 = vmatprep.subr.bf16.mxu1 %v9337_v7  ;;  %v9355_v7 = vld [vmem:[#allocation6 + $0x26c] ss:$16 sps:$4 sm:$0xff]  }
 0x2cd   :  { %v11299_v6 = vadd.f32 %v4428_v0, %v11267_v27  ;;  %5000 = vmatprep.mubr.bf16.mxu0 %v11107_v31  ;;  %5099 = vmatpush1.bf16.msra.mxu0 %v9332_v59  ;;  %v9350_v59 = vld [vmem:[#allocation6 + $0x448] ss:$16 sps:$4 sm:$0xff]   ;;  %v11317_v0 = vpop.f32.mrf.mxu0 }
 0x2ce   :  { %v11303_v30 = vpop.f32.mrf.mxu1  ;;  %5100 = vmatprep.subr.bf16.mxu0 %v9340_v3  ;;  %12182 = vst [vmem:[#allocation45_spill] sm:$0xff] %v11317_v0  ;;  %v9358_v3 = vld [vmem:[#allocation6 + $0x42c] ss:$16 sps:$4 sm:$0xff]  }
 0x2cf   :  { %5024 = vmatpush1.bf16.msra.mxu1 %v9335_v20  ;;  %v9353_v20 = vld [vmem:[#allocation6 + $0x268] ss:$16 sps:$4 sm:$0xff]  }
 0x2d0   :  { %v4432_v34 = vpop.f32.mrf.mxu1  ;;  %5025 = vmatprep.subr.bf16.mxu1 %v9343_v54  ;;  %v9361_v54 = vld [vmem:[#allocation6 + $0x24c] ss:$16 sps:$4 sm:$0xff]  }
 0x2d1   :  { %v11309_v44 = vadd.f32 %v4432_v34, %v11267_v27  ;;  %5101 = vmatpush1.bf16.msra.mxu0 %v9338_v51  ;;  %v9356_v51 = vld [vmem:[#allocation6 + $0x428] ss:$16 sps:$4 sm:$0xff]   ;;  %v11319_v34 = vpop.f32.mrf.mxu0 }
 0x2d2   :  { %4918 = vmatmul.mubr.bf16.gmra.mxu1 %v11070_v60  ;;  %5102 = vmatprep.subr.bf16.mxu0 %v9346_v24  ;;  %v9364_v24 = vld [vmem:[#allocation6 + $0x40c] ss:$16 sps:$4 sm:$0xff]  }
 0x2d3   :  { %5026 = vmatpush1.bf16.msra.mxu1 %v9341_v22  ;;  %4927 = vmatprep.mubr.bf16.mxu1 %v12062_v13  ;;  %v9359_v22 = vld [vmem:[#allocation6 + $0x248] ss:$16 sps:$4 sm:$0xff]  }
 0x2d4   :  { %5001 = vmatmul.mubr.bf16.gmra.mxu0 %v12163_v52  ;;  %5027 = vmatprep.subr.bf16.mxu1 %v9349_v38  ;;  %v9367_v38 = vld [vmem:[#allocation6 + $0x22c] ss:$16 sps:$4 sm:$0xff]  }
 0x2d5   :  { %5010 = vmatprep.mubr.bf16.mxu0 %v11136_v55  ;;  %5103 = vmatpush1.bf16.msra.mxu0 %v9344_v41  ;;  %v9362_v41 = vld [vmem:[#allocation6 + $0x408] ss:$16 sps:$4 sm:$0xff]  }
 0x2d6   :  { %5104 = vmatprep.subr.bf16.mxu0 %v9352_v9  ;;  %v11325_v9 = vpop.f32.mrf.mxu0 }
 0x2d7   :  { %5028 = vmatpush1.bf16.msra.mxu1 %v9347_v2  ;;  %v9370_v2 = vld [vmem:[#allocation6 + $0x5ec] ss:$16 sps:$4 sm:$0xff]  }
 0x2d8   :  { %5029 = vmatprep.subr.bf16.mxu1 %v9355_v7  ;;  %v9365_v7 = vld [vmem:[#allocation6 + $0x228] ss:$16 sps:$4 sm:$0xff]  }
 0x2d9   :  { %5105 = vmatpush1.bf16.msra.mxu0 %v9350_v59  ;;  %v9373_v59 = vld [vmem:[#allocation6 + $0x20c] ss:$16 sps:$4 sm:$0xff]  }
 0x2da   :  { %4928 = vmatmul.mubr.bf16.gmra.mxu1 %v11143_v63  ;;  %5106 = vmatprep.subr.bf16.mxu0 %v9358_v3  ;;  %v9368_v3 = vld [vmem:[#allocation6 + $0x5e8] ss:$16 sps:$4 sm:$0xff]  }
 0x2db   :  { %5030 = vmatpush1.bf16.msra.mxu1 %v9353_v20  ;;  %4937 = vmatprep.mubr.bf16.mxu1 %v12062_v13  ;;  %v11327_v20 = vpop.f32.mrf.mxu0  ;;  %v9379_v13 = vld [vmem:[#allocation6 + $0x3ec] ss:$16 sps:$4 sm:$0xff]  }
 0x2dc   :  { %5011 = vmatmul.mubr.bf16.gmra.mxu0 %v12175_v10  ;;  %5031 = vmatprep.subr.bf16.mxu1 %v9361_v54  ;;  %v9376_v54 = vld [vmem:[#allocation6 + $0x5cc] ss:$16 sps:$4 sm:$0xff]  }
 0x2dd   :  { %5107 = vmatpush1.bf16.msra.mxu0 %v9356_v51  ;;  %5126 = vmatprep.mubr.bf16.mxu0 %v11110_v45  ;;  %v9371_v51 = vld [vmem:[#allocation6 + $0x208] ss:$16 sps:$4 sm:$0xff]  }
 0x2de   :  { %5108 = vmatprep.subr.bf16.mxu0 %v9364_v24  ;;  %v9374_v24 = vld [vmem:[#allocation6 + $0x5c8] ss:$16 sps:$4 sm:$0xff]  }
 0x2df   :  { %5032 = vmatpush1.bf16.msra.mxu1 %v9359_v22  ;;  %v11331_v22 = vpop.f32.mrf.mxu0 }
 0x2e0   :  { %5033 = vmatprep.subr.bf16.mxu1 %v9367_v38  ;;  %v9382_v38 = vld [vmem:[#allocation6 + $0x5ac] ss:$16 sps:$4 sm:$0xff]  }
 0x2e1   :  { %5109 = vmatpush1.bf16.msra.mxu0 %v9362_v41  ;;  %v12183_v41 = vld [vmem:[#allocation44_spill] sm:$0xff] }
 0x2e2   :  { %4938 = vmatmul.mubr.bf16.gmra.mxu1 %v11162_v61  ;;  %5110 = vmatprep.subr.bf16.mxu0 %v9370_v2  ;;  %v11335_v37 = vrot.slane %v11259_v29, %v12183_v41  ;;  %v9377_v61 = vld [vmem:[#allocation6 + $0x3e8] ss:$16 sps:$4 sm:$0xff]   ;;  %v11337_v2 = vpop.f32.mrf.mxu1 }
 0x2e3   :  { %5034 = vmatpush1.bf16.msra.mxu1 %v9365_v7  ;;  %5053 = vmatprep.mubr.bf16.mxu1 %v12163_v52  ;;  %v9385_v7 = vld [vmem:[#allocation6 + $0x3cc] ss:$16 sps:$4 sm:$0xff]   ;;  %v4399_v52 = vadd.f32 %v11254_v49, %v11267_v27 }
 0x2e4   :  { %5035 = vmatprep.subr.bf16.mxu1 %v9373_v59  ;;  %v9380_v59 = vld [vmem:[#allocation6 + $0x5a8] ss:$16 sps:$4 sm:$0xff]   ;;  %v4401_v29 = vadd.f32 %v11257_v12, %v11335_v37  ;;  %v9394_v12 = vld [vmem:[#allocation6 + $0x56c] ss:$16 sps:$4 sm:$0xff]  }
 0x2e5   :  { %5111 = vmatpush2.bf16.msra.mxu0 %v9368_v3  ;;  %v11341_v3 = vpop.f32.mrf.mxu0 }
 0x2e6   :  { %5112 = vmatprep.subr.bf16.mxu0 %v9376_v54  ;;  %v9388_v54 = vld [vmem:[#allocation6 + $0x58c] ss:$16 sps:$4 sm:$0xff]  }
 0x2e7   :  { %5036 = vmatpush1.bf16.msra.mxu1 %v9371_v51  ;;  %v9383_v51 = vld [vmem:[#allocation6 + $0x3c8] ss:$16 sps:$4 sm:$0xff]  }
 0x2e8   :  { %5037 = vmatprep.subr.bf16.mxu1 %v9379_v13  ;;  %v9391_v13 = vld [vmem:[#allocation6 + $0x3ac] ss:$16 sps:$4 sm:$0xff]  }
 0x2e9   :  { %5113 = vmatpush2.bf16.msra.mxu0 %v9374_v24  ;;  %v9386_v24 = vld [vmem:[#allocation6 + $0x588] ss:$16 sps:$4 sm:$0xff]  }
 0x2ea   :  { %v4471_v17 = vpop.f32.mrf.mxu1  ;;  %5114 = vmatprep.subr.bf16.mxu0 %v9382_v38  ;;  %v11350_v38 = vpop.f32.mrf.mxu0 }
 0x2eb   :  { %v4472_v41 = vadd.f32 %v4471_v17, %v4399_v52  ;;  %5038 = vmatpush2.bf16.msra.mxu1 %v9377_v61  ;;  %v9389_v61 = vld [vmem:[#allocation6 + $0x3a8] ss:$16 sps:$4 sm:$0xff]  }
 0x2ec   :  { %v4473_v60 = vpop.f32.mrf.mxu1  ;;  %5039 = vmatprep.subr.bf16.mxu1 %v9385_v7 }
 0x2ed   :  { %v4474_v49 = vadd.f32 %v4473_v60, %v4401_v29  ;;  %5115 = vmatpush2.bf16.msra.mxu0 %v9380_v59  ;;  %v11348_v4 = vadd.f32 %v11295_v15, %v4472_v41  ;;  %v9397_v60 = vld [vmem:[#allocation6 + $0x38c] ss:$16 sps:$4 sm:$0xff]   ;;  %v4568_v41 = vpop.f32.mrf.mxu0 }
 0x2ee   :  { %v4475_v0 = vpop.f32.mrf.mxu1  ;;  %5116 = vmatprep.subr.bf16.mxu0 %v9388_v54  ;;  %v9400_v54 = vld [vmem:[#allocation6 + $0x54c] ss:$16 sps:$4 sm:$0xff]  }
 0x2ef   :  { %v4476_v17 = vadd.f32 %v4475_v0, %v4403_v43  ;;  %5040 = vmatpush2.bf16.msra.mxu1 %v9383_v51  ;;  %v11353_v7 = vadd.f32 %v11306_v36, %v4474_v49  ;;  %v4411_v43 = vadd.f32 %v11274_v57, %v11335_v37  ;;  %v9395_v36 = vld [vmem:[#allocation6 + $0x388] ss:$16 sps:$4 sm:$0xff]   ;;  %v9403_v51 = vld [vmem:[#allocation6 + $0x36c] ss:$16 sps:$4 sm:$0xff]  }
 0x2f0   :  { %v11355_v52 = vpop.f32.mrf.mxu1  ;;  %5041 = vmatprep.subr.bf16.mxu1 %v9391_v13  ;;  %v9398_v49 = vld [vmem:[#allocation6 + $0x548] ss:$16 sps:$4 sm:$0xff]  }
 0x2f1   :  { %12184 = vst [vmem:[#allocation35_spill] sm:$0xff] %v11355_v52  ;;  %5117 = vmatpush2.bf16.msra.mxu0 %v9386_v24  ;;  %v11358_v15 = vadd.f32 %v11311_v19, %v4476_v17  ;;  %v11366_v24 = vpop.f32.mrf.mxu0  ;;  %v9406_v17 = vld [vmem:[#allocation6 + $0x52c] ss:$16 sps:$4 sm:$0xff]  }
 0x2f2   :  { %v4481_v59 = vpop.f32.mrf.mxu1  ;;  %5118 = vmatprep.subr.bf16.mxu0 %v9394_v12  ;;  %v9418_v52 = vld [vmem:[#allocation6 + $0x8ec] ss:$16 sps:$4 sm:$0xff]  }
 0x2f3   :  { %v4482_v0 = vadd.f32 %v4481_v59, %v11271_v5  ;;  %5042 = vmatpush2.bf16.msra.mxu1 %v9389_v61  ;;  %v9401_v5 = vld [vmem:[#allocation6 + $0x368] ss:$16 sps:$4 sm:$0xff]  }
 0x2f4   :  { %v4483_v29 = vpop.f32.mrf.mxu1  ;;  %5043 = vmatprep.subr.bf16.mxu1 %v9397_v60  ;;  %v9404_v59 = vld [vmem:[#allocation6 + $0x528] ss:$16 sps:$4 sm:$0xff]  }
 0x2f5   :  { %v4484_v13 = vadd.f32 %v4483_v29, %v4411_v43  ;;  %5119 = vmatpush2.bf16.msra.mxu0 %v9392_v8  ;;  %v11364_v19 = vadd.f32 %v11319_v34, %v4482_v0  ;;  %v9409_v8 = vld [vmem:[#allocation6 + $0x34c] ss:$16 sps:$4 sm:$0xff]   ;;  %v4419_v34 = vadd.f32 %v11284_v16, %v11267_v27  ;;  %v9407_v29 = vld [vmem:[#allocation6 + $0x348] ss:$16 sps:$4 sm:$0xff]   ;;  %v4423_v16 = vadd.f32 %v11291_v62, %v11267_v27 }
 0x2f6   :  { %v4485_v12 = vpop.f32.mrf.mxu1  ;;  %5120 = vmatprep.subr.bf16.mxu0 %v9400_v54  ;;  %v4574_v54 = vpop.f32.mrf.mxu0  ;;  %v9421_v27 = vld [vmem:[#allocation6 + $0x30c] ss:$16 sps:$4 sm:$0xff]   ;;  %v9416_v62 = vld [vmem:[#allocation6 + $0x8e8] ss:$16 sps:$4 sm:$0xff]  }
 0x2f7   :  { %v4486_v57 = vadd.f32 %v4485_v12, %v11277_v14  ;;  %5044 = vmatpush2.bf16.msra.mxu1 %v9395_v36  ;;  %v11370_v61 = vadd.f32 %v11325_v9, %v4484_v13  ;;  %v9412_v14 = vld [vmem:[#allocation6 + $0x50c] ss:$16 sps:$4 sm:$0xff]   ;;  %v4421_v9 = vadd.f32 %v11288_v56, %v11335_v37 }
 0x2f8   :  { %v11372_v60 = vpop.f32.mrf.mxu1  ;;  %5045 = vmatprep.subr.bf16.mxu1 %v9403_v51  ;;  %v9415_v13 = vld [vmem:[#allocation6 + $0x32c] ss:$16 sps:$4 sm:$0xff]  }
 0x2f9   :  { %5121 = vmatpush2.bf16.msra.mxu0 %v9398_v49  ;;  %v11377_v43 = vadd.f32 %v11327_v20, %v4486_v57  ;;  %v9410_v20 = vld [vmem:[#allocation6 + $0x508] ss:$16 sps:$4 sm:$0xff]  }
 0x2fa   :  { %v4491_v0 = vpop.f32.mrf.mxu1  ;;  %5122 = vmatprep.subr.bf16.mxu0 %v9406_v17  ;;  %v4576_v17 = vpop.f32.mrf.mxu0 }
 0x2fb   :  { %v4492_v36 = vadd.f32 %v4491_v0, %v4419_v34  ;;  %5046 = vmatpush2.bf16.msra.mxu1 %v9401_v5  ;;  %v9413_v5 = vld [vmem:[#allocation6 + $0x328] ss:$16 sps:$4 sm:$0xff]  }
 0x2fc   :  { %v4493_v51 = vpop.f32.mrf.mxu1  ;;  %5047 = vmatprep.subr.bf16.mxu1 %v9409_v8 }
 0x2fd   :  { %v4494_v49 = vadd.f32 %v4493_v51, %v4421_v9  ;;  %5123 = vmatpush2.bf16.msra.mxu0 %v9404_v59  ;;  %v11384_v12 = vadd.f32 %v11341_v3, %v4492_v36  ;;  %v4578_v3 = vpop.f32.mrf.mxu0  ;;  %v9424_v9 = vld [vmem:[#allocation6 + $0x8cc] ss:$16 sps:$4 sm:$0xff]  }
 0x2fe   :  { %v4495_v57 = vpop.f32.mrf.mxu1  ;;  %5124 = vmatprep.subr.bf16.mxu0 %v9412_v14  ;;  %v4431_v14 = vadd.f32 %v11303_v30, %v11335_v37  ;;  %v9427_v51 = vld [vmem:[#allocation6 + $0x6ec] ss:$16 sps:$4 sm:$0xff]  }
 0x2ff   :  { %v4496_v56 = vadd.f32 %v4495_v57, %v4423_v16  ;;  %5048 = vmatpush2.bf16.msra.mxu1 %v9407_v29  ;;  %v11387_v34 = vadd.f32 %v11350_v38, %v4494_v49  ;;  %v9419_v38 = vld [vmem:[#allocation6 + $0x308] ss:$16 sps:$4 sm:$0xff]   ;;  %v9430_v30 = vld [vmem:[#allocation6 + $0x8ac] ss:$16 sps:$4 sm:$0xff]  }
 0x300   :  { %v11389_v8 = vpop.f32.mrf.mxu1  ;;  %5049 = vmatprep.subr.bf16.mxu1 %v9415_v13 }
 0x301   :  { %5125 = vmatpush2.bf16.msra.mxu0 %v9410_v20  ;;  %v11391_v59 = vadd.f32 %v4568_v41, %v4496_v56  ;;  %v9422_v41 = vld [vmem:[#allocation6 + $0x8c8] ss:$16 sps:$4 sm:$0xff]   ;;  %v9433_v56 = vld [vmem:[#allocation6 + $0x6cc] ss:$16 sps:$4 sm:$0xff]  }
 0x302   :  { %v4501_v0 = vpop.f32.mrf.mxu1  ;;  %5240 = vmatprep.subr.bf16.mxu0 %v9418_v52  ;;  %v11400_v52 = vpop.f32.mrf.mxu0  ;;  %v9425_v20 = vld [vmem:[#allocation6 + $0x6e8] ss:$16 sps:$4 sm:$0xff]  }
 0x303   :  { %v4502_v36 = vadd.f32 %v4501_v0, %v11299_v6  ;;  %5050 = vmatpush2.bf16.msra.mxu1 %v9413_v5  ;;  %v9428_v5 = vld [vmem:[#allocation6 + $0x8a8] ss:$16 sps:$4 sm:$0xff]  }
 0x304   :  { %v4503_v29 = vpop.f32.mrf.mxu1  ;;  %5127 = vmatmul.mubr.bf16.vlgmr.msra.gmra.mxu0 %v11107_v31  ;;  %5051 = vmatprep.subr.bf16.mxu1 %v9421_v27  ;;  %v11405_v31 = vpop.f32.mrf.mxu0  ;;  %v9434_v0 = vld [vmem:[#allocation6 + $0x888] ss:$16 sps:$4 sm:$0xff]  }
 0x305   :  { %v4504_v13 = vadd.f32 %v4503_v29, %v4431_v14  ;;  %5136 = vmatprep.mubr.bf16.mxu0 %v11143_v63  ;;  %5241 = vmatpush1.bf16.msra.mxu0 %v9416_v62  ;;  %v11398_v16 = vadd.f32 %v4574_v54, %v4502_v36  ;;  %v9436_v54 = vld [vmem:[#allocation6 + $0x88c] ss:$16 sps:$4 sm:$0xff]   ;;  %v9440_v36 = vld [vmem:[#allocation6 + $0x868] ss:$16 sps:$4 sm:$0xff]  }
 0x306   :  { %v4505_v49 = vpop.f32.mrf.mxu1  ;;  %5242 = vmatprep.subr.bf16.mxu0 %v9424_v9  ;;  %v11411_v62 = vpop.f32.mrf.mxu0  ;;  %v9445_v14 = vld [vmem:[#allocation6 + $0x68c] ss:$16 sps:$4 sm:$0xff]   ;;  %v9443_v29 = vld [vmem:[#allocation6 + $0x688] ss:$16 sps:$4 sm:$0xff]  }
 0x307   :  { %v4506_v6 = vadd.f32 %v4505_v49, %v11309_v44  ;;  %5052 = vmatpush2.bf16.msra.mxu1 %v9419_v38  ;;  %v11403_v57 = vadd.f32 %v4576_v17, %v4504_v13  ;;  %v9431_v44 = vld [vmem:[#allocation6 + $0x6c8] ss:$16 sps:$4 sm:$0xff]   ;;  %v9439_v17 = vld [vmem:[#allocation6 + $0x6ac] ss:$16 sps:$4 sm:$0xff]  }
 0x308   :  { %5167 = vmatprep.subr.bf16.mxu1 %v9427_v51  ;;  %v11415_v9 = vpop.f32.mrf.mxu0  ;;  %v9448_v38 = vld [vmem:[#allocation6 + $0x84c] ss:$16 sps:$4 sm:$0xff]  }
 0x309   :  { %5243 = vmatpush1.bf16.msra.mxu0 %v9422_v41  ;;  %v11407_v27 = vadd.f32 %v4578_v3, %v4506_v6  ;;  %v9442_v3 = vld [vmem:[#allocation6 + $0x86c] ss:$16 sps:$4 sm:$0xff]   ;;  %v9446_v41 = vld [vmem:[#allocation6 + $0x848] ss:$16 sps:$4 sm:$0xff]  }
 0x30a   :  { %5054 = vmatmul.mubr.bf16.vlgmr.msra.gmra.mxu1 %v10985_v39  ;;  %5244 = vmatprep.subr.bf16.mxu0 %v9430_v30  ;;  %v9437_v39 = vld [vmem:[#allocation6 + $0x6a8] ss:$16 sps:$4 sm:$0xff]   ;;  %v11419_v51 = vpop.f32.mrf.mxu0  ;;  %v9451_v13 = vld [vmem:[#allocation6 + $0x66c] ss:$16 sps:$4 sm:$0xff]  }
 0x30b   :  { %5063 = vmatprep.mubr.bf16.mxu1 %v12175_v10  ;;  %5168 = vmatpush1.bf16.msra.mxu1 %v9425_v20  ;;  %v9454_v49 = vld [vmem:[#allocation6 + $0x82c] ss:$16 sps:$4 sm:$0xff]   ;;  %v9449_v30 = vld [vmem:[#allocation6 + $0x668] ss:$16 sps:$4 sm:$0xff]  }
 0x30c   :  { %5137 = vmatmul.mubr.bf16.gmra.mxu0 %v11136_v55  ;;  %5169 = vmatprep.subr.bf16.mxu1 %v9433_v56  ;;  %v11423_v6 = vpop.f32.mrf.mxu0  ;;  %v9457_v20 = vld [vmem:[#allocation6 + $0x64c] ss:$16 sps:$4 sm:$0xff]   ;;  %v9452_v56 = vld [vmem:[#allocation6 + $0x828] ss:$16 sps:$4 sm:$0xff]  }
 0x30d   :  { %5146 = vmatprep.mubr.bf16.mxu0 %v11156_v47  ;;  %5245 = vmatpush1.bf16.msra.mxu0 %v9428_v5  ;;  %v9460_v5 = vld [vmem:[#allocation6 + $0x80c] ss:$16 sps:$4 sm:$0xff]  }
 0x30e   :  { %5246 = vmatprep.subr.bf16.mxu0 %v9436_v54  ;;  %v9455_v54 = vld [vmem:[#allocation6 + $0x648] ss:$16 sps:$4 sm:$0xff]  }
 0x30f   :  { %5170 = vmatpush1.bf16.msra.mxu1 %v9431_v44  ;;  %v11427_v44 = vpop.f32.mrf.mxu0 }
 0x310   :  { %5171 = vmatprep.subr.bf16.mxu1 %v9439_v17  ;;  %v9463_v17 = vld [vmem:[#allocation6 + $0x62c] ss:$16 sps:$4 sm:$0xff]  }
 0x311   :  { %5247 = vmatpush1.bf16.msra.mxu0 %v9434_v0  ;;  %v9458_v0 = vld [vmem:[#allocation6 + $0x808] ss:$16 sps:$4 sm:$0xff]  }
 0x312   :  { %5064 = vmatmul.mubr.bf16.gmra.mxu1 %v11033_v1  ;;  %5248 = vmatprep.subr.bf16.mxu0 %v9442_v3  ;;  %v9466_v3 = vld [vmem:[#allocation6 + $0x9ec] ss:$16 sps:$4 sm:$0xff]  }
 0x313   :  { %5073 = vmatprep.mubr.bf16.mxu1 %v11194_v26  ;;  %5172 = vmatpush1.bf16.msra.mxu1 %v9437_v39  ;;  %v11431_v39 = vpop.f32.mrf.mxu0 }
 0x314   :  { %5147 = vmatmul.mubr.bf16.gmra.mxu0 %v11168_v23  ;;  %5173 = vmatprep.subr.bf16.mxu1 %v9445_v14  ;;  %v9469_v14 = vld [vmem:[#allocation6 + $0x60c] ss:$16 sps:$4 sm:$0xff]  }
 0x315   :  { %5156 = vmatprep.mubr.bf16.mxu0 %v11172_v18  ;;  %5249 = vmatpush1.bf16.msra.mxu0 %v9440_v36  ;;  %v9464_v36 = vld [vmem:[#allocation6 + $0x9e8] ss:$16 sps:$4 sm:$0xff]  }
 0x316   :  { %5250 = vmatprep.subr.bf16.mxu0 %v9448_v38  ;;  %v9472_v38 = vld [vmem:[#allocation6 + $0x9cc] ss:$16 sps:$4 sm:$0xff]  }
 0x317   :  { %5174 = vmatpush1.bf16.msra.mxu1 %v9443_v29  ;;  %v9467_v29 = vld [vmem:[#allocation6 + $0x608] ss:$16 sps:$4 sm:$0xff]  }
 0x318   :  { %5175 = vmatprep.subr.bf16.mxu1 %v9451_v13  ;;  %v11435_v13 = vpop.f32.mrf.mxu0 }
 0x319   :  { %5251 = vmatpush1.bf16.msra.mxu0 %v9446_v41  ;;  %v9475_v41 = vld [vmem:[#allocation6 + $0x7ec] ss:$16 sps:$4 sm:$0xff]  }
 0x31a   :  { %5074 = vmatmul.mubr.bf16.gmra.mxu1 %v11110_v45  ;;  %5252 = vmatprep.subr.bf16.mxu0 %v9454_v49  ;;  %v9461_v45 = vld [vmem:[#allocation6 + $0x628] ss:$16 sps:$4 sm:$0xff]  }
 0x31b   :  { %5083 = vmatprep.mubr.bf16.mxu1 %v11200_v42  ;;  %5176 = vmatpush1.bf16.msra.mxu1 %v9449_v30  ;;  %v9470_v49 = vld [vmem:[#allocation6 + $0x9c8] ss:$16 sps:$4 sm:$0xff]   ;;  %v9478_v30 = vld [vmem:[#allocation6 + $0x9ac] ss:$16 sps:$4 sm:$0xff]  }
 0x31c   :  { %5157 = vmatmul.mubr.bf16.gmra.mxu0 %v11179_v40  ;;  %5177 = vmatprep.subr.bf16.mxu1 %v9457_v20  ;;  %v9473_v20 = vld [vmem:[#allocation6 + $0x7e8] ss:$16 sps:$4 sm:$0xff]  }
 0x31d   :  { %5253 = vmatpush1.bf16.msra.mxu0 %v9452_v56  ;;  %5272 = vmatprep.mubr.bf16.mxu0 %v11185_v46  ;;  %v11437_v56 = vpop.f32.mrf.mxu1 }
 0x31e   :  { %5254 = vmatprep.subr.bf16.mxu0 %v9460_v5  ;;  %v11439_v5 = vpop.f32.mrf.mxu0 }
 0x31f   :  { %5178 = vmatpush1.bf16.msra.mxu1 %v9455_v54  ;;  %v9481_v54 = vld [vmem:[#allocation6 + $0x7cc] ss:$16 sps:$4 sm:$0xff]  }
 0x320   :  { %5179 = vmatprep.subr.bf16.mxu1 %v9463_v17  ;;  %v9476_v17 = vld [vmem:[#allocation6 + $0x9a8] ss:$16 sps:$4 sm:$0xff]  }
 0x321   :  { %5255 = vmatpush1.bf16.msra.mxu0 %v9458_v0  ;;  %v9484_v0 = vld [vmem:[#allocation6 + $0x98c] ss:$16 sps:$4 sm:$0xff]  }
 0x322   :  { %5084 = vmatmul.mubr.bf16.gmra.mxu1 %v11143_v63  ;;  %5256 = vmatprep.subr.bf16.mxu0 %v9466_v3  ;;  %v9482_v63 = vld [vmem:[#allocation6 + $0x988] ss:$16 sps:$4 sm:$0xff]  }
 0x323   :  { %5180 = vmatpush1.bf16.msra.mxu1 %v9461_v45  ;;  %5199 = vmatprep.mubr.bf16.mxu1 %v11168_v23  ;;  %v9479_v45 = vld [vmem:[#allocation6 + $0x7c8] ss:$16 sps:$4 sm:$0xff]  }
 0x324   :  { %5181 = vmatprep.subr.bf16.mxu1 %v9469_v14  ;;  %v11442_v14 = vpop.f32.mrf.mxu0 }
 0x325   :  { %5257 = vmatpush2.bf16.msra.mxu0 %v9464_v36 }
 0x326   :  { %5258 = vmatprep.subr.bf16.mxu0 %v9472_v38  ;;  %v9487_v38 = vld [vmem:[#allocation6 + $0x7ac] ss:$16 sps:$4 sm:$0xff]  }
 0x327   :  { %5182 = vmatpush1.bf16.msra.mxu1 %v9467_v29 }
 0x328   :  { %5183 = vmatprep.subr.bf16.mxu1 %v9475_v41 }
 0x329   :  { %5259 = vmatpush2.bf16.msra.mxu0 %v9470_v49 }
 0x32a   :  { %v4617_v23 = vpop.f32.mrf.mxu1  ;;  %5260 = vmatprep.subr.bf16.mxu0 %v9478_v30  ;;  %v9490_v30 = vld [vmem:[#allocation6 + $0x96c] ss:$16 sps:$4 sm:$0xff]  }
 0x32b   :  { %v4618_v3 = vadd.f32 %v4617_v23, %v11348_v4  ;;  %5184 = vmatpush2.bf16.msra.mxu1 %v9473_v20  ;;  %v9485_v4 = vld [vmem:[#allocation6 + $0x7a8] ss:$16 sps:$4 sm:$0xff]   ;;  %v4714_v23 = vpop.f32.mrf.mxu0 }
 0x32c   :  { %v4619_v36 = vpop.f32.mrf.mxu1  ;;  %5185 = vmatprep.subr.bf16.mxu1 %v9481_v54 }
 0x32d   :  { %v4620_v29 = vadd.f32 %v4619_v36, %v11353_v7  ;;  %5261 = vmatpush2.bf16.msra.mxu0 %v9476_v17  ;;  %v11446_v41 = vadd.f32 %v11405_v31, %v4618_v3  ;;  %v9493_v7 = vld [vmem:[#allocation6 + $0x78c] ss:$16 sps:$4 sm:$0xff]   ;;  %v9488_v17 = vld [vmem:[#allocation6 + $0x968] ss:$16 sps:$4 sm:$0xff]   ;;  %v11458_v36 = vpop.f32.mrf.mxu0 }
 0x32e   :  { %v4621_v49 = vpop.f32.mrf.mxu1  ;;  %5262 = vmatprep.subr.bf16.mxu0 %v9484_v0  ;;  %v9496_v0 = vld [vmem:[#allocation6 + $0x94c] ss:$16 sps:$4 sm:$0xff]  }
 0x32f   :  { %v4622_v10 = vadd.f32 %v4621_v49, %v11358_v15  ;;  %5186 = vmatpush2.bf16.msra.mxu1 %v9479_v45  ;;  %v11450_v20 = vadd.f32 %v11411_v62, %v4620_v29  ;;  %v9491_v45 = vld [vmem:[#allocation6 + $0x788] ss:$16 sps:$4 sm:$0xff]   ;;  %v9499_v29 = vld [vmem:[#allocation6 + $0x76c] ss:$16 sps:$4 sm:$0xff]  }
 0x330   :  { %v11452_v54 = vpop.f32.mrf.mxu1  ;;  %5187 = vmatprep.subr.bf16.mxu1 %v9487_v38 }
 0x331   :  { %5263 = vmatpush2.bf16.msra.mxu0 %v9482_v63  ;;  %v11455_v31 = vadd.f32 %v11415_v9, %v4622_v10  ;;  %v9494_v63 = vld [vmem:[#allocation6 + $0x948] ss:$16 sps:$4 sm:$0xff]   ;;  %v9502_v9 = vld [vmem:[#allocation6 + $0x92c] ss:$16 sps:$4 sm:$0xff]  }
 0x332   :  { %v4627_v3 = vpop.f32.mrf.mxu1  ;;  %5264 = vmatprep.subr.bf16.mxu0 %v9490_v30 }
 0x333   :  { %v4628_v15 = vadd.f32 %v4627_v3, %v11364_v19  ;;  %5188 = vmatpush2.bf16.msra.mxu1 %v9485_v4  ;;  %v9497_v19 = vld [vmem:[#allocation6 + $0x768] ss:$16 sps:$4 sm:$0xff]   ;;  %v4720_v3 = vpop.f32.mrf.mxu0 }
 0x334   :  { %v4629_v62 = vpop.f32.mrf.mxu1  ;;  %5189 = vmatprep.subr.bf16.mxu1 %v9493_v7 }
 0x335   :  { %v4630_v38 = vadd.f32 %v4629_v62, %v11370_v61  ;;  %5265 = vmatpush2.bf16.msra.mxu0 %v9488_v17  ;;  %v11462_v49 = vadd.f32 %v11423_v6, %v4628_v15  ;;  %v9505_v61 = vld [vmem:[#allocation6 + $0x74c] ss:$16 sps:$4 sm:$0xff]   ;;  %v9500_v17 = vld [vmem:[#allocation6 + $0x928] ss:$16 sps:$4 sm:$0xff]   ;;  %v4722_v62 = vpop.f32.mrf.mxu0 }
 0x336   :  { %v4631_v10 = vpop.f32.mrf.mxu1  ;;  %5266 = vmatprep.subr.bf16.mxu0 %v9496_v0  ;;  %v9508_v0 = vld [vmem:[#allocation6 + $0x90c] ss:$16 sps:$4 sm:$0xff]  }
 0x337   :  { %v4632_v30 = vadd.f32 %v4631_v10, %v11377_v43  ;;  %5190 = vmatpush2.bf16.msra.mxu1 %v9491_v45  ;;  %v11466_v4 = vadd.f32 %v11427_v44, %v4630_v38  ;;  %v9503_v45 = vld [vmem:[#allocation6 + $0x748] ss:$16 sps:$4 sm:$0xff]   ;;  %v9511_v38 = vld [vmem:[#allocation6 + $0x72c] ss:$16 sps:$4 sm:$0xff]  }
 0x338   :  { %v11468_v7 = vpop.f32.mrf.mxu1  ;;  %5191 = vmatprep.subr.bf16.mxu1 %v9499_v29  ;;  %v9506_v29 = vld [vmem:[#allocation6 + $0x908] ss:$16 sps:$4 sm:$0xff]  }
 0x339   :  { %5267 = vmatpush2.bf16.msra.mxu0 %v9494_v63  ;;  %v11471_v6 = vadd.f32 %v11431_v39, %v4632_v30  ;;  %v9514_v30 = vld [vmem:[#allocation6 + $0xcec] ss:$16 sps:$4 sm:$0xff]  }
 0x33a   :  { %v4637_v15 = vpop.f32.mrf.mxu1  ;;  %5268 = vmatprep.subr.bf16.mxu0 %v9502_v9 }
 0x33b   :  { %v4638_v43 = vadd.f32 %v4637_v15, %v11384_v12  ;;  %5192 = vmatpush2.bf16.msra.mxu1 %v9497_v19  ;;  %v9509_v12 = vld [vmem:[#allocation6 + $0x728] ss:$16 sps:$4 sm:$0xff]   ;;  %v4724_v15 = vpop.f32.mrf.mxu0 }
 0x33c   :  { %v4639_v44 = vpop.f32.mrf.mxu1  ;;  %5193 = vmatprep.subr.bf16.mxu1 %v9505_v61 }
 0x33d   :  { %v4640_v10 = vadd.f32 %v4639_v44, %v11387_v34  ;;  %5269 = vmatpush2.bf16.msra.mxu0 %v9500_v17  ;;  %v11476_v63 = vadd.f32 %v11439_v5, %v4638_v43  ;;  %v9517_v34 = vld [vmem:[#allocation6 + $0x70c] ss:$16 sps:$4 sm:$0xff]   ;;  %v9512_v17 = vld [vmem:[#allocation6 + $0xce8] ss:$16 sps:$4 sm:$0xff]  }
 0x33e   :  { %v4641_v39 = vpop.f32.mrf.mxu1  ;;  %5270 = vmatprep.subr.bf16.mxu0 %v9508_v0  ;;  %v9520_v0 = vld [vmem:[#allocation6 + $0xccc] ss:$16 sps:$4 sm:$0xff]  }
 0x33f   :  { %v4642_v9 = vadd.f32 %v4641_v39, %v11391_v59  ;;  %5194 = vmatpush2.bf16.msra.mxu1 %v9503_v45  ;;  %v11480_v19 = vadd.f32 %v11442_v14, %v4640_v10  ;;  %v9515_v59 = vld [vmem:[#allocation6 + $0x708] ss:$16 sps:$4 sm:$0xff]   ;;  %v11487_v45 = vpop.f32.mrf.mxu0  ;;  %v9523_v10 = vld [vmem:[#allocation6 + $0xaec] ss:$16 sps:$4 sm:$0xff]  }
 0x340   :  { %v11482_v61 = vpop.f32.mrf.mxu1  ;;  %5195 = vmatprep.subr.bf16.mxu1 %v9511_v38 }
 0x341   :  { %5271 = vmatpush2.bf16.msra.mxu0 %v9506_v29  ;;  %v11484_v44 = vadd.f32 %v4714_v23, %v4642_v9  ;;  %v9518_v23 = vld [vmem:[#allocation6 + $0xcc8] ss:$16 sps:$4 sm:$0xff]  }
 0x342   :  { %v4647_v5 = vpop.f32.mrf.mxu1  ;;  %5386 = vmatprep.subr.bf16.mxu0 %v9514_v30  ;;  %v9526_v30 = vld [vmem:[#allocation6 + $0xcac] ss:$16 sps:$4 sm:$0xff]  }
 0x343   :  { %v4648_v43 = vadd.f32 %v4647_v5, %v11398_v16  ;;  %5196 = vmatpush2.bf16.msra.mxu1 %v9509_v12  ;;  %v9521_v12 = vld [vmem:[#allocation6 + $0xae8] ss:$16 sps:$4 sm:$0xff]  }
 0x344   :  { %v4649_v14 = vpop.f32.mrf.mxu1  ;;  %5273 = vmatmul.mubr.bf16.vlgmr.msra.gmra.mxu0 %v11156_v47  ;;  %5197 = vmatprep.subr.bf16.mxu1 %v9517_v34  ;;  %v11494_v39 = vpop.f32.mrf.mxu0  ;;  %v9529_v34 = vld [vmem:[#allocation6 + $0xacc] ss:$16 sps:$4 sm:$0xff]  }
 0x345   :  { %v4650_v38 = vadd.f32 %v4649_v14, %v11403_v57  ;;  %5282 = vmatprep.mubr.bf16.mxu0 %v11210_v35  ;;  %5387 = vmatpush1.bf16.msra.mxu0 %v9512_v17  ;;  %v11492_v29 = vadd.f32 %v4720_v3, %v4648_v43  ;;  %v9524_v57 = vld [vmem:[#allocation6 + $0xca8] ss:$16 sps:$4 sm:$0xff]   ;;  %v9532_v3 = vld [vmem:[#allocation6 + $0xc8c] ss:$16 sps:$4 sm:$0xff]  }
 0x346   :  { %v4651_v16 = vpop.f32.mrf.mxu1  ;;  %5388 = vmatprep.subr.bf16.mxu0 %v9520_v0  ;;  %v11501_v17 = vpop.f32.mrf.mxu0  ;;  %v9530_v0 = vld [vmem:[#allocation6 + $0xc88] ss:$16 sps:$4 sm:$0xff]   ;;  %v9538_v43 = vld [vmem:[#allocation6 + $0xc6c] ss:$16 sps:$4 sm:$0xff]  }
 0x347   :  { %v4652_v9 = vadd.f32 %v4651_v16, %v11407_v27  ;;  %5198 = vmatpush2.bf16.msra.mxu1 %v9515_v59  ;;  %v11497_v47 = vadd.f32 %v4722_v62, %v4650_v38  ;;  %v9527_v27 = vld [vmem:[#allocation6 + $0xac8] ss:$16 sps:$4 sm:$0xff]   ;;  %v9535_v62 = vld [vmem:[#allocation6 + $0xaac] ss:$16 sps:$4 sm:$0xff]  }
 0x348   :  { %5313 = vmatprep.subr.bf16.mxu1 %v9523_v10  ;;  %v9541_v59 = vld [vmem:[#allocation6 + $0xa8c] ss:$16 sps:$4 sm:$0xff]   ;;  %v9539_v10 = vld [vmem:[#allocation6 + $0xa88] ss:$16 sps:$4 sm:$0xff]  }
 0x349   :  { %5389 = vmatpush1.bf16.msra.mxu0 %v9518_v23  ;;  %v11499_v5 = vadd.f32 %v4724_v15, %v4652_v9  ;;  %v11507_v15 = vpop.f32.mrf.mxu0  ;;  %v9547_v38 = vld [vmem:[#allocation6 + $0xa6c] ss:$16 sps:$4 sm:$0xff]   ;;  %v9542_v23 = vld [vmem:[#allocation6 + $0xc48] ss:$16 sps:$4 sm:$0xff]  }
 0x34a   :  { %5200 = vmatmul.mubr.bf16.vlgmr.msra.gmra.mxu1 %v11194_v26  ;;  %5390 = vmatprep.subr.bf16.mxu0 %v9526_v30  ;;  %v9533_v26 = vld [vmem:[#allocation6 + $0xaa8] ss:$16 sps:$4 sm:$0xff]   ;;  %v9550_v30 = vld [vmem:[#allocation6 + $0xc2c] ss:$16 sps:$4 sm:$0xff]  }
 0x34b   :  { %5209 = vmatprep.mubr.bf16.mxu1 %v11179_v40  ;;  %5314 = vmatpush1.bf16.msra.mxu1 %v9521_v12  ;;  %v9536_v40 = vld [vmem:[#allocation6 + $0xc68] ss:$16 sps:$4 sm:$0xff]   ;;  %v11509_v14 = vpop.f32.mrf.mxu0  ;;  %v9553_v9 = vld [vmem:[#allocation6 + $0xa4c] ss:$16 sps:$4 sm:$0xff]  }
 0x34c   :  { %5283 = vmatmul.mubr.bf16.gmra.mxu0 %v11172_v18  ;;  %5315 = vmatprep.subr.bf16.mxu1 %v9529_v34  ;;  %v9544_v18 = vld [vmem:[#allocation6 + $0xc4c] ss:$16 sps:$4 sm:$0xff]   ;;  %v9548_v12 = vld [vmem:[#allocation6 + $0xc28] ss:$16 sps:$4 sm:$0xff]  }
 0x34d   :  { %5292 = vmatprep.mubr.bf16.mxu0 %v12139_v53  ;;  %5391 = vmatpush1.bf16.msra.mxu0 %v9524_v57  ;;  %v11515_v16 = vpop.f32.mrf.mxu0  ;;  %v9556_v57 = vld [vmem:[#allocation6 + $0xc0c] ss:$16 sps:$4 sm:$0xff]  }
 0x34e   :  { %5392 = vmatprep.subr.bf16.mxu0 %v9532_v3  ;;  %v9551_v3 = vld [vmem:[#allocation6 + $0xa48] ss:$16 sps:$4 sm:$0xff]  }
 0x34f   :  { %5316 = vmatpush1.bf16.msra.mxu1 %v9527_v27  ;;  %v11517_v34 = vpop.f32.mrf.mxu0  ;;  %v9559_v27 = vld [vmem:[#allocation6 + $0xa2c] ss:$16 sps:$4 sm:$0xff]  }
 0x350   :  { %5317 = vmatprep.subr.bf16.mxu1 %v9535_v62  ;;  %v9554_v62 = vld [vmem:[#allocation6 + $0xc08] ss:$16 sps:$4 sm:$0xff]  }
 0x351   :  { %5393 = vmatpush1.bf16.msra.mxu0 %v9530_v0  ;;  %v11523_v0 = vpop.f32.mrf.mxu0 }
 0x352   :  { %5210 = vmatmul.mubr.bf16.gmra.mxu1 %v11200_v42  ;;  %5394 = vmatprep.subr.bf16.mxu0 %v9538_v43  ;;  %v9545_v42 = vld [vmem:[#allocation6 + $0xa68] ss:$16 sps:$4 sm:$0xff]   ;;  %v9562_v43 = vld [vmem:[#allocation6 + $0xdec] ss:$16 sps:$4 sm:$0xff]  }
 0x353   :  { %5219 = vmatprep.mubr.bf16.mxu1 %v11234_v48  ;;  %5318 = vmatpush1.bf16.msra.mxu1 %v9533_v26  ;;  %v9565_v26 = vld [vmem:[#allocation6 + $0xa0c] ss:$16 sps:$4 sm:$0xff]  }
 0x354   :  { %5293 = vmatmul.mubr.bf16.gmra.mxu0 %v11218_v50  ;;  %5319 = vmatprep.subr.bf16.mxu1 %v9541_v59  ;;  %v9560_v59 = vld [vmem:[#allocation6 + $0xde8] ss:$16 sps:$4 sm:$0xff]  }
 0x355   :  { %5302 = vmatprep.mubr.bf16.mxu0 %v12179_v11  ;;  %5395 = vmatpush1.bf16.msra.mxu0 %v9536_v40  ;;  %v11525_v40 = vpop.f32.mrf.mxu0 }
 0x356   :  { %5396 = vmatprep.subr.bf16.mxu0 %v9544_v18  ;;  %v9568_v18 = vld [vmem:[#allocation6 + $0xdcc] ss:$16 sps:$4 sm:$0xff]  }
 0x357   :  { %5320 = vmatpush1.bf16.msra.mxu1 %v9539_v10  ;;  %v9563_v10 = vld [vmem:[#allocation6 + $0xa08] ss:$16 sps:$4 sm:$0xff]  }
 0x358   :  { %5321 = vmatprep.subr.bf16.mxu1 %v9547_v38  ;;  %v9571_v38 = vld [vmem:[#allocation6 + $0xbec] ss:$16 sps:$4 sm:$0xff]  }
 0x359   :  { %5397 = vmatpush1.bf16.msra.mxu0 %v9542_v23  ;;  %v9566_v23 = vld [vmem:[#allocation6 + $0xdc8] ss:$16 sps:$4 sm:$0xff]  }
 0x35a   :  { %5220 = vmatmul.mubr.bf16.gmra.mxu1 %v11185_v46  ;;  %5398 = vmatprep.subr.bf16.mxu0 %v9550_v30  ;;  %v9557_v46 = vld [vmem:[#allocation6 + $0xa28] ss:$16 sps:$4 sm:$0xff]   ;;  %v11529_v30 = vpop.f32.mrf.mxu0 }
 0x35b   :  { %5229 = vmatprep.mubr.bf16.mxu1 %v11240_v25  ;;  %5322 = vmatpush1.bf16.msra.mxu1 %v9545_v42  ;;  %v9574_v42 = vld [vmem:[#allocation6 + $0xdac] ss:$16 sps:$4 sm:$0xff]  }
 0x35c   :  { %5303 = vmatmul.mubr.bf16.gmra.mxu0 %v11224_v33  ;;  %5323 = vmatprep.subr.bf16.mxu1 %v9553_v9  ;;  %v9569_v9 = vld [vmem:[#allocation6 + $0xbe8] ss:$16 sps:$4 sm:$0xff]  }
 0x35d   :  { %5399 = vmatpush1.bf16.msra.mxu0 %v9548_v12  ;;  %5418 = vmatprep.mubr.bf16.mxu0 %v11021_v28  ;;  %v11531_v12 = vpop.f32.mrf.mxu1 }
 0x35e   :  { %5400 = vmatprep.subr.bf16.mxu0 %v9556_v57  ;;  %v9572_v57 = vld [vmem:[#allocation6 + $0xda8] ss:$16 sps:$4 sm:$0xff]  }
 0x35f   :  { %5324 = vmatpush1.bf16.msra.mxu1 %v9551_v3  ;;  %v11533_v3 = vpop.f32.mrf.mxu0 }
 0x360   :  { %5325 = vmatprep.subr.bf16.mxu1 %v9559_v27  ;;  %v9580_v27 = vld [vmem:[#allocation6 + $0xd8c] ss:$16 sps:$4 sm:$0xff]  }
 0x361   :  { %5401 = vmatpush1.bf16.msra.mxu0 %v9554_v62  ;;  %v4415_v62 = vadd.f32 %v11281_v21, %v11335_v37  ;;  %v9586_v21 = vld [vmem:[#allocation6 + $0xd6c] ss:$16 sps:$4 sm:$0xff]  }
 0x362   :  { %5230 = vmatmul.mubr.bf16.gmra.mxu1 %v11210_v35  ;;  %5402 = vmatprep.subr.bf16.mxu0 %v9562_v43  ;;  %v9577_v35 = vld [vmem:[#allocation6 + $0xbcc] ss:$16 sps:$4 sm:$0xff]  }
 0x363   :  { %5326 = vmatpush1.bf16.msra.mxu1 %v9557_v46  ;;  %5345 = vmatprep.mubr.bf16.mxu1 %v11218_v50  ;;  %v9575_v46 = vld [vmem:[#allocation6 + $0xbc8] ss:$16 sps:$4 sm:$0xff]  }
 0x364   :  { %5327 = vmatprep.subr.bf16.mxu1 %v9565_v26 }
 0x365   :  { %5403 = vmatpush2.bf16.msra.mxu0 %v9560_v59  ;;  %v9583_v59 = vld [vmem:[#allocation6 + $0xbac] ss:$16 sps:$4 sm:$0xff]  }
 0x366   :  { %5404 = vmatprep.subr.bf16.mxu0 %v9568_v18  ;;  %v4488_v18 = vadd.f32 %v11372_v60, %v4415_v62 }
 0x367   :  { %5328 = vmatpush1.bf16.msra.mxu1 %v9563_v10 }
 0x368   :  { %5329 = vmatprep.subr.bf16.mxu1 %v9571_v38  ;;  %v9578_v38 = vld [vmem:[#allocation6 + $0xd88] ss:$16 sps:$4 sm:$0xff]  }
 0x369   :  { %5405 = vmatpush2.bf16.msra.mxu0 %v9566_v23 }
 0x36a   :  { %v4763_v50 = vpop.f32.mrf.mxu1  ;;  %5406 = vmatprep.subr.bf16.mxu0 %v9574_v42  ;;  %v11543_v42 = vpop.f32.mrf.mxu0 }
 0x36b   :  { %v4764_v43 = vadd.f32 %v4763_v50, %v11446_v41  ;;  %5330 = vmatpush2.bf16.msra.mxu1 %v9569_v9  ;;  %v9581_v9 = vld [vmem:[#allocation6 + $0xba8] ss:$16 sps:$4 sm:$0xff]  }
 0x36c   :  { %v4765_v26 = vpop.f32.mrf.mxu1  ;;  %5331 = vmatprep.subr.bf16.mxu1 %v9577_v35 }
 0x36d   :  { %v4766_v10 = vadd.f32 %v4765_v26, %v11450_v20  ;;  %5407 = vmatpush2.bf16.msra.mxu0 %v9572_v57  ;;  %v11541_v23 = vadd.f32 %v11494_v39, %v4764_v43  ;;  %v9589_v20 = vld [vmem:[#allocation6 + $0xb8c] ss:$16 sps:$4 sm:$0xff]   ;;  %v4561_v57 = vadd.f32 %v11331_v22, %v4488_v18  ;;  %v9584_v39 = vld [vmem:[#allocation6 + $0xd68] ss:$16 sps:$4 sm:$0xff]  }
 0x36e   :  { %v4767_v28 = vpop.f32.mrf.mxu1  ;;  %5408 = vmatprep.subr.bf16.mxu0 %v9580_v27  ;;  %v11555_v27 = vpop.f32.mrf.mxu0  ;;  %v9595_v26 = vld [vmem:[#allocation6 + $0xb6c] ss:$16 sps:$4 sm:$0xff]   ;;  %v9590_v18 = vld [vmem:[#allocation6 + $0xd48] ss:$16 sps:$4 sm:$0xff]  }
 0x36f   :  { %v4768_v41 = vadd.f32 %v4767_v28, %v11455_v31  ;;  %5332 = vmatpush2.bf16.msra.mxu1 %v9575_v46  ;;  %v11547_v35 = vadd.f32 %v11501_v17, %v4766_v10  ;;  %v9592_v28 = vld [vmem:[#allocation6 + $0xd4c] ss:$16 sps:$4 sm:$0xff]   ;;  %v4425_v31 = vadd.f32 %v11293_v58, %v11335_v37  ;;  %v4634_v17 = vadd.f32 %v11468_v7, %v4561_v57  ;;  %v9587_v46 = vld [vmem:[#allocation6 + $0xb88] ss:$16 sps:$4 sm:$0xff]  }
 0x370   :  { %v11549_v60 = vpop.f32.mrf.mxu1  ;;  %5333 = vmatprep.subr.bf16.mxu1 %v9583_v59  ;;  %v9598_v7 = vld [vmem:[#allocation6 + $0xd2c] ss:$16 sps:$4 sm:$0xff]   ;;  %v9596_v57 = vld [vmem:[#allocation6 + $0xd28] ss:$16 sps:$4 sm:$0xff]  }
 0x371   :  { %5409 = vmatpush2.bf16.msra.mxu0 %v9578_v38  ;;  %v11553_v50 = vadd.f32 %v11507_v15, %v4768_v41  ;;  %v4498_v15 = vadd.f32 %v11389_v8, %v4425_v31  ;;  %v11566_v38 = vpop.f32.mrf.mxu0  ;;  %v9593_v41 = vld [vmem:[#allocation6 + $0xb68] ss:$16 sps:$4 sm:$0xff]  }
 0x372   :  { %v4773_v62 = vpop.f32.mrf.mxu1  ;;  %5410 = vmatprep.subr.bf16.mxu0 %v9586_v21  ;;  %v4707_v21 = vadd.f32 %v11435_v13, %v4634_v17  ;;  %v4435_v13 = vadd.f32 %v11337_v2, %v11335_v37  ;;  %v9599_v17 = vld [vmem:[#allocation6 + $0xb48] ss:$16 sps:$4 sm:$0xff]  }
 0x373   :  { %v4774_v43 = vadd.f32 %v4773_v62, %v11462_v49  ;;  %5334 = vmatpush2.bf16.msra.mxu1 %v9581_v9  ;;  %v9601_v9 = vld [vmem:[#allocation6 + $0xb4c] ss:$16 sps:$4 sm:$0xff]   ;;  %v4868_v62 = vpop.f32.mrf.mxu0  ;;  %v9602_v2 = vld [vmem:[#allocation6 + $0xd08] ss:$16 sps:$4 sm:$0xff]  }
 0x374   :  { %v4775_v22 = vpop.f32.mrf.mxu1  ;;  %5335 = vmatprep.subr.bf16.mxu1 %v9589_v20 }
 0x375   :  { %v4776_v59 = vadd.f32 %v4775_v22, %v11466_v4  ;;  %5411 = vmatpush2.bf16.msra.mxu0 %v9584_v39  ;;  %v11564_v10 = vadd.f32 %v11515_v16, %v4774_v43  ;;  %v4571_v16 = vadd.f32 %v11366_v24, %v4498_v15  ;;  %v4508_v22 = vadd.f32 %v11437_v56, %v4435_v13 }
 0x376   :  { %v4777_v58 = vpop.f32.mrf.mxu1  ;;  %5412 = vmatprep.subr.bf16.mxu0 %v9592_v28  ;;  %v9604_v28 = vld [vmem:[#allocation6 + $0xd0c] ss:$16 sps:$4 sm:$0xff]  }
 0x377   :  { %v4778_v49 = vadd.f32 %v4777_v58, %v11471_v6  ;;  %5336 = vmatpush2.bf16.msra.mxu1 %v9587_v46  ;;  %v11571_v8 = vadd.f32 %v11517_v34, %v4776_v59  ;;  %v4644_v34 = vadd.f32 %v11482_v61, %v4571_v16  ;;  %v4405_v46 = vadd.f32 %v11263_v32, %v11335_v37  ;;  %v9605_v32 = vld [vmem:[#allocation6 + $0xb28] ss:$16 sps:$4 sm:$0xff]  }
 0x378   :  { %v4779_v4 = vpop.f32.mrf.mxu1  ;;  %5337 = vmatprep.subr.bf16.mxu1 %v9595_v26 }
 0x379   :  { %v4780_v20 = vadd.f32 %v4779_v4, %v4707_v21  ;;  %5413 = vmatpush2.bf16.msra.mxu0 %v9590_v18  ;;  %v11575_v39 = vadd.f32 %v11523_v0, %v4778_v49  ;;  %v9607_v0 = vld [vmem:[#allocation6 + $0xb2c] ss:$16 sps:$4 sm:$0xff]   ;;  %v4717_v58 = vadd.f32 %v11458_v36, %v4644_v34 }
 0x37a   :  { %v4783_v6 = vpop.f32.mrf.mxu1  ;;  %5414 = vmatprep.subr.bf16.mxu0 %v9598_v7 }
 0x37b   :  { %v4784_v31 = vadd.f32 %v4783_v6, %v11476_v63  ;;  %5338 = vmatpush2.bf16.msra.mxu1 %v9593_v41  ;;  %v11582_v24 = vadd.f32 %v11525_v40, %v4780_v20  ;;  %v4870_v63 = vpop.f32.mrf.mxu0  ;;  %v12185_v40 = vld [vmem:[#allocation35_spill] sm:$0xff] }
 0x37c   :  { %v4785_v43 = vpop.f32.mrf.mxu1  ;;  %5339 = vmatprep.subr.bf16.mxu1 %v9601_v9  ;;  %v4478_v59 = vadd.f32 %v12185_v40, %v4405_v46  ;;  %v11627_v46 = vld [vmem:[#allocation7] sm:$0xf] }
 0x37d   :  { %v4786_v26 = vadd.f32 %v4785_v43, %v11480_v19  ;;  %5415 = vmatpush2.bf16.msra.mxu0 %v9596_v57  ;;  %v11589_v61 = vadd.f32 %v11529_v30, %v4784_v31  ;;  %v9610_v19 = vld [vmem:[#allocation6 + $0xb0c] ss:$16 sps:$4 sm:$0xff]   ;;  %v4581_v30 = vadd.f32 %v11400_v52, %v4508_v22  ;;  %v4872_v21 = vpop.f32.mrf.mxu0 }
 0x37e   :  { %v4787_v15 = vpop.f32.mrf.mxu1  ;;  %5416 = vmatprep.subr.bf16.mxu0 %v9604_v28  ;;  %v12187_v28 = vld [vmem:[#allocation31_spill] sm:$0xff]  ;;  %v12188_v22 = vld [vmem:[#allocation38_spill] sm:$0xff] }
 0x37f   :  { %v4788_v18 = vadd.f32 %v4787_v15, %v11484_v44  ;;  %5340 = vmatpush2.bf16.msra.mxu1 %v9599_v17  ;;  %v11595_v37 = vadd.f32 %v11533_v3, %v4786_v26  ;;  %v12186_v44 = vld [vmem:[#allocation45_spill] sm:$0xff]  ;;  %v4654_v36 = vadd.f32 %v11531_v12, %v4581_v30 }
 0x380   :  { %v4789_v56 = vpop.f32.mrf.mxu1  ;;  %5341 = vmatprep.subr.bf16.mxu1 %v9607_v0  ;;  %v4551_v4 = vadd.f32 %v12186_v44, %v4478_v59  ;;  %v9608_v3 = vld [vmem:[#allocation6 + $0xb08] ss:$16 sps:$4 sm:$0xff]   ;;  %v9619_v59 = vld [vmem:[#allocation6 + $0xeac] ss:$16 sps:$4 sm:$0xff]  }
 0x381   :  { %v4790_v7 = vadd.f32 %v4789_v56, %v4717_v58  ;;  %5417 = vmatpush2.bf16.msra.mxu0 %v9602_v2  ;;  %v11599_v49 = vadd.f32 %v11543_v42, %v4788_v18  ;;  %v9613_v42 = vld [vmem:[#allocation6 + $0xeec] ss:$16 sps:$4 sm:$0xff]   ;;  %v4727_v34 = vadd.f32 %v11487_v45, %v4654_v36 }
 0x382   :  { %v4793_v41 = vpop.f32.mrf.mxu1  ;;  %v4624_v57 = vadd.f32 %v11452_v54, %v4551_v4  ;;  %v12189_v44 = vld [vmem:[#allocation42_spill] sm:$0xff] }
 0x383   :  { %v4794_v9 = vadd.f32 %v4793_v41, %v11492_v29  ;;  %5342 = vmatpush2.bf16.msra.mxu1 %v9605_v32  ;;  %v11605_v16 = vadd.f32 %v11555_v27, %v4790_v7  ;;  %v9625_v4 = vld [vmem:[#allocation6 + $0xe6c] ss:$16 sps:$4 sm:$0xff]  }
 0x384   :  { %v4795_v20 = vpop.f32.mrf.mxu1  ;;  %v11607_v52 = vpop.f32.mrf.mxu0  ;;  %5419 = vmatmul.mubr.bf16.vlgmr.msra.gmra.mxu0 %v12139_v53  ;;  %5343 = vmatprep.subr.bf16.mxu1 %v9610_v19  ;;  %v9611_v53 = vld [vmem:[#allocation6 + $0xee8] ss:$16 sps:$4 sm:$0xff]   ;;  %v4697_v43 = vadd.f32 %v11419_v51, %v4624_v57 }
 0x385   :  { %v4796_v6 = vadd.f32 %v4795_v20, %v11497_v47  ;;  %5428 = vmatprep.mubr.bf16.mxu0 %v12187_v28  ;;  %v11614_v29 = vadd.f32 %v11566_v38, %v4794_v9  ;;  %v9616_v47 = vld [vmem:[#allocation6 + $0xecc] ss:$16 sps:$4 sm:$0xff]   ;;  %v9614_v51 = vld [vmem:[#allocation6 + $0xec8] ss:$16 sps:$4 sm:$0xff]  }
 0x386   :  { %v4797_v12 = vpop.f32.mrf.mxu1  ;;  %v11616_v13 = vpop.f32.mrf.mxu0  ;;  %v12190_v9 = vld [vmem:[#allocation33_spill] sm:$0xff] }
 0x387   :  { %v4798_v27 = vadd.f32 %v4797_v12, %v11499_v5  ;;  %5344 = vmatpush2.bf16.msra.mxu1 %v9608_v3  ;;  %v11620_v31 = vadd.f32 %v4868_v62, %v4796_v6  ;;  %v11631_v5 = vrot.slane %v11627_v46, %v12188_v22  ;;  %v4770_v62 = vadd.f32 %v11549_v60, %v4697_v43  ;;  %v9623_v20 = vld [vmem:[#allocation6 + $0xe68] ss:$16 sps:$4 sm:$0xff]   ;;  %v9628_v6 = vld [vmem:[#allocation6 + $0xe4c] ss:$16 sps:$4 sm:$0xff]  }
 0x388   :  { %v4799_v17 = vpop.f32.mrf.mxu1  ;;  %v11622_v54 = vpop.f32.mrf.mxu0  ;;  %5459 = vmatprep.subr.bf16.mxu1 %v9613_v42 }
 0x389   :  { %v4800_v38 = vadd.f32 %v4799_v17, %v4727_v34  ;;  %v11625_v0 = vadd.f32 %v4870_v63, %v4798_v27  ;;  %v4843_v58 = vadd.f32 %v11509_v14, %v4770_v62  ;;  %v9620_v14 = vld [vmem:[#allocation6 + $0xe88] ss:$16 sps:$4 sm:$0xff]  }
 0x38a   :  { %v4909_v45 = vpop.f32.mrf.mxu1  ;;  %v11633_v26 = vpop.f32.mrf.mxu0  ;;  %5346 = vmatmul.mubr.bf16.vlgmr.msra.gmra.mxu1 %v11234_v48  ;;  %v12192_v34 = vld [vmem:[#allocation30_spill] sm:$0xff] }
 0x38b   :  { %v11638_v2 = vadd.f32 %v4909_v45, %v11541_v23  ;;  %5355 = vmatprep.mubr.bf16.mxu1 %v11224_v33  ;;  %5460 = vmatpush1.bf16.msra.mxu1 %v9611_v53  ;;  %v11641_v63 = vadd.f32 %v4872_v21, %v4800_v38  ;;  %v9626_v17 = vld [vmem:[#allocation6 + $0xe48] ss:$16 sps:$4 sm:$0xff]   ;;  %v9631_v45 = vld [vmem:[#allocation6 + $0xe2c] ss:$16 sps:$4 sm:$0xff]  }
 0x38c   :  { %v4911_v15 = vpop.f32.mrf.mxu1  ;;  %v4992_v40 = vpop.f32.mrf.mxu0  ;;  %5429 = vmatmul.mubr.bf16.gmra.mxu0 %v12179_v11  ;;  %5461 = vmatprep.subr.bf16.mxu1 %v9616_v47  ;;  %v9617_v11 = vld [vmem:[#allocation6 + $0xea8] ss:$16 sps:$4 sm:$0xff]  }
 0x38d   :  { %v11645_v18 = vadd.f32 %v4911_v15, %v11547_v35  ;;  %v11648_v48 = vadd.f32 %v4992_v40, %v11631_v5  ;;  %5438 = vmatprep.mubr.bf16.mxu0 %v11136_v55  ;;  %v9622_v35 = vld [vmem:[#allocation6 + $0xe8c] ss:$16 sps:$4 sm:$0xff]   ;;  %v12195_v38 = vld [vmem:[#allocation43_spill] sm:$0xff] }
 0x38e   :  { %v4913_v23 = vpop.f32.mrf.mxu1  ;;  %v11651_v33 = vpop.f32.mrf.mxu0  ;;  %v9629_v40 = vld [vmem:[#allocation6 + $0xe28] ss:$16 sps:$4 sm:$0xff]  }
 0x38f   :  { %v11654_v60 = vadd.f32 %v4913_v23, %v11553_v50  ;;  %5462 = vmatpush1.bf16.msra.mxu1 %v9614_v51 }
 0x390   :  { %v4915_v32 = vpop.f32.mrf.mxu1  ;;  %v4996_v56 = vpop.f32.mrf.mxu0  ;;  %5463 = vmatprep.subr.bf16.mxu1 %v9619_v59 }
 0x391   :  { %v11657_v19 = vadd.f32 %v4915_v32, %v4843_v58  ;;  %v11660_v30 = vadd.f32 %v4996_v56, %v11631_v5  ;;  %v9634_v58 = vld [vmem:[#allocation6 + $0xe0c] ss:$16 sps:$4 sm:$0xff]  }
 0x392   :  { %v4919_v55 = vpop.f32.mrf.mxu1  ;;  %v11662_v7 = vpop.f32.mrf.mxu0  ;;  %5356 = vmatmul.mubr.bf16.gmra.mxu1 %v11240_v25 }
 0x393   :  { %v11666_v50 = vadd.f32 %v4919_v55, %v11564_v10  ;;  %5365 = vmatprep.mubr.bf16.mxu1 %v11033_v1  ;;  %5464 = vmatpush1.bf16.msra.mxu1 %v9617_v11 }
 0x394   :  { %v4921_v21 = vpop.f32.mrf.mxu1  ;;  %v11669_v41 = vpop.f32.mrf.mxu0  ;;  %5439 = vmatmul.mubr.bf16.gmra.mxu0 %v12189_v44  ;;  %5465 = vmatprep.subr.bf16.mxu1 %v9622_v35  ;;  %v12200_v35 = vmov 0  }
 0x395   :  { %v11673_v36 = vadd.f32 %v4921_v21, %v11571_v8  ;;  %5448 = vmatprep.mubr.bf16.mxu0 %v12190_v9  ;;  %v9637_v9 = vld [vmem:[#allocation9 + $0xe4] ss:$16 sps:$4 sm:$0xff]  }
 0x396   :  { %v4923_v25 = vpop.f32.mrf.mxu1  ;;  %v11676_v3 = vpop.f32.mrf.mxu0 }
 0x397   :  { %v11679_v10 = vadd.f32 %v4923_v25, %v11575_v39  ;;  %5466 = vmatpush1.bf16.msra.mxu1 %v9620_v14  ;;  %v12194_v39 = vld [vmem:[#allocation24_spill] sm:$0xff]  ;;  %v9635_v25 = vld [vmem:[#allocation9 + $0xe0] ss:$16 sps:$4 sm:$0xff]  }
 0x398   :  { %v4925_v42 = vpop.f32.mrf.mxu1  ;;  %v11681_v57 = vpop.f32.mrf.mxu0  ;;  %5467 = vmatprep.subr.bf16.mxu1 %v9625_v4 }
 0x399   :  { %v11684_v12 = vadd.f32 %v4925_v42, %v11582_v24 }
 0x39a   :  { %v4929_v8 = vpop.f32.mrf.mxu1  ;;  %v11686_v27 = vpop.f32.mrf.mxu0  ;;  %5366 = vmatmul.mubr.bf16.gmra.mxu1 %v12192_v34  ;;  %v9643_v34 = vld [vmem:[#allocation9 + $0x2e4] ss:$16 sps:$4 sm:$0xff]  }
 0x39b   :  { %12191 = vst [vmem:[#allocation37_spill] sm:$0xff] %v11684_v12  ;;  %v11690_v53 = vadd.f32 %v4929_v8, %v11589_v61  ;;  %5375 = vmatprep.mubr.bf16.mxu1 %v12194_v39  ;;  %5468 = vmatpush1.bf16.msra.mxu1 %v9623_v20  ;;  %v12206_v20 = vld [vmem:[#allocation21_spill] sm:$0xff] }
 0x39c   :  { %v4931_v47 = vpop.f32.mrf.mxu1  ;;  %v5012_v43 = vpop.f32.mrf.mxu0  ;;  %5449 = vmatmul.mubr.bf16.gmra.mxu0 %v12195_v38  ;;  %5469 = vmatprep.subr.bf16.mxu1 %v9628_v6  ;;  %v4983_v6 = vadd.f32 %v11607_v52, %v11631_v5  ;;  %v9640_v8 = vld [vmem:[#allocation9 + $0xc4] ss:$16 sps:$4 sm:$0xff]  }
 0x39d   :  { %12193 = vst [vmem:[#allocation49_spill] sm:$0xff] %v11690_v53  ;;  %v11695_v24 = vadd.f32 %v4931_v47, %v11595_v37  ;;  %v11698_v62 = vadd.f32 %v5012_v43, %v11631_v5  ;;  %v9638_v47 = vld [vmem:[#allocation9 + $0xc0] ss:$16 sps:$4 sm:$0xff]   ;;  %7195 = vmatprep.subr.bf16.mxu0 %v9643_v34 }
 0x39e   :  { %v4933_v51 = vpop.f32.mrf.mxu1  ;;  %v11700_v15 = vpop.f32.mrf.mxu0  ;;  %v9641_v43 = vld [vmem:[#allocation9 + $0x2e0] ss:$16 sps:$4 sm:$0xff]  }
 0x39f   :  { %12196 = vst [vmem:[#allocation39_spill] sm:$0xff] %v11695_v24  ;;  %v11703_v61 = vadd.f32 %v4933_v51, %v11599_v49  ;;  %5470 = vmatpush1.bf16.msra.mxu1 %v9626_v17  ;;  %v9632_v49 = vld [vmem:[#allocation6 + $0xe08] ss:$16 sps:$4 sm:$0xff]   ;;  %7196 = vmatpush1.bf16.msra.mxu0 %v9641_v43  ;;  %v9650_v34 = vld [vmem:[#allocation9 + $0x80] ss:$16 sps:$4 sm:$0xff]  }
 0x3a0   :  { %v4935_v59 = vpop.f32.mrf.mxu1  ;;  %v5016_v23 = vpop.f32.mrf.mxu0  ;;  %5471 = vmatprep.subr.bf16.mxu1 %v9631_v45 }
 0x3a1   :  { %12197 = vst [vmem:[#allocation48_spill] sm:$0xff] %v11703_v61  ;;  %v11706_v11 = vadd.f32 %v4935_v59, %v11605_v16  ;;  %v11709_v37 = vadd.f32 %v5016_v23, %v11631_v5  ;;  %v9646_v23 = vld [vmem:[#allocation9 + $0xa4] ss:$16 sps:$4 sm:$0xff]  }
 0x3a2   :  { %v4939_v32 = vpop.f32.mrf.mxu1  ;;  %5376 = vmatmul.mubr.bf16.gmra.mxu1 %v12187_v28 }
 0x3a3   :  { %12198 = vst [vmem:[#allocation51_spill] sm:$0xff] %v11706_v11  ;;  %v11713_v56 = vadd.f32 %v4939_v32, %v11614_v29  ;;  %5472 = vmatpush1.bf16.msra.mxu1 %v9629_v40  ;;  %5491 = vmatprep.mubr.bf16.mxu1 %v12200_v35  ;;  %v12204_v29 = vld [vmem:[#allocation32_spill] sm:$0xff]  ;;  %v4987_v40 = vadd.f32 %v11622_v54, %v11631_v5 }
 0x3a4   :  { %v4941_v55 = vpop.f32.mrf.mxu1  ;;  %5473 = vmatprep.subr.bf16.mxu1 %v9634_v58  ;;  %v9649_v58 = vld [vmem:[#allocation9 + $0x2c4] ss:$16 sps:$4 sm:$0xff]  }
 0x3a5   :  { %12199 = vst [vmem:[#allocation50_spill] sm:$0xff] %v11713_v56  ;;  %v11717_v14 = vadd.f32 %v4941_v55, %v11620_v31  ;;  %v11731_v31 = vpop.f32.mrf.mxu0  ;;  %v9647_v55 = vld [vmem:[#allocation9 + $0x2c0] ss:$16 sps:$4 sm:$0xff]   ;;  %7197 = vmatprep.subr.bf16.mxu0 %v9649_v58 }
 0x3a6   :  { %v4943_v16 = vpop.f32.mrf.mxu1  ;;  %7198 = vmatpush1.bf16.msra.mxu0 %v9647_v55  ;;  %v9659_v58 = vld [vmem:[#allocation9 + $0x280] ss:$16 sps:$4 sm:$0xff]  }
 0x3a7   :  { %12201 = vst [vmem:[#allocation47_spill] sm:$0xff] %v11717_v14  ;;  %v11720_v21 = vadd.f32 %v4943_v16, %v11625_v0  ;;  %5474 = vmatpush1.bf16.msra.mxu1 %v9632_v49  ;;  %v12205_v0 = vld [vmem:[#allocation46_spill] sm:$0xff] }
 0x3a8   :  { %v4945_v44 = vpop.f32.mrf.mxu1  ;;  %7154 = vmatprep.subr.bf16.mxu1 %v9637_v9  ;;  %v9652_v9 = vld [vmem:[#allocation9 + $0x84] ss:$16 sps:$4 sm:$0xff]  }
 0x3a9   :  { %12202 = vst [vmem:[#allocation54_spill] sm:$0xff] %v11720_v21  ;;  %v11723_v28 = vadd.f32 %v4945_v44, %v11641_v63 }
 0x3aa   :  { %5492 = vmatmul.mubr.bf16.vlgmr.msra.gmra.mxu1 %v11033_v1  ;;  %v11736_v1 = vrot.slane %v11627_v46, %v12206_v20 }
 0x3ab   :  { %12203 = vst [vmem:[#allocation53_spill] sm:$0xff] %v11723_v28  ;;  %5501 = vmatprep.mubr.bf16.mxu1 %v12200_v35  ;;  %7155 = vmatpush1.bf16.msra.mxu1 %v9635_v25  ;;  %v9655_v25 = vld [vmem:[#allocation9 + $0x2a4] ss:$16 sps:$4 sm:$0xff]  }
 0x3ac   :  { %v4985_v38 = vadd.f32 %v11616_v13, %v11736_v1  ;;  %7156 = vmatprep.subr.bf16.mxu1 %v9640_v8  ;;  %v4989_v13 = vadd.f32 %v11633_v26, %v11736_v1  ;;  %v4995_v26 = vadd.f32 %v11651_v33, %v11736_v1  ;;  %7199 = vmatprep.subr.bf16.mxu0 %v9655_v25  ;;  %v9656_v33 = vld [vmem:[#allocation9 + $0x60] ss:$16 sps:$4 sm:$0xff]  }
 0x3af   :  { %7157 = vmatpush1.bf16.msra.mxu1 %v9638_v47 }
 0x3b0   :  { %7158 = vmatprep.subr.bf16.mxu1 %v9646_v23 }
 0x3b2   :  { %5502 = vmatmul.mubr.bf16.gmra.mxu1 %v12194_v39 }
 0x3b3   :  { %5511 = vmatprep.mubr.bf16.mxu1 %v12200_v35 }
 0x3ba   :  { %5512 = vmatmul.mubr.bf16.gmra.mxu1 %v12204_v29 }
 0x3bb   :  { %5521 = vmatprep.mubr.bf16.mxu1 %v12200_v35  ;;  %v9644_v35 = vld [vmem:[#allocation9 + $0xa0] ss:$16 sps:$4 sm:$0xff]  }
 0x3bc   :  { %7159 = vmatpush1.bf16.msra.mxu1 %v9644_v35 }
 0x3bd   :  { %7160 = vmatprep.subr.bf16.mxu1 %v9652_v9  ;;  %v9662_v9 = vld [vmem:[#allocation9 + $0x40] ss:$16 sps:$4 sm:$0xff]  }
 0x3c0   :  { %7161 = vmatpush1.bf16.msra.mxu1 %v9650_v34 }
 0x3c2   :  { %5522 = vmatmul.mubr.bf16.gmra.mxu1 %v12205_v0 }
 0x3c4   :  { %v5128_v4 = vpop.f32.mrf.mxu0 }
 0x3c6   :  { %v5130_v63 = vpop.f32.mrf.mxu0 }
 0x3c8   :  { %v5132_v42 = vpop.f32.mrf.mxu0 }
 0x3ca   :  { %v5055_v39 = vpop.f32.mrf.mxu1  ;;  %v5134_v17 = vpop.f32.mrf.mxu0 }
 0x3cb   :  { %v5056_v45 = vadd.f32 %v5055_v39, %v4983_v6  ;;  %v9653_v39 = vld [vmem:[#allocation9 + $0x2a0] ss:$16 sps:$4 sm:$0xff]  }
 0x3cc   :  { %v5057_v46 = vpop.f32.mrf.mxu1  ;;  %v5138_v51 = vpop.f32.mrf.mxu0  ;;  %7200 = vmatpush1.bf16.msra.mxu0 %v9653_v39 }
 0x3cd   :  { %v5058_v52 = vadd.f32 %v5057_v46, %v4985_v38  ;;  %v11744_v59 = vadd.f32 %v5128_v4, %v5056_v45  ;;  %v9658_v46 = vld [vmem:[#allocation9 + $0x64] ss:$16 sps:$4 sm:$0xff]  }
 0x3ce   :  { %v5059_v32 = vpop.f32.mrf.mxu1  ;;  %v5140_v49 = vpop.f32.mrf.mxu0  ;;  %7162 = vmatprep.subr.bf16.mxu1 %v9658_v46 }
 0x3cf   :  { %v5060_v16 = vadd.f32 %v5059_v32, %v4987_v40  ;;  %v11748_v44 = vadd.f32 %v5130_v63, %v5058_v52  ;;  %v9661_v40 = vld [vmem:[#allocation9 + $0x284] ss:$16 sps:$4 sm:$0xff]   ;;  %7163 = vmatpush1.bf16.msra.mxu1 %v9656_v33 }
 0x3d0   :  { %v5061_v29 = vpop.f32.mrf.mxu1  ;;  %v5142_v0 = vpop.f32.mrf.mxu0  ;;  %7201 = vmatprep.subr.bf16.mxu0 %v9661_v40 }
 0x3d1   :  { %v5062_v54 = vadd.f32 %v5061_v29, %v4989_v13  ;;  %v11750_v4 = vadd.f32 %v5132_v42, %v5060_v16  ;;  %7202 = vmatpush1.bf16.msra.mxu0 %v9659_v58  ;;  %v9664_v29 = vld [vmem:[#allocation9 + $0x44] ss:$16 sps:$4 sm:$0xff]  }
 0x3d2   :  { %v5065_v6 = vpop.f32.mrf.mxu1  ;;  %v5144_v8 = vpop.f32.mrf.mxu0  ;;  %7164 = vmatprep.subr.bf16.mxu1 %v9664_v29 }
 0x3d3   :  { %v5066_v63 = vadd.f32 %v5065_v6, %v11648_v48  ;;  %v11755_v47 = vadd.f32 %v5134_v17, %v5062_v54  ;;  %v4999_v48 = vadd.f32 %v11662_v7, %v11736_v1  ;;  %v9667_v54 = vld [vmem:[#allocation9 + $0x264] ss:$16 sps:$4 sm:$0xff]   ;;  %7165 = vmatpush1.bf16.msra.mxu1 %v9662_v9 }
 0x3d4   :  { %v5067_v43 = vpop.f32.mrf.mxu1  ;;  %v11757_v38 = vpop.f32.mrf.mxu0  ;;  %7203 = vmatprep.subr.bf16.mxu0 %v9667_v54  ;;  %v9685_v9 = vld [vmem:[#allocation9 + $0x204] ss:$16 sps:$4 sm:$0xff]  }
 0x3d5   :  { %v5068_v42 = vadd.f32 %v5067_v43, %v4995_v26  ;;  %v11759_v45 = vadd.f32 %v5138_v51, %v5066_v63  ;;  %v5003_v51 = vadd.f32 %v11669_v41, %v11631_v5  ;;  %v9670_v26 = vld [vmem:[#allocation9 + $0x24] ss:$16 sps:$4 sm:$0xff]  }
 0x3d6   :  { %v5069_v52 = vpop.f32.mrf.mxu1  ;;  %v11761_v23 = vpop.f32.mrf.mxu0  ;;  %v9673_v63 = vld [vmem:[#allocation9 + $0x244] ss:$16 sps:$4 sm:$0xff]   ;;  %7166 = vmatprep.subr.bf16.mxu1 %v9670_v26 }
 0x3d7   :  { %v5070_v17 = vadd.f32 %v5069_v52, %v11660_v30  ;;  %v11766_v32 = vadd.f32 %v5140_v49, %v5068_v42  ;;  %v9665_v30 = vld [vmem:[#allocation9 + $0x260] ss:$16 sps:$4 sm:$0xff]   ;;  %v5005_v49 = vadd.f32 %v11676_v3, %v11736_v1 }
 0x3d8   :  { %v5071_v35 = vpop.f32.mrf.mxu1  ;;  %v11768_v55 = vpop.f32.mrf.mxu0  ;;  %7204 = vmatpush1.bf16.msra.mxu0 %v9665_v30  ;;  %v9668_v3 = vld [vmem:[#allocation9 + $0x20] ss:$16 sps:$4 sm:$0xff]  }
 0x3d9   :  { %v5072_v13 = vadd.f32 %v5071_v35, %v4999_v48  ;;  %v11772_v16 = vadd.f32 %v5142_v0, %v5070_v17  ;;  %v5007_v0 = vadd.f32 %v11681_v57, %v11631_v5  ;;  %v9671_v42 = vld [vmem:[#allocation9 + $0x240] ss:$16 sps:$4 sm:$0xff]   ;;  %7205 = vmatprep.subr.bf16.mxu0 %v9673_v63  ;;  %7167 = vmatpush1.bf16.msra.mxu1 %v9668_v3  ;;  %v9676_v5 = vld [vmem:[#allocation9 + $0x4] ss:$16 sps:$4 sm:$0xff]  }
 0x3da   :  { %v5075_v7 = vpop.f32.mrf.mxu1  ;;  %v11780_v34 = vpop.f32.mrf.mxu0  ;;  %v9679_v57 = vld [vmem:[#allocation9 + $0x224] ss:$16 sps:$4 sm:$0xff]   ;;  %v9674_v48 = vld [vmem:[#allocation9] ss:$16 sps:$4 sm:$0xff]   ;;  %v5015_v35 = vadd.f32 %v11700_v15, %v11736_v1  ;;  %7168 = vmatprep.subr.bf16.mxu1 %v9676_v5  ;;  %v5019_v15 = vadd.f32 %v11731_v31, %v11736_v1 }
 0x3db   :  { %v11776_v25 = vadd.f32 %v5075_v7, %v5003_v51  ;;  %v11778_v6 = vadd.f32 %v5144_v8, %v5072_v13  ;;  %v5009_v8 = vadd.f32 %v11686_v27, %v11736_v1  ;;  %v9677_v17 = vld [vmem:[#allocation9 + $0x220] ss:$16 sps:$4 sm:$0xff]   ;;  %v9682_v7 = vld [vmem:[#allocation9 + $0x1e4] ss:$16 sps:$4 sm:$0xff]  }
 0x3dc   :  { %v5077_v41 = vpop.f32.mrf.mxu1  ;;  %v5158_v40 = vpop.f32.mrf.mxu0  ;;  %7206 = vmatpush1.bf16.msra.mxu0 %v9671_v42  ;;  %v9688_v3 = vld [vmem:[#allocation9 + $0x1c4] ss:$16 sps:$4 sm:$0xff]   ;;  %v9692_v1 = vld [vmem:[#allocation9 + $0x1a0] ss:$16 sps:$4 sm:$0xff]  }
 0x3dd   :  { %v11784_v39 = vadd.f32 %v5077_v41, %v5005_v49  ;;  %7207 = vmatprep.subr.bf16.mxu0 %v9679_v57  ;;  %7169 = vmatpush1.bf16.msra.mxu1 %v9674_v48  ;;  %v9680_v49 = vld [vmem:[#allocation9 + $0x1e0] ss:$16 sps:$4 sm:$0xff]   ;;  %v9691_v42 = vld [vmem:[#allocation9 + $0x3e4] ss:$16 sps:$4 sm:$0xff]  }
 0x3de   :  { %v5079_v43 = vpop.f32.mrf.mxu1  ;;  %v11795_v51 = vpop.f32.mrf.mxu0  ;;  %v9683_v41 = vld [vmem:[#allocation9 + $0x200] ss:$16 sps:$4 sm:$0xff]   ;;  %7170 = vmatprep.subr.bf16.mxu1 %v9682_v7  ;;  %v9694_v31 = vld [vmem:[#allocation9 + $0x1a4] ss:$16 sps:$4 sm:$0xff]  }
 0x3df   :  { %v11788_v46 = vadd.f32 %v5079_v43, %v5007_v0  ;;  %v9700_v5 = vld [vmem:[#allocation9 + $0x184] ss:$16 sps:$4 sm:$0xff]   ;;  %v9701_v48 = vld [vmem:[#allocation9 + $0x3a0] ss:$16 sps:$4 sm:$0xff]  }
 0x3e0   :  { %v5081_v52 = vpop.f32.mrf.mxu1  ;;  %7208 = vmatpush1.bf16.msra.mxu0 %v9677_v17  ;;  %v5162_v0 = vpop.f32.mrf.mxu0  ;;  %v9703_v57 = vld [vmem:[#allocation9 + $0x3a4] ss:$16 sps:$4 sm:$0xff]  }
 0x3e1   :  { %v11790_v33 = vadd.f32 %v5081_v52, %v5009_v8  ;;  %7209 = vmatprep.subr.bf16.mxu0 %v9685_v9  ;;  %7171 = vmatpush2.bf16.msra.mxu1 %v9680_v49  ;;  %v9686_v8 = vld [vmem:[#allocation9 + $0x1c0] ss:$16 sps:$4 sm:$0xff]   ;;  %v9706_v17 = vld [vmem:[#allocation9 + $0x164] ss:$16 sps:$4 sm:$0xff]  }
 0x3e2   :  { %v5085_v58 = vpop.f32.mrf.mxu1  ;;  %7172 = vmatprep.subr.bf16.mxu1 %v9688_v3  ;;  %v9695_v52 = vld [vmem:[#allocation9 + $0x3c0] ss:$16 sps:$4 sm:$0xff]   ;;  %v9712_v7 = vld [vmem:[#allocation9 + $0x144] ss:$16 sps:$4 sm:$0xff]  }
 0x3e3   :  { %v5086_v27 = vadd.f32 %v5085_v58, %v11698_v62  ;;  %v9698_v58 = vld [vmem:[#allocation9 + $0x180] ss:$16 sps:$4 sm:$0xff]   ;;  %v9715_v9 = vld [vmem:[#allocation9 + $0x364] ss:$16 sps:$4 sm:$0xff]  }
 0x3e4   :  { %v5087_v13 = vpop.f32.mrf.mxu1  ;;  %7210 = vmatpush1.bf16.msra.mxu0 %v9683_v41  ;;  %v9713_v49 = vld [vmem:[#allocation9 + $0x360] ss:$16 sps:$4 sm:$0xff]   ;;  %v9718_v41 = vld [vmem:[#allocation9 + $0x124] ss:$16 sps:$4 sm:$0xff]  }
 0x3e5   :  { %v11797_v29 = vadd.f32 %v5087_v13, %v5015_v35  ;;  %v11799_v54 = vadd.f32 %v5158_v40, %v5086_v27  ;;  %v9689_v40 = vld [vmem:[#allocation9 + $0x3e0] ss:$16 sps:$4 sm:$0xff]   ;;  %7211 = vmatprep.subr.bf16.mxu0 %v9691_v42  ;;  %7173 = vmatpush2.bf16.msra.mxu1 %v9686_v8  ;;  %v9709_v35 = vld [vmem:[#allocation9 + $0x384] ss:$16 sps:$4 sm:$0xff]   ;;  %v11808_v42 = vpop.f32.mrf.mxu0 }
 0x3e6   :  { %v5089_v30 = vpop.f32.mrf.mxu1  ;;  %7174 = vmatprep.subr.bf16.mxu1 %v9694_v31  ;;  %v9704_v27 = vld [vmem:[#allocation9 + $0x160] ss:$16 sps:$4 sm:$0xff]   ;;  %v9727_v3 = vld [vmem:[#allocation9 + $0x324] ss:$16 sps:$4 sm:$0xff]   ;;  %12208 = vst [vmem:[#allocation23_spill] sm:$0xff] %v11808_v42 }
 0x3e7   :  { %v5090_v62 = vadd.f32 %v5089_v30, %v11709_v37  ;;  %v9697_v37 = vld [vmem:[#allocation9 + $0x3c4] ss:$16 sps:$4 sm:$0xff]   ;;  %v9707_v13 = vld [vmem:[#allocation9 + $0x380] ss:$16 sps:$4 sm:$0xff]  }
 0x3e8   :  { %v5091_v26 = vpop.f32.mrf.mxu1  ;;  %7212 = vmatpush2.bf16.msra.mxu0 %v9689_v40  ;;  %v9710_v30 = vld [vmem:[#allocation9 + $0x140] ss:$16 sps:$4 sm:$0xff]  }
 0x3e9   :  { %v11804_v63 = vadd.f32 %v5091_v26, %v5019_v15  ;;  %v11806_v43 = vadd.f32 %v5162_v0, %v5090_v62  ;;  %7213 = vmatprep.subr.bf16.mxu0 %v9697_v37  ;;  %7175 = vmatpush2.bf16.msra.mxu1 %v9692_v1  ;;  %v9721_v15 = vld [vmem:[#allocation9 + $0x344] ss:$16 sps:$4 sm:$0xff]   ;;  %v9716_v62 = vld [vmem:[#allocation9 + $0x120] ss:$16 sps:$4 sm:$0xff]  }
 0x3ea   :  { %7176 = vmatprep.subr.bf16.mxu1 %v9700_v5  ;;  %v9719_v0 = vld [vmem:[#allocation9 + $0x340] ss:$16 sps:$4 sm:$0xff]   ;;  %v9724_v26 = vld [vmem:[#allocation9 + $0x104] ss:$16 sps:$4 sm:$0xff]  }
 0x3eb   :  { %12207 = vst [vmem:[#allocation26_spill] sm:$0xff] %v11804_v63  ;;  %v9722_v8 = vld [vmem:[#allocation9 + $0x100] ss:$16 sps:$4 sm:$0xff]   ;;  %v9730_v1 = vld [vmem:[#allocation9 + $0x304] ss:$16 sps:$4 sm:$0xff]  }
 0x3ec   :  { %7214 = vmatpush2.bf16.msra.mxu0 %v9695_v52  ;;  %v9725_v40 = vld [vmem:[#allocation9 + $0x320] ss:$16 sps:$4 sm:$0xff]   ;;  %v9733_v52 = vld [vmem:[#allocation9 + $0x4e4] ss:$16 sps:$4 sm:$0xff]  }
 0x3ed   :  { %7215 = vmatprep.subr.bf16.mxu0 %v9703_v57  ;;  %7177 = vmatpush2.bf16.msra.mxu1 %v9698_v58  ;;  %v9728_v5 = vld [vmem:[#allocation9 + $0x300] ss:$16 sps:$4 sm:$0xff]  }
 0x3ee   :  { %7178 = vmatprep.subr.bf16.mxu1 %v9706_v17 }
 0x3f0   :  { %7216 = vmatpush2.bf16.msra.mxu0 %v9701_v48 }
 0x3f1   :  { %7217 = vmatprep.subr.bf16.mxu0 %v9709_v35  ;;  %7179 = vmatpush2.bf16.msra.mxu1 %v9704_v27  ;;  %v9739_v35 = vld [vmem:[#allocation9 + $0x6e4] ss:$16 sps:$4 sm:$0xff]  }
 0x3f2   :  { %7180 = vmatprep.subr.bf16.mxu1 %v9712_v7 }
 0x3f4   :  { %7218 = vmatpush2.bf16.msra.mxu0 %v9707_v13 }
 0x3f5   :  { %7219 = vmatprep.subr.bf16.mxu0 %v9715_v9  ;;  %7181 = vmatpush2.bf16.msra.mxu1 %v9710_v30 }
 0x3f6   :  { %7182 = vmatprep.subr.bf16.mxu1 %v9718_v41 }
 0x3f8   :  { %7220 = vmatpush2.bf16.msra.mxu0 %v9713_v49 }
 0x3f9   :  { %7221 = vmatprep.subr.bf16.mxu0 %v9721_v15  ;;  %7183 = vmatpush2.bf16.msra.mxu1 %v9716_v62 }
 0x3fa   :  { %7184 = vmatprep.subr.bf16.mxu1 %v9724_v26 }
 0x3fc   :  { %7222 = vmatpush2.bf16.msra.mxu0 %v9719_v0 }
 0x3fd   :  { %7223 = vmatprep.subr.bf16.mxu0 %v9727_v3  ;;  %7185 = vmatpush2.bf16.msra.mxu1 %v9722_v8 }
 0x3fe   :  { %7236 = vmatprep.subr.bf16.mxu1 %v9733_v52 }
 0x400   :  { %7224 = vmatpush2.bf16.msra.mxu0 %v9725_v40 }
 0x401   :  { %7225 = vmatprep.subr.bf16.mxu0 %v9730_v1 }
 0x404   :  { %v11810_v31 = vpop.f32.mrf.mxu0  ;;  %7226 = vmatpush2.bf16.msra.mxu0 %v9728_v5 }
 0x405   :  { %7277 = vmatprep.subr.bf16.mxu0 %v9739_v35 }
 0x406   :  { %v11812_v37 = vpop.f32.mrf.mxu0 }
 0x408   :  { %v11814_v57 = vpop.f32.mrf.mxu0 }
 0x40a   :  { %v5201_v58 = vpop.f32.mrf.mxu1  ;;  %v11816_v48 = vpop.f32.mrf.mxu0 }
 0x40b   :  { %v11819_v17 = vadd.f32 %v5201_v58, %v11744_v59 }
 0x40c   :  { %v5203_v27 = vpop.f32.mrf.mxu1  ;;  %v5284_v13 = vpop.f32.mrf.mxu0 }
 0x40d   :  { %v11822_v7 = vadd.f32 %v5203_v27, %v11748_v44 }
 0x40e   :  { %v5205_v9 = vpop.f32.mrf.mxu1  ;;  %v11824_v30 = vpop.f32.mrf.mxu0 }
 0x40f   :  { %v11827_v49 = vadd.f32 %v5205_v9, %v11750_v4 }
 0x410   :  { %v5207_v41 = vpop.f32.mrf.mxu1  ;;  %v5288_v15 = vpop.f32.mrf.mxu0 }
 0x411   :  { %v11830_v62 = vadd.f32 %v5207_v41, %v11755_v47 }
 0x412   :  { %v5211_v59 = vpop.f32.mrf.mxu1  ;;  %v11832_v0 = vpop.f32.mrf.mxu0 }
 0x413   :  { %v5212_v26 = vadd.f32 %v5211_v59, %v11759_v45 }
 0x414   :  { %v5213_v3 = vpop.f32.mrf.mxu1  ;;  %v11835_v44 = vpop.f32.mrf.mxu0 }
 0x415   :  { %v11838_v8 = vadd.f32 %v5213_v3, %v11766_v32  ;;  %v5285_v40 = vadd.f32 %v5284_v13, %v5212_v26 }
 0x416   :  { %v5215_v1 = vpop.f32.mrf.mxu1  ;;  %v11840_v4 = vpop.f32.mrf.mxu0 }
 0x417   :  { %v5216_v52 = vadd.f32 %v5215_v1, %v11772_v16 }
 0x418   :  { %v5217_v5 = vpop.f32.mrf.mxu1  ;;  %v11843_v47 = vpop.f32.mrf.mxu0 }
 0x419   :  { %v11846_v58 = vadd.f32 %v5217_v5, %v11778_v6  ;;  %v5289_v35 = vadd.f32 %v5288_v15, %v5216_v52 }
 0x41a   :  { %v11848_v45 = vpop.f32.mrf.mxu1  ;;  %v11850_v27 = vpop.f32.mrf.mxu0 }
 0x41b   :  { %12209 = vst [vmem:[#allocation36_spill] sm:$0xff] %v11850_v27 }
 0x41c   :  { %v11852_v9 = vpop.f32.mrf.mxu1  ;;  %v5304_v13 = vpop.f32.mrf.mxu0 }
 0x41e   :  { %v11854_v32 = vpop.f32.mrf.mxu1  ;;  %v11859_v26 = vpop.f32.mrf.mxu0 }
 0x41f   :  { %12210 = vst [vmem:[#allocation40_spill] sm:$0xff] %v11859_v26 }
 0x420   :  { %v11856_v41 = vpop.f32.mrf.mxu1  ;;  %v5308_v52 = vpop.f32.mrf.mxu0 }
 0x422   :  { %v5231_v59 = vpop.f32.mrf.mxu1  ;;  %v11864_v20 = vpop.f32.mrf.mxu0 }
 0x423   :  { %v5232_v16 = vadd.f32 %v5231_v59, %v11799_v54  ;;  %12212 = vst [vmem:[#allocation28_spill] sm:$0xff] %v11864_v20 }
 0x424   :  { %v11861_v3 = vpop.f32.mrf.mxu1 }
 0x425   :  { %12211 = vst [vmem:[#allocation41_spill] sm:$0xff] %v11861_v3  ;;  %v5305_v6 = vadd.f32 %v5304_v13, %v5232_v16 }
 0x426   :  { %v5235_v15 = vpop.f32.mrf.mxu1 }
 0x427   :  { %v5236_v1 = vadd.f32 %v5235_v15, %v11806_v43 }
 0x428   :  { %v11866_v21 = vpop.f32.mrf.mxu1 }
 0x429   :  { %v5309_v5 = vadd.f32 %v5308_v52, %v5236_v1  ;;  %12213 = vst [vmem:[#allocation52_spill] sm:$0xff] %v11866_v21 }
 0x444   :  { %v5420_v22 = vpop.f32.mrf.mxu0 }
 0x446   :  { %v5422_v28 = vpop.f32.mrf.mxu0 }
 0x448   :  { %v5424_v14 = vpop.f32.mrf.mxu0 }
 0x44a   :  { %v5347_v56 = vpop.f32.mrf.mxu1  ;;  %v5426_v11 = vpop.f32.mrf.mxu0 }
 0x44c   :  { %v5349_v54 = vpop.f32.mrf.mxu1  ;;  %v5430_v61 = vpop.f32.mrf.mxu0 }
 0x44e   :  { %v5351_v59 = vpop.f32.mrf.mxu1  ;;  %v11868_v16 = vpop.f32.mrf.mxu0 }
 0x450   :  { %v5353_v24 = vpop.f32.mrf.mxu1  ;;  %v5434_v20 = vpop.f32.mrf.mxu0 }
 0x452   :  { %v5357_v26 = vpop.f32.mrf.mxu1 }
 0x453   :  { %v5358_v13 = vadd.f32 %v5357_v26, %v5285_v40  ;;  %v5275_v40 = vadd.f32 %v11810_v31, %v11819_v17  ;;  %v5281_v31 = vadd.f32 %v11816_v48, %v11830_v62 }
 0x454   :  { %v5359_v43 = vpop.f32.mrf.mxu1 }
 0x455   :  { %v11870_v15 = vadd.f32 %v5430_v61, %v5358_v13  ;;  %v11888_v13 = vpop.f32.mrf.mxu0 }
 0x456   :  { %v5361_v1 = vpop.f32.mrf.mxu1 }
 0x457   :  { %v5362_v52 = vadd.f32 %v5361_v1, %v5289_v35  ;;  %v5348_v35 = vadd.f32 %v5347_v56, %v5275_v40  ;;  %v5354_v40 = vadd.f32 %v5353_v24, %v5281_v31 }
 0x458   :  { %v5363_v53 = vpop.f32.mrf.mxu1 }
 0x459   :  { %v11872_v42 = vadd.f32 %v5434_v20, %v5362_v52  ;;  %v5277_v20 = vadd.f32 %v11812_v37, %v11822_v7  ;;  %v5421_v56 = vadd.f32 %v5420_v22, %v5348_v35  ;;  %v5533_v22 = vmax.f32 %v11645_v18, 0.0 }
 0x45a   :  { %v5367_v21 = vpop.f32.mrf.mxu1  ;;  %v5427_v35 = vadd.f32 %v5426_v11, %v5354_v40  ;;  %v5291_v18 = vadd.f32 %v11832_v0, %v11846_v58 }
 0x45b   :  { %v5350_v52 = vadd.f32 %v5349_v54, %v5277_v20  ;;  %v5532_v54 = vmax.f32 %v11638_v2, 0.0 }
 0x45c   :  { %v11874_v63 = vpop.f32.mrf.mxu1 }
 0x45e   :  { %v11876_v12 = vpop.f32.mrf.mxu1 }
 0x45f   :  { %12214 = vst [vmem:[#allocation22_spill] sm:$0xff] %v11876_v12  ;;  %v5279_v12 = vadd.f32 %v11814_v57, %v11827_v49  ;;  %v5149_v57 = vadd.f32 %v11757_v38, %v11776_v25 }
 0x460   :  { %v11878_v27 = vpop.f32.mrf.mxu1 }
 0x461   :  { %12215 = vst [vmem:[#allocation27_spill] sm:$0xff] %v11878_v27  ;;  %v5222_v24 = vadd.f32 %v11848_v45, %v5149_v57 }
 0x462   :  { %v5377_v3 = vpop.f32.mrf.mxu1 }
 0x463   :  { %v11882_v26 = vadd.f32 %v5377_v3, %v5305_v6  ;;  %v5352_v3 = vadd.f32 %v5351_v59, %v5279_v12  ;;  %v11898_v6 = vpop.f32.mrf.mxu0  ;;  %v5295_v31 = vadd.f32 %v11835_v44, %v5222_v24 }
 0x464   :  { %v11884_v61 = vpop.f32.mrf.mxu1 }
 0x465   :  { %12216 = vst [vmem:[#allocation25_spill] sm:$0xff] %v11882_v26  ;;  %v5423_v26 = vadd.f32 %v5422_v28, %v5350_v52  ;;  %v11905_v48 = vpop.f32.mrf.mxu0  ;;  %v5425_v59 = vadd.f32 %v5424_v14, %v5352_v3  ;;  %v5151_v28 = vadd.f32 %v11761_v23, %v11784_v39  ;;  %v5153_v14 = vadd.f32 %v11768_v55, %v11788_v46 }
 0x466   :  { %v5381_v1 = vpop.f32.mrf.mxu1  ;;  %v5540_v3 = vmax.f32 %v11666_v50, 0.0  ;;  %v5368_v40 = vadd.f32 %v5367_v21, %v5295_v31 }
 0x467   :  { %v11892_v27 = vadd.f32 %v5381_v1, %v5309_v5  ;;  %v5287_v5 = vadd.f32 %v11824_v30, %v11838_v8  ;;  %v5536_v30 = vmax.f32 %v11654_v60, 0.0  ;;  %v5537_v8 = vmax.f32 %v11657_v19, 0.0  ;;  %v5444_v39 = vpop.f32.mrf.mxu0 }
 0x468   :  { %v11896_v17 = vpop.f32.mrf.mxu1  ;;  %v5224_v23 = vadd.f32 %v11852_v9, %v5151_v28  ;;  %v5226_v52 = vadd.f32 %v11854_v32, %v5153_v14  ;;  %v5155_v60 = vadd.f32 %v11780_v34, %v11790_v33  ;;  %v5364_v19 = vadd.f32 %v5363_v53, %v5291_v18  ;;  %v12220_v28 = vld [vmem:[#allocation37_spill] sm:$0xff] }
 0x469   :  { %v5360_v20 = vadd.f32 %v5359_v43, %v5287_v5  ;;  %v12217_v5 = vld [vmem:[#allocation41_spill] sm:$0xff] }
 0x46a   :  { %v5493_v37 = vpop.f32.mrf.mxu1  ;;  %v5297_v34 = vadd.f32 %v11840_v4, %v5224_v23  ;;  %v5437_v50 = vadd.f32 %v11888_v13, %v5364_v19  ;;  %v12224_v18 = vld [vmem:[#allocation49_spill] sm:$0xff]  ;;  %v12225_v23 = vld [vmem:[#allocation52_spill] sm:$0xff] }
 0x46b   :  { %v5494_v7 = vadd.f32 %v5493_v37, %v5421_v56  ;;  %v5433_v9 = vadd.f32 %v11868_v16, %v5360_v20  ;;  %v5228_v56 = vadd.f32 %v11856_v41, %v5155_v60  ;;  %v5446_v37 = vpop.f32.mrf.mxu0  ;;  %v5299_v16 = vadd.f32 %v11843_v47, %v5226_v52  ;;  %v12219_v47 = vld [vmem:[#allocation22_spill] sm:$0xff] }
 0x46c   :  { %v5495_v49 = vpop.f32.mrf.mxu1  ;;  %v5370_v21 = vadd.f32 %v11874_v63, %v5297_v34 }
 0x46d   :  { %v5534_v62 = vmax.f32 %v5494_v7, 0.0  ;;  %v5496_v12 = vadd.f32 %v5495_v49, %v5423_v26  ;;  %v5541_v7 = vmax.f32 %v11673_v36, 0.0  ;;  %v5544_v49 = vmax.f32 %v11679_v10, 0.0  ;;  %v12218_v36 = vld [vmem:[#allocation36_spill] sm:$0xff]  ;;  %v12223_v10 = vld [vmem:[#allocation27_spill] sm:$0xff] }
 0x46e   :  { %v5497_v2 = vpop.f32.mrf.mxu1 }
 0x46f   :  { %v11911_v38 = vmax.f32 %v5532_v54, %v5534_v62  ;;  %v5535_v25 = vmax.f32 %v5496_v12, 0.0  ;;  %v5498_v1 = vadd.f32 %v5497_v2, %v5425_v59  ;;  %v5301_v12 = vadd.f32 %v12218_v36, %v5228_v56 }
 0x470   :  { %v5499_v45 = vpop.f32.mrf.mxu1  ;;  %v5545_v2 = vmax.f32 %v12220_v28, 0.0 }
 0x471   :  { %v11920_v11 = vmax.f32 %v5533_v22, %v5535_v25  ;;  %v5538_v43 = vmax.f32 %v5498_v1, 0.0  ;;  %v5500_v26 = vadd.f32 %v5499_v45, %v5427_v35  ;;  %v5372_v22 = vadd.f32 %v12219_v47, %v5299_v16  ;;  %v12221_v35 = vld [vmem:[#allocation26_spill] sm:$0xff] }
 0x472   :  { %v5503_v55 = vpop.f32.mrf.mxu1  ;;  %v5374_v25 = vadd.f32 %v12223_v10, %v5301_v12  ;;  %v5548_v45 = vmax.f32 %v12224_v18, 0.0  ;;  %v12233_v10 = vld [vmem:[#allocation47_spill] sm:$0xff] }
 0x473   :  { %v11926_v46 = vmax.f32 %v5536_v30, %v5538_v43  ;;  %v5539_v0 = vmax.f32 %v5500_v26, 0.0  ;;  %v5504_v58 = vadd.f32 %v5503_v55, %v11870_v15  ;;  %v5161_v15 = vadd.f32 %v11795_v51, %v11797_v29  ;;  %v5450_v29 = vpop.f32.mrf.mxu0  ;;  %v12226_v26 = vld [vmem:[#allocation40_spill] sm:$0xff] }
 0x474   :  { %v5505_v32 = vpop.f32.mrf.mxu1  ;;  %v5441_v51 = vadd.f32 %v11898_v6, %v5368_v40  ;;  %v5443_v6 = vadd.f32 %v11905_v48, %v5370_v21  ;;  %v5447_v40 = vadd.f32 %v5446_v37, %v5374_v25 }
 0x475   :  { %v11933_v53 = vmax.f32 %v5537_v8, %v5539_v0  ;;  %v5542_v33 = vmax.f32 %v5504_v58, 0.0  ;;  %v5506_v44 = vadd.f32 %v5505_v32, %v5433_v9  ;;  %v5234_v62 = vadd.f32 %v12217_v5, %v5161_v15  ;;  %v5452_v19 = vpop.f32.mrf.mxu0  ;;  %v12227_v9 = vld [vmem:[#allocation39_spill] sm:$0xff]  ;;  %v12229_v15 = vld [vmem:[#allocation28_spill] sm:$0xff] }
 0x476   :  { %v5507_v54 = vpop.f32.mrf.mxu1  ;;  %v5445_v58 = vadd.f32 %v5444_v39, %v5372_v22  ;;  %v12232_v22 = vld [vmem:[#allocation50_spill] sm:$0xff] }
 0x477   :  { %v11941_v41 = vmax.f32 %v5540_v3, %v5542_v33  ;;  %v5543_v57 = vmax.f32 %v5506_v44, 0.0  ;;  %v5508_v4 = vadd.f32 %v5507_v54, %v11872_v42  ;;  %v12222_v42 = vld [vmem:[#allocation23_spill] sm:$0xff]  ;;  %v5307_v52 = vadd.f32 %v12226_v26, %v5234_v62  ;;  %v12228_v44 = vld [vmem:[#allocation48_spill] sm:$0xff] }
 0x478   :  { %v5509_v59 = vpop.f32.mrf.mxu1  ;;  %v5165_v20 = vadd.f32 %v12222_v42, %v12221_v35  ;;  %v5549_v3 = vmax.f32 %v12227_v9, 0.0  ;;  %v12231_v62 = vld [vmem:[#allocation51_spill] sm:$0xff] }
 0x479   :  { %v11949_v13 = vmax.f32 %v5541_v7, %v5543_v57  ;;  %v5546_v63 = vmax.f32 %v5508_v4, 0.0  ;;  %v5510_v24 = vadd.f32 %v5509_v59, %v5437_v50  ;;  %v5380_v32 = vadd.f32 %v11884_v61, %v5307_v52  ;;  %v12230_v50 = vld [vmem:[#allocation25_spill] sm:$0xff]  ;;  %v5454_v57 = vpop.f32.mrf.mxu0 }
 0x47a   :  { %v5513_v1 = vpop.f32.mrf.mxu1  ;;  %v5238_v43 = vadd.f32 %v12225_v23, %v5165_v20  ;;  %v5552_v7 = vmax.f32 %v12228_v44, 0.0  ;;  %v5451_v21 = vadd.f32 %v5450_v29, %v12230_v50  ;;  %v5553_v37 = vmax.f32 %v12231_v62, 0.0  ;;  %v9736_v23 = vld [vmem:[#allocation9 + $0x4c4] ss:$16 sps:$4 sm:$0xff]  }
 0x47b   :  { %v11955_v30 = vmax.f32 %v5544_v49, %v5546_v63  ;;  %v5547_v8 = vmax.f32 %v5510_v24, 0.0  ;;  %v5514_v14 = vadd.f32 %v5513_v1, %v5441_v51  ;;  %v5453_v47 = vadd.f32 %v5452_v19, %v5380_v32  ;;  %v9763_v62 = vld [vmem:[#allocation9 + $0x664] ss:$16 sps:$4 sm:$0xff]  }
 0x47c   :  { %v5515_v60 = vpop.f32.mrf.mxu1  ;;  %v5311_v16 = vadd.f32 %v12229_v15, %v5238_v43  ;;  %v5556_v63 = vmax.f32 %v12232_v22, 0.0  ;;  %v5455_v29 = vadd.f32 %v5454_v57, %v11892_v27  ;;  %v9740_v15 = vld [vmem:[#allocation9 + $0x4a0] ss:$16 sps:$4 sm:$0xff]   ;;  %v9775_v22 = vld [vmem:[#allocation9 + $0x624] ss:$16 sps:$4 sm:$0xff]  }
 0x47d   :  { %v11961_v31 = vmax.f32 %v5545_v2, %v5547_v8  ;;  %v5550_v55 = vmax.f32 %v5514_v14, 0.0  ;;  %v5516_v0 = vadd.f32 %v5515_v60, %v5443_v6  ;;  %v9731_v8 = vld [vmem:[#allocation9 + $0x4e0] ss:$16 sps:$4 sm:$0xff]  }
 0x47e   :  { %v5517_v56 = vpop.f32.mrf.mxu1  ;;  %v5384_v61 = vadd.f32 %v11896_v17, %v5311_v16  ;;  %v5557_v17 = vmax.f32 %v12233_v10, 0.0  ;;  %v9743_v16 = vld [vmem:[#allocation9 + $0x6c0] ss:$16 sps:$4 sm:$0xff]  }
 0x47f   :  { %v5572_v48 = vmax.f32 %v5548_v45, %v5550_v55  ;;  %v5551_v34 = vmax.f32 %v5516_v0, 0.0  ;;  %v5518_v33 = vadd.f32 %v5517_v56, %v5445_v58  ;;  %v12235_v0 = vld [vmem:[#allocation53_spill] sm:$0xff] }
 0x480   :  { %v5519_v54 = vpop.f32.mrf.mxu1  ;;  %v5561_v58 = vmax.f32 %v12235_v0, 0.0  ;;  %v9737_v56 = vld [vmem:[#allocation9 + $0x6e0] ss:$16 sps:$4 sm:$0xff]  }
 0x481   :  { %v5580_v4 = vmax.f32 %v11911_v38, %v5572_v48  ;;  %v5573_v39 = vmax.f32 %v5549_v3, %v5551_v34  ;;  %v5554_v49 = vmax.f32 %v5518_v33, 0.0  ;;  %v5520_v5 = vadd.f32 %v5519_v54, %v5447_v40  ;;  %v5456_v38 = vpop.f32.mrf.mxu0  ;;  %v9734_v3 = vld [vmem:[#allocation9 + $0x4c0] ss:$16 sps:$4 sm:$0xff]   ;;  %v9745_v34 = vld [vmem:[#allocation9 + $0x6c4] ss:$16 sps:$4 sm:$0xff]  }
 0x482   :  { %v5523_v36 = vpop.f32.mrf.mxu1  ;;  %v5457_v14 = vadd.f32 %v5456_v38, %v5384_v61  ;;  %v9748_v54 = vld [vmem:[#allocation9 + $0x484] ss:$16 sps:$4 sm:$0xff]   ;;  %v9749_v57 = vld [vmem:[#allocation9 + $0x6a0] ss:$16 sps:$4 sm:$0xff]  }
 0x483   :  { %v5574_v12 = vmax.f32 %v5552_v7, %v5554_v49  ;;  %v5555_v59 = vmax.f32 %v5520_v5, 0.0  ;;  %v5524_v51 = vadd.f32 %v5523_v36, %v5451_v21  ;;  %v5581_v28 = vmax.f32 %v11920_v11, %v5573_v39  ;;  %v12234_v11 = vld [vmem:[#allocation54_spill] sm:$0xff]  ;;  %v9752_v49 = vld [vmem:[#allocation9 + $0x460] ss:$16 sps:$4 sm:$0xff]  }
 0x484   :  { %v5525_v24 = vpop.f32.mrf.mxu1  ;;  %v11978_v6 = vpack.c.bf16 %v5580_v4, %v5580_v4  ;;  %v5560_v43 = vmax.f32 %v12234_v11, 0.0  ;;  %v9754_v4 = vld [vmem:[#allocation9 + $0x464] ss:$16 sps:$4 sm:$0xff]   ;;  %v9755_v5 = vld [vmem:[#allocation9 + $0x680] ss:$16 sps:$4 sm:$0xff]  }
 0x485   :  { %v5582_v2 = vmax.f32 %v11926_v46, %v5574_v12  ;;  %v5575_v35 = vmax.f32 %v5553_v37, %v5555_v59  ;;  %v5558_v42 = vmax.f32 %v5524_v51, 0.0  ;;  %v5526_v20 = vadd.f32 %v5525_v24, %v5453_v47  ;;  %v9757_v39 = vld [vmem:[#allocation9 + $0x684] ss:$16 sps:$4 sm:$0xff]   ;;  %v9758_v37 = vld [vmem:[#allocation9 + $0x440] ss:$16 sps:$4 sm:$0xff]  }
 0x486   :  { %v5527_v25 = vpop.f32.mrf.mxu1  ;;  %v11976_v1 = vpack.c.bf16 %v5581_v28, %v5581_v28  ;;  %v9761_v61 = vld [vmem:[#allocation9 + $0x660] ss:$16 sps:$4 sm:$0xff]   ;;  %v9766_v36 = vld [vmem:[#allocation9 + $0x424] ss:$16 sps:$4 sm:$0xff]  }
 0x487   :  { %v5576_v18 = vmax.f32 %v5556_v63, %v5558_v42  ;;  %v5559_v45 = vmax.f32 %v5526_v20, 0.0  ;;  %v5528_v27 = vadd.f32 %v5527_v25, %v5455_v29  ;;  %v5583_v26 = vmax.f32 %v11933_v53, %v5575_v35  ;;  %v9742_v53 = vld [vmem:[#allocation9 + $0x4a4] ss:$16 sps:$4 sm:$0xff]   ;;  %v9764_v59 = vld [vmem:[#allocation9 + $0x420] ss:$16 sps:$4 sm:$0xff]  }
 0x488   :  { %7186 = vmatprep.mubr.bf16.mxu1 %v11976_v1  ;;  %v5529_v46 = vpop.f32.mrf.mxu1  ;;  %v11990_v40 = vpack.c.bf16 %v5582_v2, %v5582_v2  ;;  %v9769_v12 = vld [vmem:[#allocation9 + $0x644] ss:$16 sps:$4 sm:$0xff]   ;;  %v9767_v51 = vld [vmem:[#allocation9 + $0x640] ss:$16 sps:$4 sm:$0xff]  }
 0x489   :  { %v11984_v52 = vmax.f32 %v11941_v41, %v5576_v18  ;;  %v5577_v60 = vmax.f32 %v5557_v17, %v5559_v45  ;;  %v5562_v19 = vmax.f32 %v5528_v27, 0.0  ;;  %v5530_v55 = vadd.f32 %v5529_v46, %v5457_v14  ;;  %7187 = vmatmul.mubr.bf16.vlgmr.msra.gmra.mxu1 %v11978_v6  ;;  %v9772_v47 = vld [vmem:[#allocation9 + $0x404] ss:$16 sps:$4 sm:$0xff]   ;;  %v9770_v63 = vld [vmem:[#allocation9 + $0x400] ss:$16 sps:$4 sm:$0xff]  }
 0x48a   :  { %7237 = vmatpush1.bf16.msra.mxu1 %v9731_v8  ;;  %v11988_v9 = vpack.c.bf16 %v5583_v26, %v5583_v26  ;;  %v9773_v24 = vld [vmem:[#allocation9 + $0x620] ss:$16 sps:$4 sm:$0xff]   ;;  %v9778_v29 = vld [vmem:[#allocation9 + $0x5e4] ss:$16 sps:$4 sm:$0xff]  }
 0x48b   :  { %v5578_v32 = vmax.f32 %v5560_v43, %v5562_v19  ;;  %v5563_v48 = vmax.f32 %v5530_v55, 0.0  ;;  %7238 = vmatprep.subr.bf16.mxu1 %v9736_v23  ;;  %v5585_v41 = vmax.f32 %v11949_v13, %v5577_v60  ;;  %v9751_v13 = vld [vmem:[#allocation9 + $0x6a4] ss:$16 sps:$4 sm:$0xff]   ;;  %v9776_v38 = vld [vmem:[#allocation9 + $0x5e0] ss:$16 sps:$4 sm:$0xff]  }
 0x48c   :  { %7227 = vmatprep.mubr.bf16.mxu0 %v11988_v9  ;;  %v9781_v28 = vld [vmem:[#allocation9 + $0x604] ss:$16 sps:$4 sm:$0xff]   ;;  %v9779_v2 = vld [vmem:[#allocation9 + $0x600] ss:$16 sps:$4 sm:$0xff]  }
 0x48d   :  { %v11995_v33 = vmax.f32 %v11955_v30, %v5578_v32  ;;  %v5579_v44 = vmax.f32 %v5561_v58, %v5563_v48  ;;  %7228 = vmatmul.mubr.bf16.vlgmr.msra.gmra.mxu0 %v11990_v40  ;;  %v11998_v7 = vpack.c.bf16 %v5585_v41, %v5585_v41  ;;  %v9746_v30 = vld [vmem:[#allocation9 + $0x480] ss:$16 sps:$4 sm:$0xff]   ;;  %v9784_v35 = vld [vmem:[#allocation9 + $0x5c4] ss:$16 sps:$4 sm:$0xff]  }
 0x48e   :  { %7239 = vmatpush1.bf16.msra.mxu1 %v9734_v3  ;;  %7278 = vmatpush1.bf16.msra.mxu0 %v9737_v56  ;;  %v9787_v42 = vld [vmem:[#allocation9 + $0x7e4] ss:$16 sps:$4 sm:$0xff]   ;;  %v9782_v20 = vld [vmem:[#allocation9 + $0x5c0] ss:$16 sps:$4 sm:$0xff]  }
 0x48f   :  { %7240 = vmatprep.subr.bf16.mxu1 %v9742_v53  ;;  %7268 = vmatprep.mubr.bf16.mxu1 %v11998_v7  ;;  %v5587_v50 = vmax.f32 %v11961_v31, %v5579_v44  ;;  %v9760_v31 = vld [vmem:[#allocation9 + $0x444] ss:$16 sps:$4 sm:$0xff]   ;;  %v9785_v10 = vld [vmem:[#allocation9 + $0x7e0] ss:$16 sps:$4 sm:$0xff]  }
 0x490   :  { %7279 = vmatprep.subr.bf16.mxu0 %v9745_v34  ;;  %v9790_v17 = vld [vmem:[#allocation9 + $0x5a4] ss:$16 sps:$4 sm:$0xff]   ;;  %v9788_v8 = vld [vmem:[#allocation9 + $0x5a0] ss:$16 sps:$4 sm:$0xff]  }
 0x491   :  { %v12002_v21 = vpack.c.bf16 %v5587_v50, %v5587_v50  ;;  %v9793_v25 = vld [vmem:[#allocation9 + $0x7c4] ss:$16 sps:$4 sm:$0xff]   ;;  %v9791_v14 = vld [vmem:[#allocation9 + $0x7c0] ss:$16 sps:$4 sm:$0xff]   ;;  %v9832_v50 = vld [vmem:[#allocation9 + $0xcc] ss:$16 sps:$4 sm:$0xff]  }
 0x492   :  { %7241 = vmatpush1.bf16.msra.mxu1 %v9740_v15  ;;  %7280 = vmatpush1.bf16.msra.mxu0 %v9743_v16  ;;  %v9796_v18 = vld [vmem:[#allocation9 + $0x584] ss:$16 sps:$4 sm:$0xff]   ;;  %v9794_v27 = vld [vmem:[#allocation9 + $0x580] ss:$16 sps:$4 sm:$0xff]   ;;  %v9829_v15 = vld [vmem:[#allocation9 + $0xec] ss:$16 sps:$4 sm:$0xff]  }
 0x493   :  { %7242 = vmatprep.subr.bf16.mxu1 %v9748_v54  ;;  %7281 = vmatprep.subr.bf16.mxu0 %v9751_v13  ;;  %v9799_v45 = vld [vmem:[#allocation9 + $0x7a4] ss:$16 sps:$4 sm:$0xff]   ;;  %v9797_v23 = vld [vmem:[#allocation9 + $0x7a0] ss:$16 sps:$4 sm:$0xff]   ;;  %v9827_v54 = vld [vmem:[#allocation9 + $0xe8] ss:$16 sps:$4 sm:$0xff]   ;;  %v12007_v13 = vpack.c.bf16 %v11984_v52, %v11984_v52 }
 0x494   :  { %7309 = vmatprep.mubr.bf16.mxu0 %v12002_v21  ;;  %v9802_v11 = vld [vmem:[#allocation9 + $0x564] ss:$16 sps:$4 sm:$0xff]   ;;  %v9800_v46 = vld [vmem:[#allocation9 + $0x560] ss:$16 sps:$4 sm:$0xff]   ;;  %v9841_v52 = vld [vmem:[#allocation9 + $0x2cc] ss:$16 sps:$4 sm:$0xff]  }
 0x495   :  { %v9805_v43 = vld [vmem:[#allocation9 + $0x784] ss:$16 sps:$4 sm:$0xff]   ;;  %v9803_v26 = vld [vmem:[#allocation9 + $0x780] ss:$16 sps:$4 sm:$0xff]  }
 0x496   :  { %7243 = vmatpush1.bf16.msra.mxu1 %v9746_v30  ;;  %7282 = vmatpush1.bf16.msra.mxu0 %v9749_v57  ;;  %v9808_v60 = vld [vmem:[#allocation9 + $0x544] ss:$16 sps:$4 sm:$0xff]   ;;  %v9806_v55 = vld [vmem:[#allocation9 + $0x540] ss:$16 sps:$4 sm:$0xff]   ;;  %v9835_v30 = vld [vmem:[#allocation9 + $0x2ec] ss:$16 sps:$4 sm:$0xff]  }
 0x497   :  { %7244 = vmatprep.subr.bf16.mxu1 %v9754_v4  ;;  %7283 = vmatprep.subr.bf16.mxu0 %v9757_v39  ;;  %v9811_v19 = vld [vmem:[#allocation9 + $0x764] ss:$16 sps:$4 sm:$0xff]   ;;  %v9809_v0 = vld [vmem:[#allocation9 + $0x760] ss:$16 sps:$4 sm:$0xff]   ;;  %v9830_v57 = vld [vmem:[#allocation9 + $0xc8] ss:$16 sps:$4 sm:$0xff]   ;;  %v12012_v39 = vpack.c.bf16 %v11995_v33, %v11995_v33 }
 0x498   :  { %v9814_v58 = vld [vmem:[#allocation9 + $0x524] ss:$16 sps:$4 sm:$0xff]   ;;  %v9812_v56 = vld [vmem:[#allocation9 + $0x520] ss:$16 sps:$4 sm:$0xff]   ;;  %v9833_v4 = vld [vmem:[#allocation9 + $0x2e8] ss:$16 sps:$4 sm:$0xff]  }
 0x499   :  { %v9817_v3 = vld [vmem:[#allocation9 + $0x744] ss:$16 sps:$4 sm:$0xff]   ;;  %v9815_v32 = vld [vmem:[#allocation9 + $0x740] ss:$16 sps:$4 sm:$0xff]   ;;  %v9842_v33 = vld [vmem:[#allocation9 + $0x88] ss:$16 sps:$4 sm:$0xff]  }
 0x49a   :  { %7245 = vmatpush1.bf16.msra.mxu1 %v9752_v49  ;;  %7284 = vmatpush1.bf16.msra.mxu0 %v9755_v5  ;;  %v9820_v48 = vld [vmem:[#allocation9 + $0x504] ss:$16 sps:$4 sm:$0xff]   ;;  %v9818_v41 = vld [vmem:[#allocation9 + $0x500] ss:$16 sps:$4 sm:$0xff]   ;;  %v9838_v49 = vld [vmem:[#allocation9 + $0xac] ss:$16 sps:$4 sm:$0xff]  }
 0x49b   :  { %7246 = vmatprep.subr.bf16.mxu1 %v9760_v31  ;;  %7285 = vmatprep.subr.bf16.mxu0 %v9763_v62  ;;  %v9823_v53 = vld [vmem:[#allocation9 + $0x724] ss:$16 sps:$4 sm:$0xff]   ;;  %v9821_v34 = vld [vmem:[#allocation9 + $0x720] ss:$16 sps:$4 sm:$0xff]   ;;  %v9836_v5 = vld [vmem:[#allocation9 + $0xa8] ss:$16 sps:$4 sm:$0xff]  }
 0x49c   :  { %v9826_v44 = vld [vmem:[#allocation9 + $0x704] ss:$16 sps:$4 sm:$0xff]   ;;  %v9824_v16 = vld [vmem:[#allocation9 + $0x700] ss:$16 sps:$4 sm:$0xff]   ;;  %v9839_v31 = vld [vmem:[#allocation9 + $0x2c8] ss:$16 sps:$4 sm:$0xff]  }
 0x49d   :  { %v9844_v62 = vld [vmem:[#allocation9 + $0x8c] ss:$16 sps:$4 sm:$0xff]  }
 0x49e   :  { %7247 = vmatpush1.bf16.msra.mxu1 %v9758_v37  ;;  %7286 = vmatpush1.bf16.msra.mxu0 %v9761_v61  ;;  %v9847_v37 = vld [vmem:[#allocation9 + $0x2ac] ss:$16 sps:$4 sm:$0xff]  }
 0x49f   :  { %7248 = vmatprep.subr.bf16.mxu1 %v9766_v36  ;;  %7287 = vmatprep.subr.bf16.mxu0 %v9769_v12  ;;  %v9850_v61 = vld [vmem:[#allocation9 + $0x6c] ss:$16 sps:$4 sm:$0xff]   ;;  %v9848_v12 = vld [vmem:[#allocation9 + $0x68] ss:$16 sps:$4 sm:$0xff]  }
 0x4a0   :  { %v9853_v36 = vld [vmem:[#allocation9 + $0x28c] ss:$16 sps:$4 sm:$0xff]  }
 0x4a2   :  { %7249 = vmatpush1.bf16.msra.mxu1 %v9764_v59  ;;  %7288 = vmatpush1.bf16.msra.mxu0 %v9767_v51  ;;  %v9851_v59 = vld [vmem:[#allocation9 + $0x288] ss:$16 sps:$4 sm:$0xff]   ;;  %v9856_v51 = vld [vmem:[#allocation9 + $0x4c] ss:$16 sps:$4 sm:$0xff]  }
 0x4a3   :  { %7250 = vmatprep.subr.bf16.mxu1 %v9772_v47  ;;  %7289 = vmatprep.subr.bf16.mxu0 %v9775_v22  ;;  %v9854_v47 = vld [vmem:[#allocation9 + $0x48] ss:$16 sps:$4 sm:$0xff]  }
 0x4a4   :  { %v9857_v22 = vld [vmem:[#allocation9 + $0x268] ss:$16 sps:$4 sm:$0xff]  }
 0x4a6   :  { %7251 = vmatpush1.bf16.msra.mxu1 %v9770_v63  ;;  %7290 = vmatpush1.bf16.msra.mxu0 %v9773_v24  ;;  %v9862_v63 = vld [vmem:[#allocation9 + $0x2c] ss:$16 sps:$4 sm:$0xff]  }
 0x4a7   :  { %7252 = vmatprep.subr.bf16.mxu1 %v9778_v29  ;;  %7291 = vmatprep.subr.bf16.mxu0 %v9781_v28  ;;  %v9865_v24 = vld [vmem:[#allocation9 + $0x24c] ss:$16 sps:$4 sm:$0xff]   ;;  %v9860_v29 = vld [vmem:[#allocation9 + $0x28] ss:$16 sps:$4 sm:$0xff]  }
 0x4a8   :  { %v9863_v28 = vld [vmem:[#allocation9 + $0x248] ss:$16 sps:$4 sm:$0xff]  }
 0x4aa   :  { %7253 = vmatpush2.bf16.msra.mxu1 %v9776_v38  ;;  %7292 = vmatpush1.bf16.msra.mxu0 %v9779_v2  ;;  %v9868_v38 = vld [vmem:[#allocation9 + $0xc] ss:$16 sps:$4 sm:$0xff]  }
 0x4ab   :  { %7254 = vmatprep.subr.bf16.mxu1 %v9784_v35  ;;  %7293 = vmatprep.subr.bf16.mxu0 %v9787_v42  ;;  %v9871_v2 = vld [vmem:[#allocation9 + $0x22c] ss:$16 sps:$4 sm:$0xff]   ;;  %v9866_v35 = vld [vmem:[#allocation9 + $0x8] ss:$16 sps:$4 sm:$0xff]  }
 0x4ac   :  { %v9869_v42 = vld [vmem:[#allocation9 + $0x228] ss:$16 sps:$4 sm:$0xff]  }
 0x4ae   :  { %7255 = vmatpush2.bf16.msra.mxu1 %v9782_v20  ;;  %7294 = vmatpush2.bf16.msra.mxu0 %v9785_v10  ;;  %v9874_v20 = vld [vmem:[#allocation9 + $0x1ec] ss:$16 sps:$4 sm:$0xff]  }
 0x4af   :  { %7256 = vmatprep.subr.bf16.mxu1 %v9790_v17  ;;  %7295 = vmatprep.subr.bf16.mxu0 %v9793_v25  ;;  %v9877_v10 = vld [vmem:[#allocation9 + $0x20c] ss:$16 sps:$4 sm:$0xff]   ;;  %v9872_v17 = vld [vmem:[#allocation9 + $0x1e8] ss:$16 sps:$4 sm:$0xff]  }
 0x4b0   :  { %v9875_v25 = vld [vmem:[#allocation9 + $0x208] ss:$16 sps:$4 sm:$0xff]  }
 0x4b2   :  { %7257 = vmatpush2.bf16.msra.mxu1 %v9788_v8  ;;  %7296 = vmatpush2.bf16.msra.mxu0 %v9791_v14  ;;  %v9880_v8 = vld [vmem:[#allocation9 + $0x1cc] ss:$16 sps:$4 sm:$0xff]  }
 0x4b3   :  { %7258 = vmatprep.subr.bf16.mxu1 %v9796_v18  ;;  %7297 = vmatprep.subr.bf16.mxu0 %v9799_v45  ;;  %v9883_v14 = vld [vmem:[#allocation9 + $0x3ec] ss:$16 sps:$4 sm:$0xff]   ;;  %v9878_v18 = vld [vmem:[#allocation9 + $0x1c8] ss:$16 sps:$4 sm:$0xff]  }
 0x4b4   :  { %v9881_v45 = vld [vmem:[#allocation9 + $0x3e8] ss:$16 sps:$4 sm:$0xff]  }
 0x4b6   :  { %7259 = vmatpush2.bf16.msra.mxu1 %v9794_v27  ;;  %7298 = vmatpush2.bf16.msra.mxu0 %v9797_v23  ;;  %v9886_v27 = vld [vmem:[#allocation9 + $0x1ac] ss:$16 sps:$4 sm:$0xff]  }
 0x4b7   :  { %7260 = vmatprep.subr.bf16.mxu1 %v9802_v11  ;;  %7299 = vmatprep.subr.bf16.mxu0 %v9805_v43  ;;  %v9889_v23 = vld [vmem:[#allocation9 + $0x3cc] ss:$16 sps:$4 sm:$0xff]   ;;  %v9884_v11 = vld [vmem:[#allocation9 + $0x1a8] ss:$16 sps:$4 sm:$0xff]  }
 0x4b8   :  { %v9887_v43 = vld [vmem:[#allocation9 + $0x3c8] ss:$16 sps:$4 sm:$0xff]  }
 0x4ba   :  { %7261 = vmatpush2.bf16.msra.mxu1 %v9800_v46  ;;  %7300 = vmatpush2.bf16.msra.mxu0 %v9803_v26  ;;  %v9892_v46 = vld [vmem:[#allocation9 + $0x18c] ss:$16 sps:$4 sm:$0xff]  }
 0x4bb   :  { %7262 = vmatprep.subr.bf16.mxu1 %v9808_v60  ;;  %7301 = vmatprep.subr.bf16.mxu0 %v9811_v19  ;;  %v9895_v26 = vld [vmem:[#allocation9 + $0x3ac] ss:$16 sps:$4 sm:$0xff]   ;;  %v9890_v60 = vld [vmem:[#allocation9 + $0x188] ss:$16 sps:$4 sm:$0xff]  }
 0x4bc   :  { %v9893_v19 = vld [vmem:[#allocation9 + $0x3a8] ss:$16 sps:$4 sm:$0xff]  }
 0x4be   :  { %7263 = vmatpush2.bf16.msra.mxu1 %v9806_v55  ;;  %7302 = vmatpush2.bf16.msra.mxu0 %v9809_v0  ;;  %v9898_v55 = vld [vmem:[#allocation9 + $0x16c] ss:$16 sps:$4 sm:$0xff]  }
 0x4bf   :  { %7264 = vmatprep.subr.bf16.mxu1 %v9814_v58  ;;  %7303 = vmatprep.subr.bf16.mxu0 %v9817_v3  ;;  %v9901_v0 = vld [vmem:[#allocation9 + $0x38c] ss:$16 sps:$4 sm:$0xff]   ;;  %v9896_v58 = vld [vmem:[#allocation9 + $0x168] ss:$16 sps:$4 sm:$0xff]  }
 0x4c0   :  { %v9899_v3 = vld [vmem:[#allocation9 + $0x388] ss:$16 sps:$4 sm:$0xff]  }
 0x4c2   :  { %7265 = vmatpush2.bf16.msra.mxu1 %v9812_v56  ;;  %7304 = vmatpush2.bf16.msra.mxu0 %v9815_v32  ;;  %v9904_v56 = vld [vmem:[#allocation9 + $0x14c] ss:$16 sps:$4 sm:$0xff]  }
 0x4c3   :  { %7266 = vmatprep.subr.bf16.mxu1 %v9820_v48  ;;  %7305 = vmatprep.subr.bf16.mxu0 %v9823_v53  ;;  %v9907_v32 = vld [vmem:[#allocation9 + $0x36c] ss:$16 sps:$4 sm:$0xff]   ;;  %v9902_v48 = vld [vmem:[#allocation9 + $0x148] ss:$16 sps:$4 sm:$0xff]  }
 0x4c4   :  { %v9905_v53 = vld [vmem:[#allocation9 + $0x368] ss:$16 sps:$4 sm:$0xff]  }
 0x4c6   :  { %7267 = vmatpush2.bf16.msra.mxu1 %v9818_v41  ;;  %7306 = vmatpush2.bf16.msra.mxu0 %v9821_v34  ;;  %v9910_v41 = vld [vmem:[#allocation9 + $0x12c] ss:$16 sps:$4 sm:$0xff]  }
 0x4c7   :  { %7307 = vmatprep.subr.bf16.mxu0 %v9826_v44  ;;  %7318 = vmatprep.subr.bf16.mxu1 %v9829_v15  ;;  %v9913_v34 = vld [vmem:[#allocation9 + $0x34c] ss:$16 sps:$4 sm:$0xff]   ;;  %v9908_v44 = vld [vmem:[#allocation9 + $0x128] ss:$16 sps:$4 sm:$0xff]  }
 0x4c8   :  { %v9911_v15 = vld [vmem:[#allocation9 + $0x348] ss:$16 sps:$4 sm:$0xff]  }
 0x4c9   :  { %7269 = vmatmul.mubr.bf16.vlgmr.msra.gmra.mxu1 %v12007_v13 }
 0x4ca   :  { %7308 = vmatpush2.bf16.msra.mxu0 %v9824_v16  ;;  %7319 = vmatpush1.bf16.msra.mxu1 %v9827_v54  ;;  %v9916_v16 = vld [vmem:[#allocation9 + $0x10c] ss:$16 sps:$4 sm:$0xff]  }
 0x4cb   :  { %7350 = vmatprep.mubr.bf16.mxu1 %v11976_v1  ;;  %7320 = vmatprep.subr.bf16.mxu1 %v9832_v50  ;;  %v9845_v1 = vld [vmem:[#allocation9 + $0x2a8] ss:$16 sps:$4 sm:$0xff]   ;;  %v9919_v54 = vld [vmem:[#allocation9 + $0x32c] ss:$16 sps:$4 sm:$0xff]  }
 0x4cc   :  { %7359 = vmatprep.subr.bf16.mxu0 %v9835_v30  ;;  %v9914_v50 = vld [vmem:[#allocation9 + $0x108] ss:$16 sps:$4 sm:$0xff]  }
 0x4cd   :  { %7310 = vmatmul.mubr.bf16.vlgmr.msra.gmra.mxu0 %v12012_v39  ;;  %v9917_v30 = vld [vmem:[#allocation9 + $0x328] ss:$16 sps:$4 sm:$0xff]  }
 0x4ce   :  { %7321 = vmatpush1.bf16.msra.mxu1 %v9830_v57  ;;  %7360 = vmatpush1.bf16.msra.mxu0 %v9833_v4  ;;  %v9922_v57 = vld [vmem:[#allocation9 + $0x30c] ss:$16 sps:$4 sm:$0xff]  }
 0x4cf   :  { %7391 = vmatprep.mubr.bf16.mxu0 %v11988_v9  ;;  %7322 = vmatprep.subr.bf16.mxu1 %v9838_v49  ;;  %v9859_v9 = vld [vmem:[#allocation9 + $0x26c] ss:$16 sps:$4 sm:$0xff]   ;;  %v9920_v49 = vld [vmem:[#allocation9 + $0x308] ss:$16 sps:$4 sm:$0xff]  }
 0x4d0   :  { %7361 = vmatprep.subr.bf16.mxu0 %v9841_v52  ;;  %v9925_v4 = vld [vmem:[#allocation9 + $0x4ec] ss:$16 sps:$4 sm:$0xff]   ;;  %v9923_v52 = vld [vmem:[#allocation9 + $0x4e8] ss:$16 sps:$4 sm:$0xff]  }
 0x4d2   :  { %7323 = vmatpush1.bf16.msra.mxu1 %v9836_v5  ;;  %7362 = vmatpush1.bf16.msra.mxu0 %v9839_v31  ;;  %v9928_v5 = vld [vmem:[#allocation9 + $0x4cc] ss:$16 sps:$4 sm:$0xff]  }
 0x4d3   :  { %7324 = vmatprep.subr.bf16.mxu1 %v9844_v62  ;;  %7363 = vmatprep.subr.bf16.mxu0 %v9847_v37  ;;  %v9931_v31 = vld [vmem:[#allocation9 + $0x6ec] ss:$16 sps:$4 sm:$0xff]   ;;  %v9926_v62 = vld [vmem:[#allocation9 + $0x4c8] ss:$16 sps:$4 sm:$0xff]  }
 0x4d4   :  { %v9929_v37 = vld [vmem:[#allocation9 + $0x6e8] ss:$16 sps:$4 sm:$0xff]  }
 0x4d6   :  { %7325 = vmatpush1.bf16.msra.mxu1 %v9842_v33  ;;  %7364 = vmatpush1.bf16.msra.mxu0 %v9845_v1  ;;  %v9934_v33 = vld [vmem:[#allocation9 + $0x4ac] ss:$16 sps:$4 sm:$0xff]  }
 0x4d7   :  { %7326 = vmatprep.subr.bf16.mxu1 %v9850_v61  ;;  %7365 = vmatprep.subr.bf16.mxu0 %v9853_v36  ;;  %v9937_v1 = vld [vmem:[#allocation9 + $0x6cc] ss:$16 sps:$4 sm:$0xff]   ;;  %v9932_v61 = vld [vmem:[#allocation9 + $0x4a8] ss:$16 sps:$4 sm:$0xff]  }
 0x4d8   :  { %v9935_v36 = vld [vmem:[#allocation9 + $0x6c8] ss:$16 sps:$4 sm:$0xff]  }
 0x4da   :  { %7327 = vmatpush1.bf16.msra.mxu1 %v9848_v12  ;;  %7366 = vmatpush1.bf16.msra.mxu0 %v9851_v59  ;;  %v9943_v12 = vld [vmem:[#allocation9 + $0x6ac] ss:$16 sps:$4 sm:$0xff]   ;;  %v9938_v59 = vld [vmem:[#allocation9 + $0x488] ss:$16 sps:$4 sm:$0xff]  }
 0x4db   :  { %7328 = vmatprep.subr.bf16.mxu1 %v9856_v51  ;;  %7367 = vmatprep.subr.bf16.mxu0 %v9859_v9  ;;  %v9946_v51 = vld [vmem:[#allocation9 + $0x46c] ss:$16 sps:$4 sm:$0xff]  }
 0x4dc   :  { %v9949_v9 = vld [vmem:[#allocation9 + $0x68c] ss:$16 sps:$4 sm:$0xff]  }
 0x4de   :  { %7329 = vmatpush1.bf16.msra.mxu1 %v9854_v47  ;;  %7368 = vmatpush1.bf16.msra.mxu0 %v9857_v22  ;;  %v9947_v47 = vld [vmem:[#allocation9 + $0x688] ss:$16 sps:$4 sm:$0xff]   ;;  %v9952_v22 = vld [vmem:[#allocation9 + $0x44c] ss:$16 sps:$4 sm:$0xff]  }
 0x4df   :  { %7330 = vmatprep.subr.bf16.mxu1 %v9862_v63  ;;  %7369 = vmatprep.subr.bf16.mxu0 %v9865_v24  ;;  %v9950_v63 = vld [vmem:[#allocation9 + $0x448] ss:$16 sps:$4 sm:$0xff]  }
 0x4e0   :  { %v9953_v24 = vld [vmem:[#allocation9 + $0x668] ss:$16 sps:$4 sm:$0xff]  }
 0x4e2   :  { %7331 = vmatpush1.bf16.msra.mxu1 %v9860_v29  ;;  %7370 = vmatpush1.bf16.msra.mxu0 %v9863_v28  ;;  %v9958_v29 = vld [vmem:[#allocation9 + $0x42c] ss:$16 sps:$4 sm:$0xff]  }
 0x4e3   :  { %7332 = vmatprep.subr.bf16.mxu1 %v9868_v38  ;;  %7371 = vmatprep.subr.bf16.mxu0 %v9871_v2  ;;  %v9961_v28 = vld [vmem:[#allocation9 + $0x64c] ss:$16 sps:$4 sm:$0xff]   ;;  %v9956_v38 = vld [vmem:[#allocation9 + $0x428] ss:$16 sps:$4 sm:$0xff]  }
 0x4e4   :  { %v9959_v2 = vld [vmem:[#allocation9 + $0x648] ss:$16 sps:$4 sm:$0xff]  }
 0x4e6   :  { %7333 = vmatpush1.bf16.msra.mxu1 %v9866_v35  ;;  %7372 = vmatpush1.bf16.msra.mxu0 %v9869_v42  ;;  %v9964_v35 = vld [vmem:[#allocation9 + $0x40c] ss:$16 sps:$4 sm:$0xff]  }
 0x4e7   :  { %7334 = vmatprep.subr.bf16.mxu1 %v9874_v20  ;;  %7373 = vmatprep.subr.bf16.mxu0 %v9877_v10  ;;  %v9967_v42 = vld [vmem:[#allocation9 + $0x62c] ss:$16 sps:$4 sm:$0xff]   ;;  %v9962_v20 = vld [vmem:[#allocation9 + $0x408] ss:$16 sps:$4 sm:$0xff]  }
 0x4e8   :  { %v9965_v10 = vld [vmem:[#allocation9 + $0x628] ss:$16 sps:$4 sm:$0xff]  }
 0x4ea   :  { %7335 = vmatpush2.bf16.msra.mxu1 %v9872_v17  ;;  %7374 = vmatpush1.bf16.msra.mxu0 %v9875_v25  ;;  %v9970_v17 = vld [vmem:[#allocation9 + $0x5ec] ss:$16 sps:$4 sm:$0xff]  }
 0x4eb   :  { %7336 = vmatprep.subr.bf16.mxu1 %v9880_v8  ;;  %7375 = vmatprep.subr.bf16.mxu0 %v9883_v14  ;;  %v9973_v25 = vld [vmem:[#allocation9 + $0x60c] ss:$16 sps:$4 sm:$0xff]   ;;  %v9968_v8 = vld [vmem:[#allocation9 + $0x5e8] ss:$16 sps:$4 sm:$0xff]  }
 0x4ec   :  { %v9971_v14 = vld [vmem:[#allocation9 + $0x608] ss:$16 sps:$4 sm:$0xff]  }
 0x4ee   :  { %7337 = vmatpush2.bf16.msra.mxu1 %v9878_v18  ;;  %7376 = vmatpush2.bf16.msra.mxu0 %v9881_v45  ;;  %v9976_v18 = vld [vmem:[#allocation9 + $0x5cc] ss:$16 sps:$4 sm:$0xff]  }
 0x4ef   :  { %7338 = vmatprep.subr.bf16.mxu1 %v9886_v27  ;;  %7377 = vmatprep.subr.bf16.mxu0 %v9889_v23  ;;  %v9979_v45 = vld [vmem:[#allocation9 + $0x7ec] ss:$16 sps:$4 sm:$0xff]   ;;  %v9974_v27 = vld [vmem:[#allocation9 + $0x5c8] ss:$16 sps:$4 sm:$0xff]  }
 0x4f0   :  { %v9977_v23 = vld [vmem:[#allocation9 + $0x7e8] ss:$16 sps:$4 sm:$0xff]  }
 0x4f2   :  { %7339 = vmatpush2.bf16.msra.mxu1 %v9884_v11  ;;  %7378 = vmatpush2.bf16.msra.mxu0 %v9887_v43  ;;  %v9982_v11 = vld [vmem:[#allocation9 + $0x5ac] ss:$16 sps:$4 sm:$0xff]  }
 0x4f3   :  { %7340 = vmatprep.subr.bf16.mxu1 %v9892_v46  ;;  %7379 = vmatprep.subr.bf16.mxu0 %v9895_v26  ;;  %v9985_v43 = vld [vmem:[#allocation9 + $0x7cc] ss:$16 sps:$4 sm:$0xff]   ;;  %v9980_v46 = vld [vmem:[#allocation9 + $0x5a8] ss:$16 sps:$4 sm:$0xff]  }
 0x4f4   :  { %v9983_v26 = vld [vmem:[#allocation9 + $0x7c8] ss:$16 sps:$4 sm:$0xff]  }
 0x4f6   :  { %7341 = vmatpush2.bf16.msra.mxu1 %v9890_v60  ;;  %7380 = vmatpush2.bf16.msra.mxu0 %v9893_v19  ;;  %v9988_v60 = vld [vmem:[#allocation9 + $0x58c] ss:$16 sps:$4 sm:$0xff]  }
 0x4f7   :  { %7342 = vmatprep.subr.bf16.mxu1 %v9898_v55  ;;  %7381 = vmatprep.subr.bf16.mxu0 %v9901_v0  ;;  %v9991_v19 = vld [vmem:[#allocation9 + $0x7ac] ss:$16 sps:$4 sm:$0xff]   ;;  %v9986_v55 = vld [vmem:[#allocation9 + $0x588] ss:$16 sps:$4 sm:$0xff]  }
 0x4f8   :  { %v9989_v0 = vld [vmem:[#allocation9 + $0x7a8] ss:$16 sps:$4 sm:$0xff]  }
 0x4fa   :  { %7343 = vmatpush2.bf16.msra.mxu1 %v9896_v58  ;;  %7382 = vmatpush2.bf16.msra.mxu0 %v9899_v3  ;;  %v9994_v58 = vld [vmem:[#allocation9 + $0x56c] ss:$16 sps:$4 sm:$0xff]  }
 0x4fb   :  { %7344 = vmatprep.subr.bf16.mxu1 %v9904_v56  ;;  %7383 = vmatprep.subr.bf16.mxu0 %v9907_v32  ;;  %v9997_v3 = vld [vmem:[#allocation9 + $0x78c] ss:$16 sps:$4 sm:$0xff]   ;;  %v9992_v56 = vld [vmem:[#allocation9 + $0x568] ss:$16 sps:$4 sm:$0xff]  }
 0x4fc   :  { %v9995_v32 = vld [vmem:[#allocation9 + $0x788] ss:$16 sps:$4 sm:$0xff]  }
 0x4fe   :  { %7345 = vmatpush2.bf16.msra.mxu1 %v9902_v48  ;;  %7384 = vmatpush2.bf16.msra.mxu0 %v9905_v53  ;;  %v10000_v48 = vld [vmem:[#allocation9 + $0x54c] ss:$16 sps:$4 sm:$0xff]  }
 0x4ff   :  { %7346 = vmatprep.subr.bf16.mxu1 %v9910_v41  ;;  %7385 = vmatprep.subr.bf16.mxu0 %v9913_v34  ;;  %v10003_v53 = vld [vmem:[#allocation9 + $0x76c] ss:$16 sps:$4 sm:$0xff]   ;;  %v9998_v41 = vld [vmem:[#allocation9 + $0x548] ss:$16 sps:$4 sm:$0xff]  }
 0x500   :  { %v10001_v34 = vld [vmem:[#allocation9 + $0x768] ss:$16 sps:$4 sm:$0xff]  }
 0x502   :  { %7347 = vmatpush2.bf16.msra.mxu1 %v9908_v44  ;;  %7386 = vmatpush2.bf16.msra.mxu0 %v9911_v15  ;;  %v10006_v44 = vld [vmem:[#allocation9 + $0x52c] ss:$16 sps:$4 sm:$0xff]  }
 0x503   :  { %7348 = vmatprep.subr.bf16.mxu1 %v9916_v16  ;;  %7387 = vmatprep.subr.bf16.mxu0 %v9919_v54  ;;  %v10009_v15 = vld [vmem:[#allocation9 + $0x74c] ss:$16 sps:$4 sm:$0xff]   ;;  %v10004_v16 = vld [vmem:[#allocation9 + $0x528] ss:$16 sps:$4 sm:$0xff]  }
 0x504   :  { %v10007_v54 = vld [vmem:[#allocation9 + $0x748] ss:$16 sps:$4 sm:$0xff]  }
 0x506   :  { %7349 = vmatpush2.bf16.msra.mxu1 %v9914_v50  ;;  %7388 = vmatpush2.bf16.msra.mxu0 %v9917_v30  ;;  %v10012_v50 = vld [vmem:[#allocation9 + $0x50c] ss:$16 sps:$4 sm:$0xff]  }
 0x507   :  { %7389 = vmatprep.subr.bf16.mxu0 %v9922_v57  ;;  %7400 = vmatprep.subr.bf16.mxu1 %v9925_v4  ;;  %v10015_v30 = vld [vmem:[#allocation9 + $0x72c] ss:$16 sps:$4 sm:$0xff]   ;;  %v10010_v57 = vld [vmem:[#allocation9 + $0x508] ss:$16 sps:$4 sm:$0xff]  }
 0x508   :  { %v10013_v4 = vld [vmem:[#allocation9 + $0x728] ss:$16 sps:$4 sm:$0xff]  }
 0x509   :  { %7351 = vmatmul.mubr.bf16.vlgmr.msra.gmra.mxu1 %v11978_v6  ;;  %v9940_v6 = vld [vmem:[#allocation9 + $0x48c] ss:$16 sps:$4 sm:$0xff]  }
 0x50a   :  { %7390 = vmatpush2.bf16.msra.mxu0 %v9920_v49  ;;  %7401 = vmatpush1.bf16.msra.mxu1 %v9923_v52  ;;  %v10018_v49 = vld [vmem:[#allocation9 + $0x70c] ss:$16 sps:$4 sm:$0xff]  }
 0x50b   :  { %7432 = vmatprep.mubr.bf16.mxu1 %v11998_v7  ;;  %7402 = vmatprep.subr.bf16.mxu1 %v9928_v5  ;;  %v9941_v7 = vld [vmem:[#allocation9 + $0x6a8] ss:$16 sps:$4 sm:$0xff]   ;;  %v10019_v52 = vld [vmem:[#allocation12 + $0x78] sm:$0xff]  }
 0x50c   :  { %7441 = vmatprep.subr.bf16.mxu0 %v9931_v31  ;;  %v10016_v5 = vld [vmem:[#allocation9 + $0x708] ss:$16 sps:$4 sm:$0xff]   ;;  %v10020_v31 = vld [vmem:[#allocation12 + $0x38] sm:$0xff]  }
 0x50d   :  { %7392 = vmatmul.mubr.bf16.vlgmr.msra.gmra.mxu0 %v11990_v40  ;;  %v9944_v40 = vld [vmem:[#allocation9 + $0x468] ss:$16 sps:$4 sm:$0xff]  }
 0x50e   :  { %7403 = vmatpush1.bf16.msra.mxu1 %v9926_v62  ;;  %7442 = vmatpush1.bf16.msra.mxu0 %v9929_v37  ;;  %v10021_v62 = vld [vmem:[#allocation12 + $0x70] sm:$0xff]  }
 0x50f   :  { %7473 = vmatprep.mubr.bf16.mxu0 %v12002_v21  ;;  %7404 = vmatprep.subr.bf16.mxu1 %v9934_v33  ;;  %v9955_v21 = vld [vmem:[#allocation9 + $0x66c] ss:$16 sps:$4 sm:$0xff]   ;;  %v10022_v33 = vld [vmem:[#allocation12 + $0x30] sm:$0xff]  }
 0x510   :  { %7443 = vmatprep.subr.bf16.mxu0 %v9937_v1 }
 0x512   :  { %7405 = vmatpush1.bf16.msra.mxu1 %v9932_v61  ;;  %7444 = vmatpush1.bf16.msra.mxu0 %v9935_v36  ;;  %v10023_v61 = vld [vmem:[#allocation12 + $0x68] sm:$0xff]  }
 0x513   :  { %7406 = vmatprep.subr.bf16.mxu1 %v9940_v6  ;;  %7445 = vmatprep.subr.bf16.mxu0 %v9943_v12  ;;  %v10024_v12 = vld [vmem:[#allocation12 + $0x28] sm:$0xff]  }
 0x516   :  { %7407 = vmatpush1.bf16.msra.mxu1 %v9938_v59  ;;  %7446 = vmatpush1.bf16.msra.mxu0 %v9941_v7 }
 0x517   :  { %7408 = vmatprep.subr.bf16.mxu1 %v9946_v51  ;;  %7447 = vmatprep.subr.bf16.mxu0 %v9949_v9  ;;  %v10025_v51 = vld [vmem:[#allocation12 + $0x60] sm:$0xff]  }
 0x51a   :  { %7409 = vmatpush1.bf16.msra.mxu1 %v9944_v40  ;;  %7448 = vmatpush1.bf16.msra.mxu0 %v9947_v47  ;;  %v10027_v40 = vld [vmem:[#allocation12 + $0x58] sm:$0xff]  }
 0x51b   :  { %7410 = vmatprep.subr.bf16.mxu1 %v9952_v22  ;;  %7449 = vmatprep.subr.bf16.mxu0 %v9955_v21  ;;  %v10035_v22 = vld [vmem:[#allocation12 + $0xf8] sm:$0xff]  }
 0x51c   :  { %v10036_v21 = vld [vmem:[#allocation12 + $0xb8] sm:$0xff]  }
 0x51e   :  { %7411 = vmatpush1.bf16.msra.mxu1 %v9950_v63  ;;  %7450 = vmatpush1.bf16.msra.mxu0 %v9953_v24  ;;  %v10037_v63 = vld [vmem:[#allocation12 + $0xf0] sm:$0xff]  }
 0x51f   :  { %7412 = vmatprep.subr.bf16.mxu1 %v9958_v29  ;;  %7451 = vmatprep.subr.bf16.mxu0 %v9961_v28  ;;  %v10038_v24 = vld [vmem:[#allocation12 + $0xb0] sm:$0xff]   ;;  %v10039_v28 = vld [vmem:[#allocation12 + $0xe8] sm:$0xff]  }
 0x520   :  { %v10029_v29 = vld [vmem:[#allocation12 + $0x50] sm:$0xff]  }
 0x522   :  { %7413 = vmatpush1.bf16.msra.mxu1 %v9956_v38  ;;  %7452 = vmatpush1.bf16.msra.mxu0 %v9959_v2  ;;  %v10030_v38 = vld [vmem:[#allocation12 + $0x10] sm:$0xff]   ;;  %v10040_v2 = vld [vmem:[#allocation12 + $0xa8] sm:$0xff]  }
 0x523   :  { %7414 = vmatprep.subr.bf16.mxu1 %v9964_v35  ;;  %7453 = vmatprep.subr.bf16.mxu0 %v9967_v42  ;;  %v10031_v35 = vld [vmem:[#allocation12 + $0x48] sm:$0xff]   ;;  %v10041_v42 = vld [vmem:[#allocation12 + $0xe0] sm:$0xff]  }
 0x526   :  { %7415 = vmatpush1.bf16.msra.mxu1 %v9962_v20  ;;  %7454 = vmatpush1.bf16.msra.mxu0 %v9965_v10  ;;  %v10032_v20 = vld [vmem:[#allocation12 + $0x8] sm:$0xff]   ;;  %v10042_v10 = vld [vmem:[#allocation12 + $0xa0] sm:$0xff]  }
 0x527   :  { %7416 = vmatprep.subr.bf16.mxu1 %v9970_v17  ;;  %7455 = vmatprep.subr.bf16.mxu0 %v9973_v25  ;;  %v10033_v17 = vld [vmem:[#allocation12 + $0x40] sm:$0xff]   ;;  %v10043_v25 = vld [vmem:[#allocation12 + $0xd8] sm:$0xff]  }
 0x52a   :  { %7417 = vmatpush2.bf16.msra.mxu1 %v9968_v8  ;;  %7456 = vmatpush1.bf16.msra.mxu0 %v9971_v14  ;;  %v10034_v8 = vld [vmem:[#allocation12] sm:$0xff]   ;;  %v10044_v14 = vld [vmem:[#allocation12 + $0x98] sm:$0xff]  }
 0x52b   :  { %7418 = vmatprep.subr.bf16.mxu1 %v9976_v18  ;;  %7457 = vmatprep.subr.bf16.mxu0 %v9979_v45  ;;  %v5852_v18 = vld [vmem:[#allocation10] sm:$0xf]  ;;  %v12236_v45 = vld [vmem:[#allocation20_spill] sm:$0xff] }
 0x52e   :  { %7419 = vmatpush2.bf16.msra.mxu1 %v9974_v27  ;;  %7458 = vmatpush2.bf16.msra.mxu0 %v9977_v23  ;;  %v5857_v27 = vrot.slane %v5852_v18, %v12236_v45  ;;  %v12237_v23 = vld [vmem:[#allocation44_spill] sm:$0xff] }
 0x52f   :  { %7420 = vmatprep.subr.bf16.mxu1 %v9982_v11  ;;  %7459 = vmatprep.subr.bf16.mxu0 %v9985_v43  ;;  %v5861_v11 = vrot.slane %v5852_v18, %v12237_v23 }
 0x532   :  { %7421 = vmatpush2.bf16.msra.mxu1 %v9980_v46  ;;  %7460 = vmatpush2.bf16.msra.mxu0 %v9983_v26 }
 0x533   :  { %7422 = vmatprep.subr.bf16.mxu1 %v9988_v60  ;;  %7461 = vmatprep.subr.bf16.mxu0 %v9991_v19  ;;  %v10045_v19 = vld [vmem:[#allocation12 + $0xd0] sm:$0xff]  }
 0x536   :  { %7423 = vmatpush2.bf16.msra.mxu1 %v9986_v55  ;;  %7462 = vmatpush2.bf16.msra.mxu0 %v9989_v0  ;;  %v10046_v0 = vld [vmem:[#allocation12 + $0x90] sm:$0xff]  }
 0x537   :  { %7424 = vmatprep.subr.bf16.mxu1 %v9994_v58  ;;  %7463 = vmatprep.subr.bf16.mxu0 %v9997_v3 }
 0x53a   :  { %7425 = vmatpush2.bf16.msra.mxu1 %v9992_v56  ;;  %7464 = vmatpush2.bf16.msra.mxu0 %v9995_v32 }
 0x53b   :  { %7426 = vmatprep.subr.bf16.mxu1 %v10000_v48  ;;  %7465 = vmatprep.subr.bf16.mxu0 %v10003_v53 }
 0x53e   :  { %7427 = vmatpush2.bf16.msra.mxu1 %v9998_v41  ;;  %7466 = vmatpush2.bf16.msra.mxu0 %v10001_v34  ;;  %v10047_v41 = vld [vmem:[#allocation12 + $0xc8] sm:$0xff]  }
 0x53f   :  { %7428 = vmatprep.subr.bf16.mxu1 %v10006_v44  ;;  %7467 = vmatprep.subr.bf16.mxu0 %v10009_v15  ;;  %v10048_v15 = vld [vmem:[#allocation12 + $0x88] sm:$0xff]  }
 0x542   :  { %7429 = vmatpush2.bf16.msra.mxu1 %v10004_v16  ;;  %7468 = vmatpush2.bf16.msra.mxu0 %v10007_v54 }
 0x543   :  { %7430 = vmatprep.subr.bf16.mxu1 %v10012_v50  ;;  %7469 = vmatprep.subr.bf16.mxu0 %v10015_v30 }
 0x546   :  { %7431 = vmatpush2.bf16.msra.mxu1 %v10010_v57  ;;  %7470 = vmatpush2.bf16.msra.mxu0 %v10013_v4  ;;  %v10049_v57 = vld [vmem:[#allocation12 + $0xc0] sm:$0xff]  }
 0x547   :  { %7471 = vmatprep.subr.bf16.mxu0 %v10018_v49  ;;  %8739 = vmatprep.subr.bf16.mxu1 %v10019_v52  ;;  %v10050_v49 = vld [vmem:[#allocation12 + $0x80] sm:$0xff]  }
 0x549   :  { %7433 = vmatmul.mubr.bf16.vlgmr.msra.gmra.mxu1 %v12007_v13  ;;  %v7188_v37 = vpop.f32.mrf.mxu1  ;;  %v10026_v13 = vld [vmem:[#allocation12 + $0x20] sm:$0xff]  }
 0x54a   :  { %7472 = vmatpush2.bf16.msra.mxu0 %v10016_v5  ;;  %8740 = vmatpush3.bf16.msra.mxu1 %v10020_v31  ;;  %v7189_v43 = vadd.f32 %v7188_v37, %v5857_v27 }
 0x54b   :  { %v7190_v1 = vpop.f32.mrf.mxu1  ;;  %8741 = vmatprep.subr.bf16.mxu1 %v10021_v62  ;;  %8761 = vmatprep.subr.bf16.mxu0 %v10035_v22 }
 0x54c   :  { %v7191_v26 = vadd.f32 %v7190_v1, %v5861_v11  ;;  %v8706_v11 = vld [vmem:[#allocation13] ss:$0 sm:$0xff] }
 0x54d   :  { %7474 = vmatmul.mubr.bf16.vlgmr.msra.gmra.mxu0 %v12012_v39  ;;  %v7192_v36 = vpop.f32.mrf.mxu1  ;;  %v7229_v6 = vpop.f32.mrf.mxu0  ;;  %v10028_v39 = vld [vmem:[#allocation12 + $0x18] sm:$0xff]  }
 0x54e   :  { %8742 = vmatpush3.bf16.msra.mxu1 %v10022_v33  ;;  %8762 = vmatpush3.bf16.msra.mxu0 %v10036_v21  ;;  %v7230_v60 = vadd.f32 %v7229_v6, %v7189_v43 }
 0x54f   :  { %v7193_v59 = vpop.f32.mrf.mxu1  ;;  %v7231_v7 = vpop.f32.mrf.mxu0  ;;  %8743 = vmatprep.subr.bf16.mxu1 %v10023_v61  ;;  %8763 = vmatprep.subr.bf16.mxu0 %v10037_v63 }
 0x550   :  { %v7232_v58 = vadd.f32 %v7231_v7, %v7191_v26  ;;  %v12239_v7 = vld [vmem:[#allocation21_spill] sm:$0xff] }
 0x551   :  { %v7233_v9 = vpop.f32.mrf.mxu0 }
 0x552   :  { %8744 = vmatpush3.bf16.msra.mxu1 %v10024_v12  ;;  %8764 = vmatpush3.bf16.msra.mxu0 %v10038_v24  ;;  %v12238_v12 = vld [vmem:[#allocation38_spill] sm:$0xff] }
 0x553   :  { %v7234_v47 = vpop.f32.mrf.mxu0  ;;  %8745 = vmatprep.subr.bf16.mxu1 %v10025_v51  ;;  %8765 = vmatprep.subr.bf16.mxu0 %v10039_v28  ;;  %v5865_v59 = vrot.slane %v5852_v18, %v12238_v12  ;;  %v5869_v51 = vrot.slane %v5852_v18, %v12239_v7 }
 0x556   :  { %8746 = vmatpush3.bf16.msra.mxu1 %v10026_v13  ;;  %8766 = vmatpush3.bf16.msra.mxu0 %v10040_v2 }
 0x557   :  { %8747 = vmatprep.subr.bf16.mxu1 %v10027_v40  ;;  %8767 = vmatprep.subr.bf16.mxu0 %v10041_v42 }
 0x55a   :  { %8748 = vmatpush3.bf16.msra.mxu1 %v10028_v39  ;;  %8768 = vmatpush3.bf16.msra.mxu0 %v10042_v10 }
 0x55b   :  { %8749 = vmatprep.subr.bf16.mxu1 %v10029_v29  ;;  %8769 = vmatprep.subr.bf16.mxu0 %v10043_v25 }
 0x55e   :  { %8750 = vmatpush3.bf16.msra.mxu1 %v10030_v38  ;;  %8770 = vmatpush3.bf16.msra.mxu0 %v10044_v14 }
 0x55f   :  { %8751 = vmatprep.subr.bf16.mxu1 %v10031_v35  ;;  %8771 = vmatprep.subr.bf16.mxu0 %v10045_v19 }
 0x562   :  { %8752 = vmatpush3.bf16.msra.mxu1 %v10032_v20  ;;  %8772 = vmatpush3.bf16.msra.mxu0 %v10046_v0 }
 0x563   :  { %8753 = vmatprep.subr.bf16.mxu1 %v10033_v17  ;;  %8773 = vmatprep.subr.bf16.mxu0 %v10047_v41 }
 0x566   :  { %8754 = vmatpush3.bf16.msra.mxu1 %v10034_v8  ;;  %8774 = vmatpush3.bf16.msra.mxu0 %v10048_v15 }
 0x567   :  { %8775 = vmatprep.subr.bf16.mxu0 %v10049_v57 }
 0x56a   :  { %8776 = vmatpush3.bf16.msra.mxu0 %v10050_v49 }
 0x589   :  { %v7270_v46 = vpop.f32.mrf.mxu1 }
 0x58a   :  { %v7271_v3 = vadd.f32 %v7270_v46, %v7230_v60 }
 0x58b   :  { %v7272_v55 = vpop.f32.mrf.mxu1 }
 0x58c   :  { %v7273_v48 = vadd.f32 %v7272_v55, %v7232_v58 }
 0x58d   :  { %v7274_v56 = vpop.f32.mrf.mxu1  ;;  %v7311_v32 = vpop.f32.mrf.mxu0 }
 0x58e   :  { %v7312_v53 = vadd.f32 %v7311_v32, %v7271_v3 }
 0x58f   :  { %v7275_v34 = vpop.f32.mrf.mxu1  ;;  %v7313_v44 = vpop.f32.mrf.mxu0 }
 0x590   :  { %v7314_v16 = vadd.f32 %v7313_v44, %v7273_v48  ;;  %v7482_v54 = vmax.f32 %v7312_v53, 0.0 }
 0x591   :  { %v7315_v50 = vpop.f32.mrf.mxu0 }
 0x592   :  { %v7483_v30 = vmax.f32 %v7314_v16, 0.0  ;;  %v7486_v5 = vpack.c.bf16 %v7482_v54, %v7482_v54 }
 0x593   :  { %v7316_v4 = vpop.f32.mrf.mxu0 }
 0x594   :  { %v7487_v52 = vpack.c.bf16 %v7483_v30, %v7483_v30 }
 0x596   :  { %7785 = vmatprep.mubr.bf16.mxu1 %v7487_v52 }
 0x597   :  { %7786 = vmatmul.mubr.bf16.vlgmr.msra.gmra.mxu1 %v7486_v5 }
 0x5c9   :  { %v7352_v31 = vpop.f32.mrf.mxu1 }
 0x5ca   :  { %v7353_v9 = vadd.f32 %v7352_v31, %v5865_v59 }
 0x5cb   :  { %v7354_v62 = vpop.f32.mrf.mxu1 }
 0x5cc   :  { %v7355_v40 = vadd.f32 %v7354_v62, %v5869_v51 }
 0x5cd   :  { %v7356_v37 = vpop.f32.mrf.mxu1  ;;  %v7393_v33 = vpop.f32.mrf.mxu0 }
 0x5ce   :  { %v7394_v47 = vadd.f32 %v7393_v33, %v7353_v9 }
 0x5cf   :  { %v7357_v1 = vpop.f32.mrf.mxu1  ;;  %v7395_v61 = vpop.f32.mrf.mxu0 }
 0x5d0   :  { %v7396_v21 = vadd.f32 %v7395_v61, %v7355_v40 }
 0x5d1   :  { %v7397_v36 = vpop.f32.mrf.mxu0 }
 0x5d3   :  { %v7398_v6 = vpop.f32.mrf.mxu0 }
 0x609   :  { %v7434_v13 = vpop.f32.mrf.mxu1 }
 0x60a   :  { %v7435_v63 = vadd.f32 %v7434_v13, %v7394_v47 }
 0x60b   :  { %v7436_v22 = vpop.f32.mrf.mxu1 }
 0x60c   :  { %v7437_v29 = vadd.f32 %v7436_v22, %v7396_v21 }
 0x60d   :  { %v7438_v39 = vpop.f32.mrf.mxu1  ;;  %v7475_v24 = vpop.f32.mrf.mxu0 }
 0x60e   :  { %v7476_v28 = vadd.f32 %v7475_v24, %v7435_v63 }
 0x60f   :  { %v7439_v38 = vpop.f32.mrf.mxu1  ;;  %v7477_v2 = vpop.f32.mrf.mxu0 }
 0x610   :  { %v7478_v35 = vadd.f32 %v7477_v2, %v7437_v29  ;;  %v7484_v42 = vmax.f32 %v7476_v28, 0.0 }
 0x611   :  { %v7479_v20 = vpop.f32.mrf.mxu0 }
 0x612   :  { %v7485_v10 = vmax.f32 %v7478_v35, 0.0  ;;  %v7488_v8 = vpack.c.bf16 %v7484_v42, %v7484_v42 }
 0x613   :  { %v7480_v17 = vpop.f32.mrf.mxu0 }
 0x614   :  { %v7489_v25 = vpack.c.bf16 %v7485_v10, %v7485_v10 }
 0x616   :  { %7825 = vmatprep.mubr.bf16.mxu0 %v7489_v25 }
 0x617   :  { %7826 = vmatmul.mubr.bf16.vlgmr.msra.gmra.mxu0 %v7488_v8 }
 0x657   :  { %v8755_v14 = vpop.f32.mrf.mxu1 }
 0x659   :  { %v8756_v18 = vpop.f32.mrf.mxu1 }
 0x65a   :  { %v8757_v45 = vadd.f32 %v8756_v18, %v8755_v14 }
 0x65b   :  { %v8758_v27 = vpop.f32.mrf.mxu1 }
 0x65c   :  { %v7788_v26 = vadd.f32 %v8757_v45, %v8706_v11 }
 0x65d   :  { %v8759_v23 = vpop.f32.mrf.mxu1 }
 0x6d7   :  { %v8777_v43 = vpop.f32.mrf.mxu0 }
 0x6d9   :  { %v8778_v46 = vpop.f32.mrf.mxu0 }
 0x6da   :  { %v8779_v60 = vadd.f32 %v8778_v46, %v8777_v43 }
 0x6db   :  { %v8780_v19 = vpop.f32.mrf.mxu0 }
 0x6dc   :  { %v7828_v55 = vadd.f32 %v8779_v60, %v7788_v26 }
 0x6dd   :  { %v8781_v0 = vpop.f32.mrf.mxu0 }
 0x6de   :  { %7833 = vmax.xlane.f32.xlu0 %v7828_v55 }
 0x767   :  { %v7834_v58 = vpop.xlane.xlu0 %7833 }
 0x768   :  { %v7835_v3 = vsub.f32 %v7828_v55, %v7834_v58 }
 0x76a   :  { %v7836_v56 = vmul.f32 1.442695, %v7835_v3 }
 0x76c   :  { %10051 = vpow2.f32 %v7836_v56 }
 0x779   :  { %v10052_v32 = vpop.eup %10051 }
 0x77a   :  { %7838 = vadd.xlane.f32.xlu0 %v10052_v32 }
 0x803   :  { %v7839_v48 = vpop.xlane.xlu0 %7838 }
 0x804   :  { %10053 = vlog2.f32 %v7839_v48 }
 0x811   :  { %v10054_v53 = vpop.eup %10053 }
 0x812   :  { %v7841_v41 = vmul.f32 0.6931472, %v10054_v53 }
 0x814   :  { %v7842_v34 = vsub.f32 %v7835_v3, %v7841_v41 }
 0x816   :  { %7843 = vst [vmem:[%s12039_s9] sm:$0xff] %v7842_v34 }
 0x817   :  { %7848 = vsyncpa [#allocation3], 1 }
 0x818   :  { %7849 = vsyncpa [#allocation5], 1 }
 0x819   :  { %7850 = vsyncpa [#allocation8], 1 }
 0x81a   :  { %7851 = vsyncpa [#allocation11], 1 }
 0x81b   :  { %7852 = vsyncpa [#allocation14], 1 }

</bundles_post_ra>
